<compile_context>
chip_gen: v7x
topology: tpu7x:2x2x1
jax: 0.10.0
libtpu: 0.0.40
codegen_flags: <defaults>
</compile_context>

<pallas_src>
import functools

import jax
import jax.numpy as jnp
from jax.experimental import pallas as pl
from jax.experimental.pallas import tpu as pltpu

LANE = 128
SUBLANE = 8
# Fold sigmoid's 0.5 pre-scale into the i/f/o gate columns (PyTorch order i|f|g|o).
GATE_SCALE = (0.5, 0.5, 1.0, 0.5)


def _round_up(n, m):
    return ((n + m - 1) // m) * m


# ----------------------------------------------------------------------------
# Fused kernel: [LSTM layer x n_layer] -> Linear -> ReLU -> Linear.
# One grid step processes one batch block (BB padded rows) for ALL time steps.
# x_ref   : (T*BB, DP)   time-major inside the block, row = t*BB + b_local
# out_ref : (T*BB, OUT_PAD)  lane-dense store
# ----------------------------------------------------------------------------
def _rnn_net_fused_kernel(n_layer, T, BB, x_ref, *refs):
    lstm_refs = refs[: 3 * n_layer]
    w1_ref, b1_ref, w2_ref, b2_ref, out_ref, seq_scr = refs[3 * n_layer:]

    layer_in = x_ref[...].astype(jnp.bfloat16)                # (T*BB, DP)
    for layer in range(n_layer):
        wih = lstm_refs[3 * layer][...]                       # (DP|HP, 4*HP) bf16
        whh = lstm_refs[3 * layer + 1][...]                   # (HP, 4*HP)   bf16
        b = lstm_refs[3 * layer + 2][...]                     # (1, 4*HP)    f32
        hp = whh.shape[0]

        # Hoisted input projection: one matmul for the whole sequence.
        gx = jnp.dot(layer_in, wih, preferred_element_type=jnp.float32) + b

        h = jnp.zeros((BB, hp), jnp.float32)
        c = jnp.zeros((BB, hp), jnp.float32)
        for t in range(T):                                    # T static & small: unrolled
            gates = gx[t * BB:(t + 1) * BB, :] + jnp.dot(
                h.astype(jnp.bfloat16), whh,
                preferred_element_type=jnp.float32)           # (BB, 4*HP) f32
            # i/f/o columns were pre-scaled by 0.5 at prepare time, so ONE
            # tanh over the whole gate tensor covers all four nonlinearities.
            tg = jnp.tanh(gates)
            i_g = 0.5 * tg[:, 0 * hp:1 * hp] + 0.5
            f_g = 0.5 * tg[:, 1 * hp:2 * hp] + 0.5
            g_g = tg[:, 2 * hp:3 * hp]
            o_g = 0.5 * tg[:, 3 * hp:4 * hp] + 0.5
            c = f_g * c + i_g * g_g
            h = o_g * jnp.tanh(c)
            seq_scr[t * BB:(t + 1) * BB, :] = h               # full (8,128)-tile stores
        layer_in = seq_scr[...].astype(jnp.bfloat16)          # (T*BB, HP)

    # Fused MLP head over the whole sequence: Linear -> ReLU -> Linear.
    z = jnp.maximum(
        jnp.dot(layer_in, w1_ref[...], preferred_element_type=jnp.float32)
        + b1_ref[...], 0.0)
    out_ref[...] = jnp.dot(
        z.astype(jnp.bfloat16), w2_ref[...],
        preferred_element_type=jnp.float32) + b2_ref[...]


# ----------------------------------------------------------------------------
# One-time parameter prep: transpose, fuse biases, fold sigmoid pre-scale,
# pad per-gate to 128 lanes / sublane-align K, cast matmul weights to bf16.
# ----------------------------------------------------------------------------
def _pad_gate_cols(w_t, h, hp, scales):
    """(K, 4h) -> (K, 4*hp): gate g columns land at [g*hp, g*hp + h), scaled."""
    k = w_t.shape[0]
    out = jnp.zeros((k, 4 * hp), w_t.dtype)
    for g in range(4):
        out = out.at[:, g * hp: g * hp + h].set(scales[g] * w_t[:, g * h:(g + 1) * h])
    return out


def _pad_rows(w, rows):
    r, _ = w.shape
    return jnp.zeros((rows, w.shape[1]), w.dtype).at[:r, :].set(w)


def prepare_kernel_params(params):
    h = params["w1"].shape[0]
    out_dim = params["w2"].shape[0]
    in_dim = params["lstm"][0]["w_ih"].shape[1]
    hp = _round_up(h, LANE)
    out_pad = _round_up(out_dim, LANE)
    dp = _round_up(in_dim, SUBLANE)                           # sublane-pad layer-0 K

    kp = {"lstm": []}
    for layer, lp in enumerate(params["lstm"]):
        w_ih_t = lp["w_ih"].T.astype(jnp.float32)             # (D_in, 4H)
        w_ih_t = _pad_rows(w_ih_t, dp if layer == 0 else hp)
        w_hh_t = _pad_rows(lp["w_hh"].T.astype(jnp.float32), hp)
        bias = (lp["b_ih"] + lp["b_hh"]).astype(jnp.float32).reshape(1, -1)
        kp["lstm"].append((
            _pad_gate_cols(w_ih_t, h, hp, GATE_SCALE).astype(jnp.bfloat16),
            _pad_gate_cols(w_hh_t, h, hp, GATE_SCALE).astype(jnp.bfloat16),
            _pad_gate_cols(bias, h, hp, GATE_SCALE),          # bias stays f32
        ))

    kp["w1"] = jnp.zeros((hp, hp), jnp.float32).at[:h, :h].set(
        params["w1"].T.astype(jnp.float32)).astype(jnp.bfloat16)
    kp["b1"] = jnp.zeros((1, hp), jnp.float32).at[0, :h].set(
        params["b1"].astype(jnp.float32))
    kp["w2"] = jnp.zeros((hp, out_pad), jnp.float32).at[:h, :out_dim].set(
        params["w2"].T.astype(jnp.float32)).astype(jnp.bfloat16)
    kp["b2"] = jnp.zeros((1, out_pad), jnp.float32).at[0, :out_dim].set(
        params["b2"].astype(jnp.float32))
    return kp


# ----------------------------------------------------------------------------
# Forward (single fused pallas_call, batch grid) + pure-JAX f32 reference.
# ----------------------------------------------------------------------------
@functools.partial(jax.jit, static_argnames=("out_dim",))
def rnn_net_forward(x_btd, kparams, *, out_dim):
    """x_btd: (B, T, in_dim) batch-first, like nn.LSTM(batch_first=True)."""
    B, T, in_dim = x_btd.shape
    hp = kparams["w1"].shape[0]
    out_pad = kparams["w2"].shape[1]
    dp = kparams["lstm"][0][0].shape[0]
    n_layer = len(kparams["lstm"])

    # Batch blocking: pad B to sublane width; split into independent blocks so
    # v7x's two TensorCores each run the full recurrence on part of the batch.
    bb = min(_round_up(B, SUBLANE), 256)
    bp = _round_up(B, bb)
    nblk = bp // bb

    # (B, T, D) -> (nblk, T*BB, DP): time-major inside each block (row = t*BB+b).
    x = jnp.zeros((T, bp, dp), jnp.float32).at[:, :B, :in_dim].set(
        jnp.swapaxes(x_btd, 0, 1).astype(jnp.float32))
    x = x.reshape(T, nblk, bb, dp).transpose(1, 0, 2, 3).reshape(nblk, T * bb, dp)

    flat_w = []
    for wih, whh, b in kparams["lstm"]:
        flat_w += [wih, whh, b]
    flat_w += [kparams["w1"], kparams["b1"], kparams["w2"], kparams["b2"]]
    # Constant index_map -> weights stay VMEM-resident across grid steps.
    w_specs = [pl.BlockSpec(w.shape, lambda i: (0, 0)) for w in flat_w]

    out = pl.pallas_call(
        functools.partial(_rnn_net_fused_kernel, n_layer, T, bb),
        out_shape=jax.ShapeDtypeStruct((nblk, T * bb, out_pad), jnp.float32),
        grid_spec=pltpu.PrefetchScalarGridSpec(
            num_scalar_prefetch=0,
            grid=(nblk,),
            in_specs=[pl.BlockSpec((None, T * bb, dp), lambda i: (i, 0, 0))]
                     + w_specs,
            out_specs=pl.BlockSpec((None, T * bb, out_pad), lambda i: (i, 0, 0)),
            scratch_shapes=[pltpu.VMEM((T * bb, hp), jnp.float32)],
        ),
        compiler_params=pltpu.CompilerParams(
            dimension_semantics=("parallel",)),
    )(x, *flat_w)

    # (nblk, T*BB, OUT_PAD) -> (B, T, out_dim); drop batch/lane padding.
    out = out.reshape(nblk, T, bb, out_pad).transpose(1, 0, 2, 3)
    out = jnp.swapaxes(out.reshape(T, bp, out_pad), 0, 1)
    return out[:B, :, :out_dim]


def rnn_net_reference(x_btd, params):
    h_seq = x_btd
    for lp in params["lstm"]:
        B = h_seq.shape[0]
        H = lp["w_hh"].shape[1]

        def step(carry, xt, lp=lp):
            h, c = carry
            gates = xt @ lp["w_ih"].T + h @ lp["w_hh"].T + lp["b_ih"] + lp["b_hh"]
            i, f, g, o = jnp.split(gates, 4, axis=-1)
            c = jax.nn.sigmoid(f) * c + jax.nn.sigmoid(i) * jnp.tanh(g)
            h = jax.nn.sigmoid(o) * jnp.tanh(c)
            return (h, c), h

        init = (jnp.zeros((B, H)), jnp.zeros((B, H)))
        _, ys = jax.lax.scan(step, init, jnp.swapaxes(h_seq, 0, 1))
        h_seq = jnp.swapaxes(ys, 0, 1)
    y = h_seq @ params["w1"].T + params["b1"]
    z = jnp.maximum(y, 0.0)
    return z @ params["w2"].T + params["b2"]


# ----------------------------------------------------------------------------
# Parameter init (deterministic, PyTorch-style uniform ranges).
# ----------------------------------------------------------------------------
def init_params(key, in_dim, hidden_dim, n_layer, out_dim):
    params = {"lstm": []}
    k_lstm = 1.0 / jnp.sqrt(hidden_dim)
    for layer in range(n_layer):
        d_in = in_dim if layer == 0 else hidden_dim
        key, k1, k2, k3, k4 = jax.random.split(key, 5)
        params["lstm"].append(dict(
            w_ih=jax.random.uniform(k1, (4 * hidden_dim, d_in),
                                    minval=-k_lstm, maxval=k_lstm),
            w_hh=jax.random.uniform(k2, (4 * hidden_dim, hidden_dim),
                                    minval=-k_lstm, maxval=k_lstm),
            b_ih=jax.random.uniform(k3, (4 * hidden_dim,),
                                    minval=-k_lstm, maxval=k_lstm),
            b_hh=jax.random.uniform(k4, (4 * hidden_dim,),
                                    minval=-k_lstm, maxval=k_lstm),
        ))
    k1v = 1.0 / jnp.sqrt(hidden_dim)
    key, ka, kb, kc, kd = jax.random.split(key, 5)
    params["w1"] = jax.random.uniform(ka, (hidden_dim, hidden_dim),
                                      minval=-k1v, maxval=k1v)
    params["b1"] = jax.random.uniform(kb, (hidden_dim,), minval=-k1v, maxval=k1v)
    params["w2"] = jax.random.uniform(kc, (out_dim, hidden_dim),
                                      minval=-k1v, maxval=k1v)
    params["b2"] = jax.random.uniform(kd, (out_dim,), minval=-k1v, maxval=k1v)
    return params


if __name__ == "__main__":
    in_dim, hidden_dim, n_layer, out_dim = 4, 32, 2, 8
    B, T = 2, 8

    key = jax.random.PRNGKey(0)
    key, kx = jax.random.split(key)
    x = jax.random.normal(kx, (B, T, in_dim), dtype=jnp.float32)
    params = init_params(key, in_dim, hidden_dim, n_layer, out_dim)
    kparams = prepare_kernel_params(params)   # one-time transpose/fuse/scale/pad/cast

    out = rnn_net_forward(x, kparams, out_dim=out_dim)
    out = jax.block_until_ready(out)

    ref = rnn_net_reference(x, params)
    max_err = float(jnp.max(jnp.abs(out - ref)))
    assert out.shape == (B, T, out_dim), out.shape
    # bf16 matmul operands (f32 accumulation) vs. a pure-f32 reference:
    # error is a few 1e-3 on O(1) outputs; 2e-2 is a safe, still-tight bound.
    assert max_err < 2e-2, f"mismatch vs reference: {max_err}"

    print("KERNEL_OK")
</pallas_src>

<mosaic_0001>
module attributes {stable_mosaic.version = 11 : i64} {
  func.func @_rnn_net_fused_kernel(%arg0: i32, %arg1: memref<1x64x8xf32, #tpu.memory_space<vmem>>, %arg2: memref<8x512xbf16, #tpu.memory_space<vmem>>, %arg3: memref<128x512xbf16, #tpu.memory_space<vmem>>, %arg4: memref<1x512xf32, #tpu.memory_space<vmem>>, %arg5: memref<128x512xbf16, #tpu.memory_space<vmem>>, %arg6: memref<128x512xbf16, #tpu.memory_space<vmem>>, %arg7: memref<1x512xf32, #tpu.memory_space<vmem>>, %arg8: memref<128x128xbf16, #tpu.memory_space<vmem>>, %arg9: memref<1x128xf32, #tpu.memory_space<vmem>>, %arg10: memref<128x128xbf16, #tpu.memory_space<vmem>>, %arg11: memref<1x128xf32, #tpu.memory_space<vmem>>, %arg12: memref<1x64x128xf32, #tpu.memory_space<vmem>>, %arg13: memref<64x128xf32, #tpu.memory_space<vmem>>) attributes {dimension_semantics = [#tpu.dimension_semantics<parallel>], iteration_bounds = array<i64: 1>, scalar_prefetch = 0 : i64, scratch_operands = 1 : i64, tpu.core_type = #tpu.core_type<tc>, window_params = [{transform_indices = @transform_0, window_bounds = array<i64: 1, 64, 8>}, {pipeline_mode = #tpu.pipeline_mode<synchronous>, transform_indices = @transform_1, window_bounds = array<i64: 8, 512>}, {pipeline_mode = #tpu.pipeline_mode<synchronous>, transform_indices = @transform_2, window_bounds = array<i64: 128, 512>}, {pipeline_mode = #tpu.pipeline_mode<synchronous>, transform_indices = @transform_3, window_bounds = array<i64: 1, 512>}, {pipeline_mode = #tpu.pipeline_mode<synchronous>, transform_indices = @transform_4, window_bounds = array<i64: 128, 512>}, {pipeline_mode = #tpu.pipeline_mode<synchronous>, transform_indices = @transform_5, window_bounds = array<i64: 128, 512>}, {pipeline_mode = #tpu.pipeline_mode<synchronous>, transform_indices = @transform_6, window_bounds = array<i64: 1, 512>}, {pipeline_mode = #tpu.pipeline_mode<synchronous>, transform_indices = @transform_7, window_bounds = array<i64: 128, 128>}, {pipeline_mode = #tpu.pipeline_mode<synchronous>, transform_indices = @transform_8, window_bounds = array<i64: 1, 128>}, {pipeline_mode = #tpu.pipeline_mode<synchronous>, transform_indices = @transform_9, window_bounds = array<i64: 128, 128>}, {pipeline_mode = #tpu.pipeline_mode<synchronous>, transform_indices = @transform_10, window_bounds = array<i64: 1, 128>}, {transform_indices = @transform_11, window_bounds = array<i64: 1, 64, 128>}]} {
    %c0 = arith.constant 0 : index
    %c0_0 = arith.constant 0 : index
    %c0_1 = arith.constant 0 : index
    %0 = vector.load %arg1[%c0, %c0_0, %c0_1] : memref<1x64x8xf32, #tpu.memory_space<vmem>>, vector<1x64x8xf32>
    %1 = vector.shape_cast %0 : vector<1x64x8xf32> to vector<64x8xf32>
    %2 = arith.truncf %1 : vector<64x8xf32> to vector<64x8xbf16>
    %c0_2 = arith.constant 0 : index
    %c0_3 = arith.constant 0 : index
    %3 = vector.load %arg2[%c0_2, %c0_3] : memref<8x512xbf16, #tpu.memory_space<vmem>>, vector<8x512xbf16>
    %c0_4 = arith.constant 0 : index
    %c0_5 = arith.constant 0 : index
    %4 = vector.load %arg3[%c0_4, %c0_5] : memref<128x512xbf16, #tpu.memory_space<vmem>>, vector<128x512xbf16>
    %c0_6 = arith.constant 0 : index
    %c0_7 = arith.constant 0 : index
    %5 = vector.load %arg4[%c0_6, %c0_7] : memref<1x512xf32, #tpu.memory_space<vmem>>, vector<1x512xf32>
    %cst = arith.constant dense<0.000000e+00> : vector<64x512xf32>
    %6 = tpu.matmul %2, %3, %cst {dimension_numbers = #tpu.dot_dimension_numbers<[1], [0], [0], [1], [0, 0, 1, 1], [], []>} : vector<64x8xbf16>, vector<8x512xbf16>, vector<64x512xf32> -> vector<64x512xf32>
    %7 = vector.broadcast %5 : vector<1x512xf32> to vector<64x512xf32>
    %8 = arith.addf %6, %7 : vector<64x512xf32>
    %cst_8 = arith.constant 0.000000e+00 : f32
    %9 = vector.broadcast %cst_8 : f32 to vector<8x128xf32>
    %cst_9 = arith.constant 0.000000e+00 : f32
    %10 = vector.broadcast %cst_9 : f32 to vector<8x128xf32>
    %11 = vector.extract_strided_slice %8 {offsets = [0, 0], sizes = [8, 512], strides = [1, 1]} : vector<64x512xf32> to vector<8x512xf32>
    %12 = arith.truncf %9 : vector<8x128xf32> to vector<8x128xbf16>
    %cst_10 = arith.constant dense<0.000000e+00> : vector<8x512xf32>
    %13 = tpu.matmul %12, %4, %cst_10 {dimension_numbers = #tpu.dot_dimension_numbers<[1], [0], [0], [1], [0, 0, 1, 1], [], []>} : vector<8x128xbf16>, vector<128x512xbf16>, vector<8x512xf32> -> vector<8x512xf32>
    %14 = arith.addf %11, %13 : vector<8x512xf32>
    %15 = math.tanh %14 : vector<8x512xf32>
    %16 = vector.extract_strided_slice %15 {offsets = [0, 0], sizes = [8, 128], strides = [1, 1]} : vector<8x512xf32> to vector<8x128xf32>
    %cst_11 = arith.constant 5.000000e-01 : f32
    %17 = vector.broadcast %cst_11 : f32 to vector<8x128xf32>
    %18 = arith.mulf %17, %16 : vector<8x128xf32>
    %cst_12 = arith.constant 5.000000e-01 : f32
    %19 = vector.broadcast %cst_12 : f32 to vector<8x128xf32>
    %20 = arith.addf %18, %19 : vector<8x128xf32>
    %21 = vector.extract_strided_slice %15 {offsets = [0, 128], sizes = [8, 128], strides = [1, 1]} : vector<8x512xf32> to vector<8x128xf32>
    %cst_13 = arith.constant 5.000000e-01 : f32
    %22 = vector.broadcast %cst_13 : f32 to vector<8x128xf32>
    %23 = arith.mulf %22, %21 : vector<8x128xf32>
    %cst_14 = arith.constant 5.000000e-01 : f32
    %24 = vector.broadcast %cst_14 : f32 to vector<8x128xf32>
    %25 = arith.addf %23, %24 : vector<8x128xf32>
    %26 = vector.extract_strided_slice %15 {offsets = [0, 256], sizes = [8, 128], strides = [1, 1]} : vector<8x512xf32> to vector<8x128xf32>
    %27 = vector.extract_strided_slice %15 {offsets = [0, 384], sizes = [8, 128], strides = [1, 1]} : vector<8x512xf32> to vector<8x128xf32>
    %cst_15 = arith.constant 5.000000e-01 : f32
    %28 = vector.broadcast %cst_15 : f32 to vector<8x128xf32>
    %29 = arith.mulf %28, %27 : vector<8x128xf32>
    %cst_16 = arith.constant 5.000000e-01 : f32
    %30 = vector.broadcast %cst_16 : f32 to vector<8x128xf32>
    %31 = arith.addf %29, %30 : vector<8x128xf32>
    %32 = arith.mulf %25, %10 : vector<8x128xf32>
    %33 = arith.mulf %20, %26 : vector<8x128xf32>
    %34 = arith.addf %32, %33 : vector<8x128xf32>
    %35 = math.tanh %34 : vector<8x128xf32>
    %36 = arith.mulf %31, %35 : vector<8x128xf32>
    %c0_17 = arith.constant 0 : index
    %c0_18 = arith.constant 0 : index
    %37 = vector.load %arg13[%c0_17, %c0_18] : memref<64x128xf32, #tpu.memory_space<vmem>>, vector<8x128xf32>
    tpu.vector_store %arg13[%c0_17, %c0_18], %36 {strides = array<i32>} : memref<64x128xf32, #tpu.memory_space<vmem>>, vector<8x128xf32>,
    %38 = vector.extract_strided_slice %8 {offsets = [8, 0], sizes = [8, 512], strides = [1, 1]} : vector<64x512xf32> to vector<8x512xf32>
    %39 = arith.truncf %36 : vector<8x128xf32> to vector<8x128xbf16>
    %cst_19 = arith.constant dense<0.000000e+00> : vector<8x512xf32>
    %40 = tpu.matmul %39, %4, %cst_19 {dimension_numbers = #tpu.dot_dimension_numbers<[1], [0], [0], [1], [0, 0, 1, 1], [], []>} : vector<8x128xbf16>, vector<128x512xbf16>, vector<8x512xf32> -> vector<8x512xf32>
    %41 = arith.addf %38, %40 : vector<8x512xf32>
    %42 = math.tanh %41 : vector<8x512xf32>
    %43 = vector.extract_strided_slice %42 {offsets = [0, 0], sizes = [8, 128], strides = [1, 1]} : vector<8x512xf32> to vector<8x128xf32>
    %cst_20 = arith.constant 5.000000e-01 : f32
    %44 = vector.broadcast %cst_20 : f32 to vector<8x128xf32>
    %45 = arith.mulf %44, %43 : vector<8x128xf32>
    %cst_21 = arith.constant 5.000000e-01 : f32
    %46 = vector.broadcast %cst_21 : f32 to vector<8x128xf32>
    %47 = arith.addf %45, %46 : vector<8x128xf32>
    %48 = vector.extract_strided_slice %42 {offsets = [0, 128], sizes = [8, 128], strides = [1, 1]} : vector<8x512xf32> to vector<8x128xf32>
    %cst_22 = arith.constant 5.000000e-01 : f32
    %49 = vector.broadcast %cst_22 : f32 to vector<8x128xf32>
    %50 = arith.mulf %49, %48 : vector<8x128xf32>
    %cst_23 = arith.constant 5.000000e-01 : f32
    %51 = vector.broadcast %cst_23 : f32 to vector<8x128xf32>
    %52 = arith.addf %50, %51 : vector<8x128xf32>
    %53 = vector.extract_strided_slice %42 {offsets = [0, 256], sizes = [8, 128], strides = [1, 1]} : vector<8x512xf32> to vector<8x128xf32>
    %54 = vector.extract_strided_slice %42 {offsets = [0, 384], sizes = [8, 128], strides = [1, 1]} : vector<8x512xf32> to vector<8x128xf32>
    %cst_24 = arith.constant 5.000000e-01 : f32
    %55 = vector.broadcast %cst_24 : f32 to vector<8x128xf32>
    %56 = arith.mulf %55, %54 : vector<8x128xf32>
    %cst_25 = arith.constant 5.000000e-01 : f32
    %57 = vector.broadcast %cst_25 : f32 to vector<8x128xf32>
    %58 = arith.addf %56, %57 : vector<8x128xf32>
    %59 = arith.mulf %52, %34 : vector<8x128xf32>
    %60 = arith.mulf %47, %53 : vector<8x128xf32>
    %61 = arith.addf %59, %60 : vector<8x128xf32>
    %62 = math.tanh %61 : vector<8x128xf32>
    %63 = arith.mulf %58, %62 : vector<8x128xf32>
    %c8 = arith.constant 8 : index
    %c0_26 = arith.constant 0 : index
    %64 = vector.load %arg13[%c8, %c0_26] : memref<64x128xf32, #tpu.memory_space<vmem>>, vector<8x128xf32>
    tpu.vector_store %arg13[%c8, %c0_26], %63 {strides = array<i32>} : memref<64x128xf32, #tpu.memory_space<vmem>>, vector<8x128xf32>,
    %65 = vector.extract_strided_slice %8 {offsets = [16, 0], sizes = [8, 512], strides = [1, 1]} : vector<64x512xf32> to vector<8x512xf32>
    %66 = arith.truncf %63 : vector<8x128xf32> to vector<8x128xbf16>
    %cst_27 = arith.constant dense<0.000000e+00> : vector<8x512xf32>
    %67 = tpu.matmul %66, %4, %cst_27 {dimension_numbers = #tpu.dot_dimension_numbers<[1], [0], [0], [1], [0, 0, 1, 1], [], []>} : vector<8x128xbf16>, vector<128x512xbf16>, vector<8x512xf32> -> vector<8x512xf32>
    %68 = arith.addf %65, %67 : vector<8x512xf32>
    %69 = math.tanh %68 : vector<8x512xf32>
    %70 = vector.extract_strided_slice %69 {offsets = [0, 0], sizes = [8, 128], strides = [1, 1]} : vector<8x512xf32> to vector<8x128xf32>
    %cst_28 = arith.constant 5.000000e-01 : f32
    %71 = vector.broadcast %cst_28 : f32 to vector<8x128xf32>
    %72 = arith.mulf %71, %70 : vector<8x128xf32>
    %cst_29 = arith.constant 5.000000e-01 : f32
    %73 = vector.broadcast %cst_29 : f32 to vector<8x128xf32>
    %74 = arith.addf %72, %73 : vector<8x128xf32>
    %75 = vector.extract_strided_slice %69 {offsets = [0, 128], sizes = [8, 128], strides = [1, 1]} : vector<8x512xf32> to vector<8x128xf32>
    %cst_30 = arith.constant 5.000000e-01 : f32
    %76 = vector.broadcast %cst_30 : f32 to vector<8x128xf32>
    %77 = arith.mulf %76, %75 : vector<8x128xf32>
    %cst_31 = arith.constant 5.000000e-01 : f32
    %78 = vector.broadcast %cst_31 : f32 to vector<8x128xf32>
    %79 = arith.addf %77, %78 : vector<8x128xf32>
    %80 = vector.extract_strided_slice %69 {offsets = [0, 256], sizes = [8, 128], strides = [1, 1]} : vector<8x512xf32> to vector<8x128xf32>
    %81 = vector.extract_strided_slice %69 {offsets = [0, 384], sizes = [8, 128], strides = [1, 1]} : vector<8x512xf32> to vector<8x128xf32>
    %cst_32 = arith.constant 5.000000e-01 : f32
    %82 = vector.broadcast %cst_32 : f32 to vector<8x128xf32>
    %83 = arith.mulf %82, %81 : vector<8x128xf32>
    %cst_33 = arith.constant 5.000000e-01 : f32
    %84 = vector.broadcast %cst_33 : f32 to vector<8x128xf32>
    %85 = arith.addf %83, %84 : vector<8x128xf32>
    %86 = arith.mulf %79, %61 : vector<8x128xf32>
    %87 = arith.mulf %74, %80 : vector<8x128xf32>
    %88 = arith.addf %86, %87 : vector<8x128xf32>
    %89 = math.tanh %88 : vector<8x128xf32>
    %90 = arith.mulf %85, %89 : vector<8x128xf32>
    %c16 = arith.constant 16 : index
    %c0_34 = arith.constant 0 : index
    %91 = vector.load %arg13[%c16, %c0_34] : memref<64x128xf32, #tpu.memory_space<vmem>>, vector<8x128xf32>
    tpu.vector_store %arg13[%c16, %c0_34], %90 {strides = array<i32>} : memref<64x128xf32, #tpu.memory_space<vmem>>, vector<8x128xf32>,
    %92 = vector.extract_strided_slice %8 {offsets = [24, 0], sizes = [8, 512], strides = [1, 1]} : vector<64x512xf32> to vector<8x512xf32>
    %93 = arith.truncf %90 : vector<8x128xf32> to vector<8x128xbf16>
    %cst_35 = arith.constant dense<0.000000e+00> : vector<8x512xf32>
    %94 = tpu.matmul %93, %4, %cst_35 {dimension_numbers = #tpu.dot_dimension_numbers<[1], [0], [0], [1], [0, 0, 1, 1], [], []>} : vector<8x128xbf16>, vector<128x512xbf16>, vector<8x512xf32> -> vector<8x512xf32>
    %95 = arith.addf %92, %94 : vector<8x512xf32>
    %96 = math.tanh %95 : vector<8x512xf32>
    %97 = vector.extract_strided_slice %96 {offsets = [0, 0], sizes = [8, 128], strides = [1, 1]} : vector<8x512xf32> to vector<8x128xf32>
    %cst_36 = arith.constant 5.000000e-01 : f32
    %98 = vector.broadcast %cst_36 : f32 to vector<8x128xf32>
    %99 = arith.mulf %98, %97 : vector<8x128xf32>
    %cst_37 = arith.constant 5.000000e-01 : f32
    %100 = vector.broadcast %cst_37 : f32 to vector<8x128xf32>
    %101 = arith.addf %99, %100 : vector<8x128xf32>
    %102 = vector.extract_strided_slice %96 {offsets = [0, 128], sizes = [8, 128], strides = [1, 1]} : vector<8x512xf32> to vector<8x128xf32>
    %cst_38 = arith.constant 5.000000e-01 : f32
    %103 = vector.broadcast %cst_38 : f32 to vector<8x128xf32>
    %104 = arith.mulf %103, %102 : vector<8x128xf32>
    %cst_39 = arith.constant 5.000000e-01 : f32
    %105 = vector.broadcast %cst_39 : f32 to vector<8x128xf32>
    %106 = arith.addf %104, %105 : vector<8x128xf32>
    %107 = vector.extract_strided_slice %96 {offsets = [0, 256], sizes = [8, 128], strides = [1, 1]} : vector<8x512xf32> to vector<8x128xf32>
    %108 = vector.extract_strided_slice %96 {offsets = [0, 384], sizes = [8, 128], strides = [1, 1]} : vector<8x512xf32> to vector<8x128xf32>
    %cst_40 = arith.constant 5.000000e-01 : f32
    %109 = vector.broadcast %cst_40 : f32 to vector<8x128xf32>
    %110 = arith.mulf %109, %108 : vector<8x128xf32>
    %cst_41 = arith.constant 5.000000e-01 : f32
    %111 = vector.broadcast %cst_41 : f32 to vector<8x128xf32>
    %112 = arith.addf %110, %111 : vector<8x128xf32>
    %113 = arith.mulf %106, %88 : vector<8x128xf32>
    %114 = arith.mulf %101, %107 : vector<8x128xf32>
    %115 = arith.addf %113, %114 : vector<8x128xf32>
    %116 = math.tanh %115 : vector<8x128xf32>
    %117 = arith.mulf %112, %116 : vector<8x128xf32>
    %c24 = arith.constant 24 : index
    %c0_42 = arith.constant 0 : index
    %118 = vector.load %arg13[%c24, %c0_42] : memref<64x128xf32, #tpu.memory_space<vmem>>, vector<8x128xf32>
    tpu.vector_store %arg13[%c24, %c0_42], %117 {strides = array<i32>} : memref<64x128xf32, #tpu.memory_space<vmem>>, vector<8x128xf32>,
    %119 = vector.extract_strided_slice %8 {offsets = [32, 0], sizes = [8, 512], strides = [1, 1]} : vector<64x512xf32> to vector<8x512xf32>
    %120 = arith.truncf %117 : vector<8x128xf32> to vector<8x128xbf16>
    %cst_43 = arith.constant dense<0.000000e+00> : vector<8x512xf32>
    %121 = tpu.matmul %120, %4, %cst_43 {dimension_numbers = #tpu.dot_dimension_numbers<[1], [0], [0], [1], [0, 0, 1, 1], [], []>} : vector<8x128xbf16>, vector<128x512xbf16>, vector<8x512xf32> -> vector<8x512xf32>
    %122 = arith.addf %119, %121 : vector<8x512xf32>
    %123 = math.tanh %122 : vector<8x512xf32>
    %124 = vector.extract_strided_slice %123 {offsets = [0, 0], sizes = [8, 128], strides = [1, 1]} : vector<8x512xf32> to vector<8x128xf32>
    %cst_44 = arith.constant 5.000000e-01 : f32
    %125 = vector.broadcast %cst_44 : f32 to vector<8x128xf32>
    %126 = arith.mulf %125, %124 : vector<8x128xf32>
    %cst_45 = arith.constant 5.000000e-01 : f32
    %127 = vector.broadcast %cst_45 : f32 to vector<8x128xf32>
    %128 = arith.addf %126, %127 : vector<8x128xf32>
    %129 = vector.extract_strided_slice %123 {offsets = [0, 128], sizes = [8, 128], strides = [1, 1]} : vector<8x512xf32> to vector<8x128xf32>
    %cst_46 = arith.constant 5.000000e-01 : f32
    %130 = vector.broadcast %cst_46 : f32 to vector<8x128xf32>
    %131 = arith.mulf %130, %129 : vector<8x128xf32>
    %cst_47 = arith.constant 5.000000e-01 : f32
    %132 = vector.broadcast %cst_47 : f32 to vector<8x128xf32>
    %133 = arith.addf %131, %132 : vector<8x128xf32>
    %134 = vector.extract_strided_slice %123 {offsets = [0, 256], sizes = [8, 128], strides = [1, 1]} : vector<8x512xf32> to vector<8x128xf32>
    %135 = vector.extract_strided_slice %123 {offsets = [0, 384], sizes = [8, 128], strides = [1, 1]} : vector<8x512xf32> to vector<8x128xf32>
    %cst_48 = arith.constant 5.000000e-01 : f32
    %136 = vector.broadcast %cst_48 : f32 to vector<8x128xf32>
    %137 = arith.mulf %136, %135 : vector<8x128xf32>
    %cst_49 = arith.constant 5.000000e-01 : f32
    %138 = vector.broadcast %cst_49 : f32 to vector<8x128xf32>
    %139 = arith.addf %137, %138 : vector<8x128xf32>
    %140 = arith.mulf %133, %115 : vector<8x128xf32>
    %141 = arith.mulf %128, %134 : vector<8x128xf32>
    %142 = arith.addf %140, %141 : vector<8x128xf32>
    %143 = math.tanh %142 : vector<8x128xf32>
    %144 = arith.mulf %139, %143 : vector<8x128xf32>
    %c32 = arith.constant 32 : index
    %c0_50 = arith.constant 0 : index
    %145 = vector.load %arg13[%c32, %c0_50] : memref<64x128xf32, #tpu.memory_space<vmem>>, vector<8x128xf32>
    tpu.vector_store %arg13[%c32, %c0_50], %144 {strides = array<i32>} : memref<64x128xf32, #tpu.memory_space<vmem>>, vector<8x128xf32>,
    %146 = vector.extract_strided_slice %8 {offsets = [40, 0], sizes = [8, 512], strides = [1, 1]} : vector<64x512xf32> to vector<8x512xf32>
    %147 = arith.truncf %144 : vector<8x128xf32> to vector<8x128xbf16>
    %cst_51 = arith.constant dense<0.000000e+00> : vector<8x512xf32>
    %148 = tpu.matmul %147, %4, %cst_51 {dimension_numbers = #tpu.dot_dimension_numbers<[1], [0], [0], [1], [0, 0, 1, 1], [], []>} : vector<8x128xbf16>, vector<128x512xbf16>, vector<8x512xf32> -> vector<8x512xf32>
    %149 = arith.addf %146, %148 : vector<8x512xf32>
    %150 = math.tanh %149 : vector<8x512xf32>
    %151 = vector.extract_strided_slice %150 {offsets = [0, 0], sizes = [8, 128], strides = [1, 1]} : vector<8x512xf32> to vector<8x128xf32>
    %cst_52 = arith.constant 5.000000e-01 : f32
    %152 = vector.broadcast %cst_52 : f32 to vector<8x128xf32>
    %153 = arith.mulf %152, %151 : vector<8x128xf32>
    %cst_53 = arith.constant 5.000000e-01 : f32
    %154 = vector.broadcast %cst_53 : f32 to vector<8x128xf32>
    %155 = arith.addf %153, %154 : vector<8x128xf32>
    %156 = vector.extract_strided_slice %150 {offsets = [0, 128], sizes = [8, 128], strides = [1, 1]} : vector<8x512xf32> to vector<8x128xf32>
    %cst_54 = arith.constant 5.000000e-01 : f32
    %157 = vector.broadcast %cst_54 : f32 to vector<8x128xf32>
    %158 = arith.mulf %157, %156 : vector<8x128xf32>
    %cst_55 = arith.constant 5.000000e-01 : f32
    %159 = vector.broadcast %cst_55 : f32 to vector<8x128xf32>
    %160 = arith.addf %158, %159 : vector<8x128xf32>
    %161 = vector.extract_strided_slice %150 {offsets = [0, 256], sizes = [8, 128], strides = [1, 1]} : vector<8x512xf32> to vector<8x128xf32>
    %162 = vector.extract_strided_slice %150 {offsets = [0, 384], sizes = [8, 128], strides = [1, 1]} : vector<8x512xf32> to vector<8x128xf32>
    %cst_56 = arith.constant 5.000000e-01 : f32
    %163 = vector.broadcast %cst_56 : f32 to vector<8x128xf32>
    %164 = arith.mulf %163, %162 : vector<8x128xf32>
    %cst_57 = arith.constant 5.000000e-01 : f32
    %165 = vector.broadcast %cst_57 : f32 to vector<8x128xf32>
    %166 = arith.addf %164, %165 : vector<8x128xf32>
    %167 = arith.mulf %160, %142 : vector<8x128xf32>
    %168 = arith.mulf %155, %161 : vector<8x128xf32>
    %169 = arith.addf %167, %168 : vector<8x128xf32>
    %170 = math.tanh %169 : vector<8x128xf32>
    %171 = arith.mulf %166, %170 : vector<8x128xf32>
    %c40 = arith.constant 40 : index
    %c0_58 = arith.constant 0 : index
    %172 = vector.load %arg13[%c40, %c0_58] : memref<64x128xf32, #tpu.memory_space<vmem>>, vector<8x128xf32>
    tpu.vector_store %arg13[%c40, %c0_58], %171 {strides = array<i32>} : memref<64x128xf32, #tpu.memory_space<vmem>>, vector<8x128xf32>,
    %173 = vector.extract_strided_slice %8 {offsets = [48, 0], sizes = [8, 512], strides = [1, 1]} : vector<64x512xf32> to vector<8x512xf32>
    %174 = arith.truncf %171 : vector<8x128xf32> to vector<8x128xbf16>
    %cst_59 = arith.constant dense<0.000000e+00> : vector<8x512xf32>
    %175 = tpu.matmul %174, %4, %cst_59 {dimension_numbers = #tpu.dot_dimension_numbers<[1], [0], [0], [1], [0, 0, 1, 1], [], []>} : vector<8x128xbf16>, vector<128x512xbf16>, vector<8x512xf32> -> vector<8x512xf32>
    %176 = arith.addf %173, %175 : vector<8x512xf32>
    %177 = math.tanh %176 : vector<8x512xf32>
    %178 = vector.extract_strided_slice %177 {offsets = [0, 0], sizes = [8, 128], strides = [1, 1]} : vector<8x512xf32> to vector<8x128xf32>
    %cst_60 = arith.constant 5.000000e-01 : f32
    %179 = vector.broadcast %cst_60 : f32 to vector<8x128xf32>
    %180 = arith.mulf %179, %178 : vector<8x128xf32>
    %cst_61 = arith.constant 5.000000e-01 : f32
    %181 = vector.broadcast %cst_61 : f32 to vector<8x128xf32>
    %182 = arith.addf %180, %181 : vector<8x128xf32>
    %183 = vector.extract_strided_slice %177 {offsets = [0, 128], sizes = [8, 128], strides = [1, 1]} : vector<8x512xf32> to vector<8x128xf32>
    %cst_62 = arith.constant 5.000000e-01 : f32
    %184 = vector.broadcast %cst_62 : f32 to vector<8x128xf32>
    %185 = arith.mulf %184, %183 : vector<8x128xf32>
    %cst_63 = arith.constant 5.000000e-01 : f32
    %186 = vector.broadcast %cst_63 : f32 to vector<8x128xf32>
    %187 = arith.addf %185, %186 : vector<8x128xf32>
    %188 = vector.extract_strided_slice %177 {offsets = [0, 256], sizes = [8, 128], strides = [1, 1]} : vector<8x512xf32> to vector<8x128xf32>
    %189 = vector.extract_strided_slice %177 {offsets = [0, 384], sizes = [8, 128], strides = [1, 1]} : vector<8x512xf32> to vector<8x128xf32>
    %cst_64 = arith.constant 5.000000e-01 : f32
    %190 = vector.broadcast %cst_64 : f32 to vector<8x128xf32>
    %191 = arith.mulf %190, %189 : vector<8x128xf32>
    %cst_65 = arith.constant 5.000000e-01 : f32
    %192 = vector.broadcast %cst_65 : f32 to vector<8x128xf32>
    %193 = arith.addf %191, %192 : vector<8x128xf32>
    %194 = arith.mulf %187, %169 : vector<8x128xf32>
    %195 = arith.mulf %182, %188 : vector<8x128xf32>
    %196 = arith.addf %194, %195 : vector<8x128xf32>
    %197 = math.tanh %196 : vector<8x128xf32>
    %198 = arith.mulf %193, %197 : vector<8x128xf32>
    %c48 = arith.constant 48 : index
    %c0_66 = arith.constant 0 : index
    %199 = vector.load %arg13[%c48, %c0_66] : memref<64x128xf32, #tpu.memory_space<vmem>>, vector<8x128xf32>
    tpu.vector_store %arg13[%c48, %c0_66], %198 {strides = array<i32>} : memref<64x128xf32, #tpu.memory_space<vmem>>, vector<8x128xf32>,
    %200 = vector.extract_strided_slice %8 {offsets = [56, 0], sizes = [8, 512], strides = [1, 1]} : vector<64x512xf32> to vector<8x512xf32>
    %201 = arith.truncf %198 : vector<8x128xf32> to vector<8x128xbf16>
    %cst_67 = arith.constant dense<0.000000e+00> : vector<8x512xf32>
    %202 = tpu.matmul %201, %4, %cst_67 {dimension_numbers = #tpu.dot_dimension_numbers<[1], [0], [0], [1], [0, 0, 1, 1], [], []>} : vector<8x128xbf16>, vector<128x512xbf16>, vector<8x512xf32> -> vector<8x512xf32>
    %203 = arith.addf %200, %202 : vector<8x512xf32>
    %204 = math.tanh %203 : vector<8x512xf32>
    %205 = vector.extract_strided_slice %204 {offsets = [0, 0], sizes = [8, 128], strides = [1, 1]} : vector<8x512xf32> to vector<8x128xf32>
    %cst_68 = arith.constant 5.000000e-01 : f32
    %206 = vector.broadcast %cst_68 : f32 to vector<8x128xf32>
    %207 = arith.mulf %206, %205 : vector<8x128xf32>
    %cst_69 = arith.constant 5.000000e-01 : f32
    %208 = vector.broadcast %cst_69 : f32 to vector<8x128xf32>
    %209 = arith.addf %207, %208 : vector<8x128xf32>
    %210 = vector.extract_strided_slice %204 {offsets = [0, 128], sizes = [8, 128], strides = [1, 1]} : vector<8x512xf32> to vector<8x128xf32>
    %cst_70 = arith.constant 5.000000e-01 : f32
    %211 = vector.broadcast %cst_70 : f32 to vector<8x128xf32>
    %212 = arith.mulf %211, %210 : vector<8x128xf32>
    %cst_71 = arith.constant 5.000000e-01 : f32
    %213 = vector.broadcast %cst_71 : f32 to vector<8x128xf32>
    %214 = arith.addf %212, %213 : vector<8x128xf32>
    %215 = vector.extract_strided_slice %204 {offsets = [0, 256], sizes = [8, 128], strides = [1, 1]} : vector<8x512xf32> to vector<8x128xf32>
    %216 = vector.extract_strided_slice %204 {offsets = [0, 384], sizes = [8, 128], strides = [1, 1]} : vector<8x512xf32> to vector<8x128xf32>
    %cst_72 = arith.constant 5.000000e-01 : f32
    %217 = vector.broadcast %cst_72 : f32 to vector<8x128xf32>
    %218 = arith.mulf %217, %216 : vector<8x128xf32>
    %cst_73 = arith.constant 5.000000e-01 : f32
    %219 = vector.broadcast %cst_73 : f32 to vector<8x128xf32>
    %220 = arith.addf %218, %219 : vector<8x128xf32>
    %221 = arith.mulf %214, %196 : vector<8x128xf32>
    %222 = arith.mulf %209, %215 : vector<8x128xf32>
    %223 = arith.addf %221, %222 : vector<8x128xf32>
    %224 = math.tanh %223 : vector<8x128xf32>
    %225 = arith.mulf %220, %224 : vector<8x128xf32>
    %c56 = arith.constant 56 : index
    %c0_74 = arith.constant 0 : index
    %226 = vector.load %arg13[%c56, %c0_74] : memref<64x128xf32, #tpu.memory_space<vmem>>, vector<8x128xf32>
    tpu.vector_store %arg13[%c56, %c0_74], %225 {strides = array<i32>} : memref<64x128xf32, #tpu.memory_space<vmem>>, vector<8x128xf32>,
    %c0_75 = arith.constant 0 : index
    %c0_76 = arith.constant 0 : index
    %227 = vector.load %arg13[%c0_75, %c0_76] : memref<64x128xf32, #tpu.memory_space<vmem>>, vector<64x128xf32>
    %228 = arith.truncf %227 : vector<64x128xf32> to vector<64x128xbf16>
    %c0_77 = arith.constant 0 : index
    %c0_78 = arith.constant 0 : index
    %229 = vector.load %arg5[%c0_77, %c0_78] : memref<128x512xbf16, #tpu.memory_space<vmem>>, vector<128x512xbf16>
    %c0_79 = arith.constant 0 : index
    %c0_80 = arith.constant 0 : index
    %230 = vector.load %arg6[%c0_79, %c0_80] : memref<128x512xbf16, #tpu.memory_space<vmem>>, vector<128x512xbf16>
    %c0_81 = arith.constant 0 : index
    %c0_82 = arith.constant 0 : index
    %231 = vector.load %arg7[%c0_81, %c0_82] : memref<1x512xf32, #tpu.memory_space<vmem>>, vector<1x512xf32>
    %cst_83 = arith.constant dense<0.000000e+00> : vector<64x512xf32>
    %232 = tpu.matmul %228, %229, %cst_83 {dimension_numbers = #tpu.dot_dimension_numbers<[1], [0], [0], [1], [0, 0, 1, 1], [], []>} : vector<64x128xbf16>, vector<128x512xbf16>, vector<64x512xf32> -> vector<64x512xf32>
    %233 = vector.broadcast %231 : vector<1x512xf32> to vector<64x512xf32>
    %234 = arith.addf %232, %233 : vector<64x512xf32>
    %cst_84 = arith.constant 0.000000e+00 : f32
    %235 = vector.broadcast %cst_84 : f32 to vector<8x128xf32>
    %cst_85 = arith.constant 0.000000e+00 : f32
    %236 = vector.broadcast %cst_85 : f32 to vector<8x128xf32>
    %237 = vector.extract_strided_slice %234 {offsets = [0, 0], sizes = [8, 512], strides = [1, 1]} : vector<64x512xf32> to vector<8x512xf32>
    %238 = arith.truncf %235 : vector<8x128xf32> to vector<8x128xbf16>
    %cst_86 = arith.constant dense<0.000000e+00> : vector<8x512xf32>
    %239 = tpu.matmul %238, %230, %cst_86 {dimension_numbers = #tpu.dot_dimension_numbers<[1], [0], [0], [1], [0, 0, 1, 1], [], []>} : vector<8x128xbf16>, vector<128x512xbf16>, vector<8x512xf32> -> vector<8x512xf32>
    %240 = arith.addf %237, %239 : vector<8x512xf32>
    %241 = math.tanh %240 : vector<8x512xf32>
    %242 = vector.extract_strided_slice %241 {offsets = [0, 0], sizes = [8, 128], strides = [1, 1]} : vector<8x512xf32> to vector<8x128xf32>
    %cst_87 = arith.constant 5.000000e-01 : f32
    %243 = vector.broadcast %cst_87 : f32 to vector<8x128xf32>
    %244 = arith.mulf %243, %242 : vector<8x128xf32>
    %cst_88 = arith.constant 5.000000e-01 : f32
    %245 = vector.broadcast %cst_88 : f32 to vector<8x128xf32>
    %246 = arith.addf %244, %245 : vector<8x128xf32>
    %247 = vector.extract_strided_slice %241 {offsets = [0, 128], sizes = [8, 128], strides = [1, 1]} : vector<8x512xf32> to vector<8x128xf32>
    %cst_89 = arith.constant 5.000000e-01 : f32
    %248 = vector.broadcast %cst_89 : f32 to vector<8x128xf32>
    %249 = arith.mulf %248, %247 : vector<8x128xf32>
    %cst_90 = arith.constant 5.000000e-01 : f32
    %250 = vector.broadcast %cst_90 : f32 to vector<8x128xf32>
    %251 = arith.addf %249, %250 : vector<8x128xf32>
    %252 = vector.extract_strided_slice %241 {offsets = [0, 256], sizes = [8, 128], strides = [1, 1]} : vector<8x512xf32> to vector<8x128xf32>
    %253 = vector.extract_strided_slice %241 {offsets = [0, 384], sizes = [8, 128], strides = [1, 1]} : vector<8x512xf32> to vector<8x128xf32>
    %cst_91 = arith.constant 5.000000e-01 : f32
    %254 = vector.broadcast %cst_91 : f32 to vector<8x128xf32>
    %255 = arith.mulf %254, %253 : vector<8x128xf32>
    %cst_92 = arith.constant 5.000000e-01 : f32
    %256 = vector.broadcast %cst_92 : f32 to vector<8x128xf32>
    %257 = arith.addf %255, %256 : vector<8x128xf32>
    %258 = arith.mulf %251, %236 : vector<8x128xf32>
    %259 = arith.mulf %246, %252 : vector<8x128xf32>
    %260 = arith.addf %258, %259 : vector<8x128xf32>
    %261 = math.tanh %260 : vector<8x128xf32>
    %262 = arith.mulf %257, %261 : vector<8x128xf32>
    %c0_93 = arith.constant 0 : index
    %c0_94 = arith.constant 0 : index
    %263 = vector.load %arg13[%c0_93, %c0_94] : memref<64x128xf32, #tpu.memory_space<vmem>>, vector<8x128xf32>
    tpu.vector_store %arg13[%c0_93, %c0_94], %262 {strides = array<i32>} : memref<64x128xf32, #tpu.memory_space<vmem>>, vector<8x128xf32>,
    %264 = vector.extract_strided_slice %234 {offsets = [8, 0], sizes = [8, 512], strides = [1, 1]} : vector<64x512xf32> to vector<8x512xf32>
    %265 = arith.truncf %262 : vector<8x128xf32> to vector<8x128xbf16>
    %cst_95 = arith.constant dense<0.000000e+00> : vector<8x512xf32>
    %266 = tpu.matmul %265, %230, %cst_95 {dimension_numbers = #tpu.dot_dimension_numbers<[1], [0], [0], [1], [0, 0, 1, 1], [], []>} : vector<8x128xbf16>, vector<128x512xbf16>, vector<8x512xf32> -> vector<8x512xf32>
    %267 = arith.addf %264, %266 : vector<8x512xf32>
    %268 = math.tanh %267 : vector<8x512xf32>
    %269 = vector.extract_strided_slice %268 {offsets = [0, 0], sizes = [8, 128], strides = [1, 1]} : vector<8x512xf32> to vector<8x128xf32>
    %cst_96 = arith.constant 5.000000e-01 : f32
    %270 = vector.broadcast %cst_96 : f32 to vector<8x128xf32>
    %271 = arith.mulf %270, %269 : vector<8x128xf32>
    %cst_97 = arith.constant 5.000000e-01 : f32
    %272 = vector.broadcast %cst_97 : f32 to vector<8x128xf32>
    %273 = arith.addf %271, %272 : vector<8x128xf32>
    %274 = vector.extract_strided_slice %268 {offsets = [0, 128], sizes = [8, 128], strides = [1, 1]} : vector<8x512xf32> to vector<8x128xf32>
    %cst_98 = arith.constant 5.000000e-01 : f32
    %275 = vector.broadcast %cst_98 : f32 to vector<8x128xf32>
    %276 = arith.mulf %275, %274 : vector<8x128xf32>
    %cst_99 = arith.constant 5.000000e-01 : f32
    %277 = vector.broadcast %cst_99 : f32 to vector<8x128xf32>
    %278 = arith.addf %276, %277 : vector<8x128xf32>
    %279 = vector.extract_strided_slice %268 {offsets = [0, 256], sizes = [8, 128], strides = [1, 1]} : vector<8x512xf32> to vector<8x128xf32>
    %280 = vector.extract_strided_slice %268 {offsets = [0, 384], sizes = [8, 128], strides = [1, 1]} : vector<8x512xf32> to vector<8x128xf32>
    %cst_100 = arith.constant 5.000000e-01 : f32
    %281 = vector.broadcast %cst_100 : f32 to vector<8x128xf32>
    %282 = arith.mulf %281, %280 : vector<8x128xf32>
    %cst_101 = arith.constant 5.000000e-01 : f32
    %283 = vector.broadcast %cst_101 : f32 to vector<8x128xf32>
    %284 = arith.addf %282, %283 : vector<8x128xf32>
    %285 = arith.mulf %278, %260 : vector<8x128xf32>
    %286 = arith.mulf %273, %279 : vector<8x128xf32>
    %287 = arith.addf %285, %286 : vector<8x128xf32>
    %288 = math.tanh %287 : vector<8x128xf32>
    %289 = arith.mulf %284, %288 : vector<8x128xf32>
    %c8_102 = arith.constant 8 : index
    %c0_103 = arith.constant 0 : index
    %290 = vector.load %arg13[%c8_102, %c0_103] : memref<64x128xf32, #tpu.memory_space<vmem>>, vector<8x128xf32>
    tpu.vector_store %arg13[%c8_102, %c0_103], %289 {strides = array<i32>} : memref<64x128xf32, #tpu.memory_space<vmem>>, vector<8x128xf32>,
    %291 = vector.extract_strided_slice %234 {offsets = [16, 0], sizes = [8, 512], strides = [1, 1]} : vector<64x512xf32> to vector<8x512xf32>
    %292 = arith.truncf %289 : vector<8x128xf32> to vector<8x128xbf16>
    %cst_104 = arith.constant dense<0.000000e+00> : vector<8x512xf32>
    %293 = tpu.matmul %292, %230, %cst_104 {dimension_numbers = #tpu.dot_dimension_numbers<[1], [0], [0], [1], [0, 0, 1, 1], [], []>} : vector<8x128xbf16>, vector<128x512xbf16>, vector<8x512xf32> -> vector<8x512xf32>
    %294 = arith.addf %291, %293 : vector<8x512xf32>
    %295 = math.tanh %294 : vector<8x512xf32>
    %296 = vector.extract_strided_slice %295 {offsets = [0, 0], sizes = [8, 128], strides = [1, 1]} : vector<8x512xf32> to vector<8x128xf32>
    %cst_105 = arith.constant 5.000000e-01 : f32
    %297 = vector.broadcast %cst_105 : f32 to vector<8x128xf32>
    %298 = arith.mulf %297, %296 : vector<8x128xf32>
    %cst_106 = arith.constant 5.000000e-01 : f32
    %299 = vector.broadcast %cst_106 : f32 to vector<8x128xf32>
    %300 = arith.addf %298, %299 : vector<8x128xf32>
    %301 = vector.extract_strided_slice %295 {offsets = [0, 128], sizes = [8, 128], strides = [1, 1]} : vector<8x512xf32> to vector<8x128xf32>
    %cst_107 = arith.constant 5.000000e-01 : f32
    %302 = vector.broadcast %cst_107 : f32 to vector<8x128xf32>
    %303 = arith.mulf %302, %301 : vector<8x128xf32>
    %cst_108 = arith.constant 5.000000e-01 : f32
    %304 = vector.broadcast %cst_108 : f32 to vector<8x128xf32>
    %305 = arith.addf %303, %304 : vector<8x128xf32>
    %306 = vector.extract_strided_slice %295 {offsets = [0, 256], sizes = [8, 128], strides = [1, 1]} : vector<8x512xf32> to vector<8x128xf32>
    %307 = vector.extract_strided_slice %295 {offsets = [0, 384], sizes = [8, 128], strides = [1, 1]} : vector<8x512xf32> to vector<8x128xf32>
    %cst_109 = arith.constant 5.000000e-01 : f32
    %308 = vector.broadcast %cst_109 : f32 to vector<8x128xf32>
    %309 = arith.mulf %308, %307 : vector<8x128xf32>
    %cst_110 = arith.constant 5.000000e-01 : f32
    %310 = vector.broadcast %cst_110 : f32 to vector<8x128xf32>
    %311 = arith.addf %309, %310 : vector<8x128xf32>
    %312 = arith.mulf %305, %287 : vector<8x128xf32>
    %313 = arith.mulf %300, %306 : vector<8x128xf32>
    %314 = arith.addf %312, %313 : vector<8x128xf32>
    %315 = math.tanh %314 : vector<8x128xf32>
    %316 = arith.mulf %311, %315 : vector<8x128xf32>
    %c16_111 = arith.constant 16 : index
    %c0_112 = arith.constant 0 : index
    %317 = vector.load %arg13[%c16_111, %c0_112] : memref<64x128xf32, #tpu.memory_space<vmem>>, vector<8x128xf32>
    tpu.vector_store %arg13[%c16_111, %c0_112], %316 {strides = array<i32>} : memref<64x128xf32, #tpu.memory_space<vmem>>, vector<8x128xf32>,
    %318 = vector.extract_strided_slice %234 {offsets = [24, 0], sizes = [8, 512], strides = [1, 1]} : vector<64x512xf32> to vector<8x512xf32>
    %319 = arith.truncf %316 : vector<8x128xf32> to vector<8x128xbf16>
    %cst_113 = arith.constant dense<0.000000e+00> : vector<8x512xf32>
    %320 = tpu.matmul %319, %230, %cst_113 {dimension_numbers = #tpu.dot_dimension_numbers<[1], [0], [0], [1], [0, 0, 1, 1], [], []>} : vector<8x128xbf16>, vector<128x512xbf16>, vector<8x512xf32> -> vector<8x512xf32>
    %321 = arith.addf %318, %320 : vector<8x512xf32>
    %322 = math.tanh %321 : vector<8x512xf32>
    %323 = vector.extract_strided_slice %322 {offsets = [0, 0], sizes = [8, 128], strides = [1, 1]} : vector<8x512xf32> to vector<8x128xf32>
    %cst_114 = arith.constant 5.000000e-01 : f32
    %324 = vector.broadcast %cst_114 : f32 to vector<8x128xf32>
    %325 = arith.mulf %324, %323 : vector<8x128xf32>
    %cst_115 = arith.constant 5.000000e-01 : f32
    %326 = vector.broadcast %cst_115 : f32 to vector<8x128xf32>
    %327 = arith.addf %325, %326 : vector<8x128xf32>
    %328 = vector.extract_strided_slice %322 {offsets = [0, 128], sizes = [8, 128], strides = [1, 1]} : vector<8x512xf32> to vector<8x128xf32>
    %cst_116 = arith.constant 5.000000e-01 : f32
    %329 = vector.broadcast %cst_116 : f32 to vector<8x128xf32>
    %330 = arith.mulf %329, %328 : vector<8x128xf32>
    %cst_117 = arith.constant 5.000000e-01 : f32
    %331 = vector.broadcast %cst_117 : f32 to vector<8x128xf32>
    %332 = arith.addf %330, %331 : vector<8x128xf32>
    %333 = vector.extract_strided_slice %322 {offsets = [0, 256], sizes = [8, 128], strides = [1, 1]} : vector<8x512xf32> to vector<8x128xf32>
    %334 = vector.extract_strided_slice %322 {offsets = [0, 384], sizes = [8, 128], strides = [1, 1]} : vector<8x512xf32> to vector<8x128xf32>
    %cst_118 = arith.constant 5.000000e-01 : f32
    %335 = vector.broadcast %cst_118 : f32 to vector<8x128xf32>
    %336 = arith.mulf %335, %334 : vector<8x128xf32>
    %cst_119 = arith.constant 5.000000e-01 : f32
    %337 = vector.broadcast %cst_119 : f32 to vector<8x128xf32>
    %338 = arith.addf %336, %337 : vector<8x128xf32>
    %339 = arith.mulf %332, %314 : vector<8x128xf32>
    %340 = arith.mulf %327, %333 : vector<8x128xf32>
    %341 = arith.addf %339, %340 : vector<8x128xf32>
    %342 = math.tanh %341 : vector<8x128xf32>
    %343 = arith.mulf %338, %342 : vector<8x128xf32>
    %c24_120 = arith.constant 24 : index
    %c0_121 = arith.constant 0 : index
    %344 = vector.load %arg13[%c24_120, %c0_121] : memref<64x128xf32, #tpu.memory_space<vmem>>, vector<8x128xf32>
    tpu.vector_store %arg13[%c24_120, %c0_121], %343 {strides = array<i32>} : memref<64x128xf32, #tpu.memory_space<vmem>>, vector<8x128xf32>,
    %345 = vector.extract_strided_slice %234 {offsets = [32, 0], sizes = [8, 512], strides = [1, 1]} : vector<64x512xf32> to vector<8x512xf32>
    %346 = arith.truncf %343 : vector<8x128xf32> to vector<8x128xbf16>
    %cst_122 = arith.constant dense<0.000000e+00> : vector<8x512xf32>
    %347 = tpu.matmul %346, %230, %cst_122 {dimension_numbers = #tpu.dot_dimension_numbers<[1], [0], [0], [1], [0, 0, 1, 1], [], []>} : vector<8x128xbf16>, vector<128x512xbf16>, vector<8x512xf32> -> vector<8x512xf32>
    %348 = arith.addf %345, %347 : vector<8x512xf32>
    %349 = math.tanh %348 : vector<8x512xf32>
    %350 = vector.extract_strided_slice %349 {offsets = [0, 0], sizes = [8, 128], strides = [1, 1]} : vector<8x512xf32> to vector<8x128xf32>
    %cst_123 = arith.constant 5.000000e-01 : f32
    %351 = vector.broadcast %cst_123 : f32 to vector<8x128xf32>
    %352 = arith.mulf %351, %350 : vector<8x128xf32>
    %cst_124 = arith.constant 5.000000e-01 : f32
    %353 = vector.broadcast %cst_124 : f32 to vector<8x128xf32>
    %354 = arith.addf %352, %353 : vector<8x128xf32>
    %355 = vector.extract_strided_slice %349 {offsets = [0, 128], sizes = [8, 128], strides = [1, 1]} : vector<8x512xf32> to vector<8x128xf32>
    %cst_125 = arith.constant 5.000000e-01 : f32
    %356 = vector.broadcast %cst_125 : f32 to vector<8x128xf32>
    %357 = arith.mulf %356, %355 : vector<8x128xf32>
    %cst_126 = arith.constant 5.000000e-01 : f32
    %358 = vector.broadcast %cst_126 : f32 to vector<8x128xf32>
    %359 = arith.addf %357, %358 : vector<8x128xf32>
    %360 = vector.extract_strided_slice %349 {offsets = [0, 256], sizes = [8, 128], strides = [1, 1]} : vector<8x512xf32> to vector<8x128xf32>
    %361 = vector.extract_strided_slice %349 {offsets = [0, 384], sizes = [8, 128], strides = [1, 1]} : vector<8x512xf32> to vector<8x128xf32>
    %cst_127 = arith.constant 5.000000e-01 : f32
    %362 = vector.broadcast %cst_127 : f32 to vector<8x128xf32>
    %363 = arith.mulf %362, %361 : vector<8x128xf32>
    %cst_128 = arith.constant 5.000000e-01 : f32
    %364 = vector.broadcast %cst_128 : f32 to vector<8x128xf32>
    %365 = arith.addf %363, %364 : vector<8x128xf32>
    %366 = arith.mulf %359, %341 : vector<8x128xf32>
    %367 = arith.mulf %354, %360 : vector<8x128xf32>
    %368 = arith.addf %366, %367 : vector<8x128xf32>
    %369 = math.tanh %368 : vector<8x128xf32>
    %370 = arith.mulf %365, %369 : vector<8x128xf32>
    %c32_129 = arith.constant 32 : index
    %c0_130 = arith.constant 0 : index
    %371 = vector.load %arg13[%c32_129, %c0_130] : memref<64x128xf32, #tpu.memory_space<vmem>>, vector<8x128xf32>
    tpu.vector_store %arg13[%c32_129, %c0_130], %370 {strides = array<i32>} : memref<64x128xf32, #tpu.memory_space<vmem>>, vector<8x128xf32>,
    %372 = vector.extract_strided_slice %234 {offsets = [40, 0], sizes = [8, 512], strides = [1, 1]} : vector<64x512xf32> to vector<8x512xf32>
    %373 = arith.truncf %370 : vector<8x128xf32> to vector<8x128xbf16>
    %cst_131 = arith.constant dense<0.000000e+00> : vector<8x512xf32>
    %374 = tpu.matmul %373, %230, %cst_131 {dimension_numbers = #tpu.dot_dimension_numbers<[1], [0], [0], [1], [0, 0, 1, 1], [], []>} : vector<8x128xbf16>, vector<128x512xbf16>, vector<8x512xf32> -> vector<8x512xf32>
    %375 = arith.addf %372, %374 : vector<8x512xf32>
    %376 = math.tanh %375 : vector<8x512xf32>
    %377 = vector.extract_strided_slice %376 {offsets = [0, 0], sizes = [8, 128], strides = [1, 1]} : vector<8x512xf32> to vector<8x128xf32>
    %cst_132 = arith.constant 5.000000e-01 : f32
    %378 = vector.broadcast %cst_132 : f32 to vector<8x128xf32>
    %379 = arith.mulf %378, %377 : vector<8x128xf32>
    %cst_133 = arith.constant 5.000000e-01 : f32
    %380 = vector.broadcast %cst_133 : f32 to vector<8x128xf32>
    %381 = arith.addf %379, %380 : vector<8x128xf32>
    %382 = vector.extract_strided_slice %376 {offsets = [0, 128], sizes = [8, 128], strides = [1, 1]} : vector<8x512xf32> to vector<8x128xf32>
    %cst_134 = arith.constant 5.000000e-01 : f32
    %383 = vector.broadcast %cst_134 : f32 to vector<8x128xf32>
    %384 = arith.mulf %383, %382 : vector<8x128xf32>
    %cst_135 = arith.constant 5.000000e-01 : f32
    %385 = vector.broadcast %cst_135 : f32 to vector<8x128xf32>
    %386 = arith.addf %384, %385 : vector<8x128xf32>
    %387 = vector.extract_strided_slice %376 {offsets = [0, 256], sizes = [8, 128], strides = [1, 1]} : vector<8x512xf32> to vector<8x128xf32>
    %388 = vector.extract_strided_slice %376 {offsets = [0, 384], sizes = [8, 128], strides = [1, 1]} : vector<8x512xf32> to vector<8x128xf32>
    %cst_136 = arith.constant 5.000000e-01 : f32
    %389 = vector.broadcast %cst_136 : f32 to vector<8x128xf32>
    %390 = arith.mulf %389, %388 : vector<8x128xf32>
    %cst_137 = arith.constant 5.000000e-01 : f32
    %391 = vector.broadcast %cst_137 : f32 to vector<8x128xf32>
    %392 = arith.addf %390, %391 : vector<8x128xf32>
    %393 = arith.mulf %386, %368 : vector<8x128xf32>
    %394 = arith.mulf %381, %387 : vector<8x128xf32>
    %395 = arith.addf %393, %394 : vector<8x128xf32>
    %396 = math.tanh %395 : vector<8x128xf32>
    %397 = arith.mulf %392, %396 : vector<8x128xf32>
    %c40_138 = arith.constant 40 : index
    %c0_139 = arith.constant 0 : index
    %398 = vector.load %arg13[%c40_138, %c0_139] : memref<64x128xf32, #tpu.memory_space<vmem>>, vector<8x128xf32>
    tpu.vector_store %arg13[%c40_138, %c0_139], %397 {strides = array<i32>} : memref<64x128xf32, #tpu.memory_space<vmem>>, vector<8x128xf32>,
    %399 = vector.extract_strided_slice %234 {offsets = [48, 0], sizes = [8, 512], strides = [1, 1]} : vector<64x512xf32> to vector<8x512xf32>
    %400 = arith.truncf %397 : vector<8x128xf32> to vector<8x128xbf16>
    %cst_140 = arith.constant dense<0.000000e+00> : vector<8x512xf32>
    %401 = tpu.matmul %400, %230, %cst_140 {dimension_numbers = #tpu.dot_dimension_numbers<[1], [0], [0], [1], [0, 0, 1, 1], [], []>} : vector<8x128xbf16>, vector<128x512xbf16>, vector<8x512xf32> -> vector<8x512xf32>
    %402 = arith.addf %399, %401 : vector<8x512xf32>
    %403 = math.tanh %402 : vector<8x512xf32>
    %404 = vector.extract_strided_slice %403 {offsets = [0, 0], sizes = [8, 128], strides = [1, 1]} : vector<8x512xf32> to vector<8x128xf32>
    %cst_141 = arith.constant 5.000000e-01 : f32
    %405 = vector.broadcast %cst_141 : f32 to vector<8x128xf32>
    %406 = arith.mulf %405, %404 : vector<8x128xf32>
    %cst_142 = arith.constant 5.000000e-01 : f32
    %407 = vector.broadcast %cst_142 : f32 to vector<8x128xf32>
    %408 = arith.addf %406, %407 : vector<8x128xf32>
    %409 = vector.extract_strided_slice %403 {offsets = [0, 128], sizes = [8, 128], strides = [1, 1]} : vector<8x512xf32> to vector<8x128xf32>
    %cst_143 = arith.constant 5.000000e-01 : f32
    %410 = vector.broadcast %cst_143 : f32 to vector<8x128xf32>
    %411 = arith.mulf %410, %409 : vector<8x128xf32>
    %cst_144 = arith.constant 5.000000e-01 : f32
    %412 = vector.broadcast %cst_144 : f32 to vector<8x128xf32>
    %413 = arith.addf %411, %412 : vector<8x128xf32>
    %414 = vector.extract_strided_slice %403 {offsets = [0, 256], sizes = [8, 128], strides = [1, 1]} : vector<8x512xf32> to vector<8x128xf32>
    %415 = vector.extract_strided_slice %403 {offsets = [0, 384], sizes = [8, 128], strides = [1, 1]} : vector<8x512xf32> to vector<8x128xf32>
    %cst_145 = arith.constant 5.000000e-01 : f32
    %416 = vector.broadcast %cst_145 : f32 to vector<8x128xf32>
    %417 = arith.mulf %416, %415 : vector<8x128xf32>
    %cst_146 = arith.constant 5.000000e-01 : f32
    %418 = vector.broadcast %cst_146 : f32 to vector<8x128xf32>
    %419 = arith.addf %417, %418 : vector<8x128xf32>
    %420 = arith.mulf %413, %395 : vector<8x128xf32>
    %421 = arith.mulf %408, %414 : vector<8x128xf32>
    %422 = arith.addf %420, %421 : vector<8x128xf32>
    %423 = math.tanh %422 : vector<8x128xf32>
    %424 = arith.mulf %419, %423 : vector<8x128xf32>
    %c48_147 = arith.constant 48 : index
    %c0_148 = arith.constant 0 : index
    %425 = vector.load %arg13[%c48_147, %c0_148] : memref<64x128xf32, #tpu.memory_space<vmem>>, vector<8x128xf32>
    tpu.vector_store %arg13[%c48_147, %c0_148], %424 {strides = array<i32>} : memref<64x128xf32, #tpu.memory_space<vmem>>, vector<8x128xf32>,
    %426 = vector.extract_strided_slice %234 {offsets = [56, 0], sizes = [8, 512], strides = [1, 1]} : vector<64x512xf32> to vector<8x512xf32>
    %427 = arith.truncf %424 : vector<8x128xf32> to vector<8x128xbf16>
    %cst_149 = arith.constant dense<0.000000e+00> : vector<8x512xf32>
    %428 = tpu.matmul %427, %230, %cst_149 {dimension_numbers = #tpu.dot_dimension_numbers<[1], [0], [0], [1], [0, 0, 1, 1], [], []>} : vector<8x128xbf16>, vector<128x512xbf16>, vector<8x512xf32> -> vector<8x512xf32>
    %429 = arith.addf %426, %428 : vector<8x512xf32>
    %430 = math.tanh %429 : vector<8x512xf32>
    %431 = vector.extract_strided_slice %430 {offsets = [0, 0], sizes = [8, 128], strides = [1, 1]} : vector<8x512xf32> to vector<8x128xf32>
    %cst_150 = arith.constant 5.000000e-01 : f32
    %432 = vector.broadcast %cst_150 : f32 to vector<8x128xf32>
    %433 = arith.mulf %432, %431 : vector<8x128xf32>
    %cst_151 = arith.constant 5.000000e-01 : f32
    %434 = vector.broadcast %cst_151 : f32 to vector<8x128xf32>
    %435 = arith.addf %433, %434 : vector<8x128xf32>
    %436 = vector.extract_strided_slice %430 {offsets = [0, 128], sizes = [8, 128], strides = [1, 1]} : vector<8x512xf32> to vector<8x128xf32>
    %cst_152 = arith.constant 5.000000e-01 : f32
    %437 = vector.broadcast %cst_152 : f32 to vector<8x128xf32>
    %438 = arith.mulf %437, %436 : vector<8x128xf32>
    %cst_153 = arith.constant 5.000000e-01 : f32
    %439 = vector.broadcast %cst_153 : f32 to vector<8x128xf32>
    %440 = arith.addf %438, %439 : vector<8x128xf32>
    %441 = vector.extract_strided_slice %430 {offsets = [0, 256], sizes = [8, 128], strides = [1, 1]} : vector<8x512xf32> to vector<8x128xf32>
    %442 = vector.extract_strided_slice %430 {offsets = [0, 384], sizes = [8, 128], strides = [1, 1]} : vector<8x512xf32> to vector<8x128xf32>
    %cst_154 = arith.constant 5.000000e-01 : f32
    %443 = vector.broadcast %cst_154 : f32 to vector<8x128xf32>
    %444 = arith.mulf %443, %442 : vector<8x128xf32>
    %cst_155 = arith.constant 5.000000e-01 : f32
    %445 = vector.broadcast %cst_155 : f32 to vector<8x128xf32>
    %446 = arith.addf %444, %445 : vector<8x128xf32>
    %447 = arith.mulf %440, %422 : vector<8x128xf32>
    %448 = arith.mulf %435, %441 : vector<8x128xf32>
    %449 = arith.addf %447, %448 : vector<8x128xf32>
    %450 = math.tanh %449 : vector<8x128xf32>
    %451 = arith.mulf %446, %450 : vector<8x128xf32>
    %c56_156 = arith.constant 56 : index
    %c0_157 = arith.constant 0 : index
    %452 = vector.load %arg13[%c56_156, %c0_157] : memref<64x128xf32, #tpu.memory_space<vmem>>, vector<8x128xf32>
    tpu.vector_store %arg13[%c56_156, %c0_157], %451 {strides = array<i32>} : memref<64x128xf32, #tpu.memory_space<vmem>>, vector<8x128xf32>,
    %c0_158 = arith.constant 0 : index
    %c0_159 = arith.constant 0 : index
    %453 = vector.load %arg13[%c0_158, %c0_159] : memref<64x128xf32, #tpu.memory_space<vmem>>, vector<64x128xf32>
    %454 = arith.truncf %453 : vector<64x128xf32> to vector<64x128xbf16>
    %c0_160 = arith.constant 0 : index
    %c0_161 = arith.constant 0 : index
    %455 = vector.load %arg8[%c0_160, %c0_161] : memref<128x128xbf16, #tpu.memory_space<vmem>>, vector<128x128xbf16>
    %cst_162 = arith.constant dense<0.000000e+00> : vector<64x128xf32>
    %456 = tpu.matmul %454, %455, %cst_162 {dimension_numbers = #tpu.dot_dimension_numbers<[1], [0], [0], [1], [0, 0, 1, 1], [], []>} : vector<64x128xbf16>, vector<128x128xbf16>, vector<64x128xf32> -> vector<64x128xf32>
    %c0_163 = arith.constant 0 : index
    %c0_164 = arith.constant 0 : index
    %457 = vector.load %arg9[%c0_163, %c0_164] : memref<1x128xf32, #tpu.memory_space<vmem>>, vector<1x128xf32>
    %458 = vector.broadcast %457 : vector<1x128xf32> to vector<64x128xf32>
    %459 = arith.addf %456, %458 : vector<64x128xf32>
    %cst_165 = arith.constant 0.000000e+00 : f32
    %460 = vector.broadcast %cst_165 : f32 to vector<64x128xf32>
    %461 = arith.maximumf %459, %460 : vector<64x128xf32>
    %462 = arith.truncf %461 : vector<64x128xf32> to vector<64x128xbf16>
    %c0_166 = arith.constant 0 : index
    %c0_167 = arith.constant 0 : index
    %463 = vector.load %arg10[%c0_166, %c0_167] : memref<128x128xbf16, #tpu.memory_space<vmem>>, vector<128x128xbf16>
    %cst_168 = arith.constant dense<0.000000e+00> : vector<64x128xf32>
    %464 = tpu.matmul %462, %463, %cst_168 {dimension_numbers = #tpu.dot_dimension_numbers<[1], [0], [0], [1], [0, 0, 1, 1], [], []>} : vector<64x128xbf16>, vector<128x128xbf16>, vector<64x128xf32> -> vector<64x128xf32>
    %c0_169 = arith.constant 0 : index
    %c0_170 = arith.constant 0 : index
    %465 = vector.load %arg11[%c0_169, %c0_170] : memref<1x128xf32, #tpu.memory_space<vmem>>, vector<1x128xf32>
    %466 = vector.broadcast %465 : vector<1x128xf32> to vector<64x128xf32>
    %467 = arith.addf %464, %466 : vector<64x128xf32>
    %c0_171 = arith.constant 0 : index
    %c0_172 = arith.constant 0 : index
    %c0_173 = arith.constant 0 : index
    %468 = vector.load %arg12[%c0_171, %c0_172, %c0_173] : memref<1x64x128xf32, #tpu.memory_space<vmem>>, vector<1x64x128xf32>
    %469 = vector.shape_cast %468 : vector<1x64x128xf32> to vector<64x128xf32>
    %470 = vector.shape_cast %467 : vector<64x128xf32> to vector<1x64x128xf32>
    tpu.vector_store %arg12[%c0_171, %c0_172, %c0_173], %470 {strides = array<i32>} : memref<1x64x128xf32, #tpu.memory_space<vmem>>, vector<1x64x128xf32>,
    return
  }
  func.func @transform_0(%arg0: i32) -> (i32, i32, i32) {
    %c0_i32 = arith.constant 0 : i32
    %c0_i32_0 = arith.constant 0 : i32
    %c0_i32_1 = arith.constant 0 : i32
    return %arg0, %c0_i32, %c0_i32_0 : i32, i32, i32
  }
  func.func @transform_1(%arg0: i32) -> (i32, i32) {
    %c0_i32 = arith.constant 0 : i32
    %c0_i32_0 = arith.constant 0 : i32
    %c0_i32_1 = arith.constant 0 : i32
    return %c0_i32, %c0_i32_0 : i32, i32
  }
  func.func @transform_2(%arg0: i32) -> (i32, i32) {
    %c0_i32 = arith.constant 0 : i32
    %c0_i32_0 = arith.constant 0 : i32
    %c0_i32_1 = arith.constant 0 : i32
    return %c0_i32, %c0_i32_0 : i32, i32
  }
  func.func @transform_3(%arg0: i32) -> (i32, i32) {
    %c0_i32 = arith.constant 0 : i32
    %c0_i32_0 = arith.constant 0 : i32
    %c0_i32_1 = arith.constant 0 : i32
    return %c0_i32, %c0_i32_0 : i32, i32
  }
  func.func @transform_4(%arg0: i32) -> (i32, i32) {
    %c0_i32 = arith.constant 0 : i32
    %c0_i32_0 = arith.constant 0 : i32
    %c0_i32_1 = arith.constant 0 : i32
    return %c0_i32, %c0_i32_0 : i32, i32
  }
  func.func @transform_5(%arg0: i32) -> (i32, i32) {
    %c0_i32 = arith.constant 0 : i32
    %c0_i32_0 = arith.constant 0 : i32
    %c0_i32_1 = arith.constant 0 : i32
    return %c0_i32, %c0_i32_0 : i32, i32
  }
  func.func @transform_6(%arg0: i32) -> (i32, i32) {
    %c0_i32 = arith.constant 0 : i32
    %c0_i32_0 = arith.constant 0 : i32
    %c0_i32_1 = arith.constant 0 : i32
    return %c0_i32, %c0_i32_0 : i32, i32
  }
  func.func @transform_7(%arg0: i32) -> (i32, i32) {
    %c0_i32 = arith.constant 0 : i32
    %c0_i32_0 = arith.constant 0 : i32
    %c0_i32_1 = arith.constant 0 : i32
    return %c0_i32, %c0_i32_0 : i32, i32
  }
  func.func @transform_8(%arg0: i32) -> (i32, i32) {
    %c0_i32 = arith.constant 0 : i32
    %c0_i32_0 = arith.constant 0 : i32
    %c0_i32_1 = arith.constant 0 : i32
    return %c0_i32, %c0_i32_0 : i32, i32
  }
  func.func @transform_9(%arg0: i32) -> (i32, i32) {
    %c0_i32 = arith.constant 0 : i32
    %c0_i32_0 = arith.constant 0 : i32
    %c0_i32_1 = arith.constant 0 : i32
    return %c0_i32, %c0_i32_0 : i32, i32
  }
  func.func @transform_10(%arg0: i32) -> (i32, i32) {
    %c0_i32 = arith.constant 0 : i32
    %c0_i32_0 = arith.constant 0 : i32
    %c0_i32_1 = arith.constant 0 : i32
    return %c0_i32, %c0_i32_0 : i32, i32
  }
  func.func @transform_11(%arg0: i32) -> (i32, i32, i32) {
    %c0_i32 = arith.constant 0 : i32
    %c0_i32_0 = arith.constant 0 : i32
    %c0_i32_1 = arith.constant 0 : i32
    return %arg0, %c0_i32, %c0_i32_0 : i32, i32, i32
  }
}

</mosaic_0001>

<bundles_post_ra>
// kernel: rnn_net_forward.1
= control target key start
LH: loop header
LB: loop body
LE: loop exit
PB: predicated region body
PF: predicated region fallthrough
CT: control target
= control target key end

     0   :  { %16 = vsyncpa [#allocation4], 0  ;;  %s5114_s0 = inlined_call_operand.vmem [shape: f32[1,64,8], index: 0, kind: input, shape index: {}]   ;;  %s5115_s1 = inlined_call_operand.hbm [shape: bf16[8,512], index: 1, kind: input, shape index: {}]   ;;  %s5116_s2 = inlined_call_operand.hbm [shape: bf16[128,512], index: 2, kind: input, shape index: {}]   ;;  %s5117_s3 = inlined_call_operand.hbm [shape: f32[1,512], index: 3, kind: input, shape index: {}]   ;;  %s5118_s4 = inlined_call_operand.hbm [shape: bf16[128,512], index: 4, kind: input, shape index: {}]   ;;  %s5119_s5 = inlined_call_operand.hbm [shape: bf16[128,512], index: 5, kind: input, shape index: {}]   ;;  %s5120_s6 = inlined_call_operand.vmem [shape: f32[1,512], index: 6, kind: input, shape index: {}]   ;;  %s5121_s7 = inlined_call_operand.vmem [shape: bf16[128,128], index: 7, kind: input, shape index: {}]   ;;  %s5122_s8 = inlined_call_operand.vmem [shape: f32[1,128], index: 8, kind: input, shape index: {}]   ;;  %s5123_s9 = inlined_call_operand.vmem [shape: bf16[128,128], index: 9, kind: input, shape index: {}]   ;;  %s5124_s10 = inlined_call_operand.vmem [shape: f32[1,128], index: 10, kind: input, shape index: {}]   ;;  %s5125_s11 = inlined_call_operand.vmem [shape: f32[1,64,128], index: 11, kind: output, shape index: {}]  }
   0x1   :  { %17 = vsyncpa [#allocation6], 0 }
   0x2   :  { %18 = vsyncpa [#allocation9], 0  ;;  %s3746_s17 = smov [#allocation5]   ;;  %s3630_s21 = scalar_lea.hbm %s5116_s2, 4096 }
   0x3   :  { %s36_s18 = sshll.u32 %s3746_s17, 4  ;;  %p3631_p0 = scmp.ne.s32.totalorder %s5116_s2, %s3630_s21  ;;  %s37_s18 = int_to_ptr.vmem [resolvable:$true] %s36_s18 }
   0x4   :  { %p3634_p1 = scmp.lt.u32.totalorder %s3630_s21, %s5116_s2 }
   0x6   :  { %p3636_p2 = pnand %p3634_p1, %p3631_p0 }
   0x8   :  { %3639 = shalt.err (!%p3636_p2)
}
   0x9   :  { %s3640_s26 = scalar_lea.vmem %s37_s18, 4096  ;;  %p3645_p4 = scmp.lt.s32.totalorder %s37_s18, %s37_s18 }
   0xa   :  { %p3641_p3 = scmp.ne.s32.totalorder %s37_s18, %s3640_s26  ;;  %p3646_p5 = scmp.lt.s32.totalorder %s3640_s26, %s3640_s26 }
   0xc   :  { %p3647_p6 = por %p3646_p5, %p3645_p4 }
   0xe   :  { %p3648_p7 = pnand %p3647_p6, %p3641_p3 }
  0x10   :  { %3651 = shalt.err (!%p3648_p7)
}
  0x11   :  { %s3747_s27 = smov 256   ;;  %s3748_s28 = smov 16  }
  0x12   :  { %42 = dma.hbm_to_vmem [thread:$0]  %s5116_s2, 4096, %s37_s18, [#allocation6], %s3747_s27, %s3747_s27, %s3748_s28  }
  0x13   :  { %s3749_s12 = smov [#allocation8]   ;;  %s3750_s14 = smov [#allocation3]  }
  0x14   :  { %s58_s13 = sshll.u32 %s3749_s12, 4  ;;  %s27_s15 = sshll.u32 %s3750_s14, 4  ;;  %s59_s13 = int_to_ptr.vmem [resolvable:$true] %s58_s13  ;;  %s28_s15 = int_to_ptr.vmem [resolvable:$true] %s27_s15 }
  0x15   :  { %s3652_s19 = scalar_lea.hbm %s5118_s4, 4096 }
  0x16   :  { %p3653_p8 = scmp.ne.s32.totalorder %s5118_s4, %s3652_s19  ;;  %p3656_p9 = scmp.lt.u32.totalorder %s3652_s19, %s5118_s4 }
  0x18   :  { %p3658_p10 = pnand %p3656_p9, %p3653_p8 }
  0x1a   :  { %3661 = shalt.err (!%p3658_p10)
}
  0x1b   :  { %s3662_s2 = scalar_lea.vmem %s59_s13, 4096  ;;  %p3667_p12 = scmp.lt.s32.totalorder %s59_s13, %s59_s13 }
  0x1c   :  { %p3663_p11 = scmp.ne.s32.totalorder %s59_s13, %s3662_s2  ;;  %p3668_p13 = scmp.lt.s32.totalorder %s3662_s2, %s3662_s2 }
  0x1e   :  { %p3669_p0 = por %p3668_p13, %p3667_p12 }
  0x20   :  { %p3670_p1 = pnand %p3669_p0, %p3663_p11 }
  0x22   :  { %3673 = shalt.err (!%p3670_p1)
}
  0x23   :  { %64 = dma.hbm_to_vmem [thread:$0]  %s5118_s4, 4096, %s59_s13, [#allocation9], %s3747_s27, %s3747_s27, %s3748_s28  }
  0x24   :  { %s3674_s29 = scalar_lea.hbm %s5115_s1, 256 }
  0x25   :  { %p3675_p2 = scmp.ne.s32.totalorder %s5115_s1, %s3674_s29  ;;  %p3678_p3 = scmp.lt.u32.totalorder %s3674_s29, %s5115_s1 }
  0x27   :  { %p3680_p4 = pnand %p3678_p3, %p3675_p2 }
  0x29   :  { %3683 = shalt.err (!%p3680_p4)
}
  0x2a   :  { %s3684_s17 = scalar_lea.vmem %s28_s15, 256  ;;  %p3689_p6 = scmp.lt.s32.totalorder %s28_s15, %s28_s15 }
  0x2b   :  { %p3685_p5 = scmp.ne.s32.totalorder %s28_s15, %s3684_s17  ;;  %p3690_p7 = scmp.lt.s32.totalorder %s3684_s17, %s3684_s17 }
  0x2d   :  { %p3691_p8 = por %p3690_p7, %p3689_p6 }
  0x2f   :  { %p3692_p9 = pnand %p3691_p8, %p3685_p5 }
  0x31   :  { %3695 = shalt.err (!%p3692_p9)
}
  0x32   :  { %30 = dma.hbm_to_vmem [thread:$0]  %s5115_s1, 256, %s28_s15, [#allocation4]  }
  0x33   :  { %s3751_s19 = smov [#allocation7]   ;;  %s3752_s21 = smov [#allocation10]  }
  0x34   :  { %s49_s20 = sshll.u32 %s3751_s19, 4  ;;  %s70_s22 = sshll.u32 %s3752_s21, 4  ;;  %s50_s20 = int_to_ptr.vmem [resolvable:$true] %s49_s20  ;;  %s71_s22 = int_to_ptr.vmem [resolvable:$true] %s70_s22 }
  0x35   :  { %s3696_s18 = scalar_lea.hbm %s5117_s3, 64 }
  0x36   :  { %p3697_p10 = scmp.ne.s32.totalorder %s5117_s3, %s3696_s18  ;;  %p3700_p11 = scmp.lt.u32.totalorder %s3696_s18, %s5117_s3 }
  0x38   :  { %p3702_p12 = pnand %p3700_p11, %p3697_p10 }
  0x3a   :  { %3705 = shalt.err (!%p3702_p12)
}
  0x3b   :  { %s3706_s1 = scalar_lea.vmem %s50_s20, 64  ;;  %p3711_p0 = scmp.lt.s32.totalorder %s50_s20, %s50_s20 }
  0x3c   :  { %p3707_p13 = scmp.ne.s32.totalorder %s50_s20, %s3706_s1  ;;  %p3712_p1 = scmp.lt.s32.totalorder %s3706_s1, %s3706_s1 }
  0x3e   :  { %p3713_p2 = por %p3712_p1, %p3711_p0 }
  0x40   :  { %p3714_p3 = pnand %p3713_p2, %p3707_p13 }
  0x42   :  { %3717 = shalt.err (!%p3714_p3)
}
  0x43   :  { %52 = dma.hbm_to_vmem [thread:$0]  %s5117_s3, 64, %s50_s20, [#allocation6]  }
  0x44   :  { %s3718_s16 = scalar_lea.hbm %s5119_s5, 4096 }
  0x45   :  { %p3719_p4 = scmp.ne.s32.totalorder %s5119_s5, %s3718_s16  ;;  %p3722_p5 = scmp.lt.u32.totalorder %s3718_s16, %s5119_s5 }
  0x47   :  { %p3724_p6 = pnand %p3722_p5, %p3719_p4 }
  0x49   :  { %3727 = shalt.err (!%p3724_p6)
}
  0x4a   :  { %s3728_s21 = scalar_lea.vmem %s71_s22, 4096  ;;  %p3733_p8 = scmp.lt.s32.totalorder %s71_s22, %s71_s22 }
  0x4b   :  { %p3729_p7 = scmp.ne.s32.totalorder %s71_s22, %s3728_s21  ;;  %p3734_p9 = scmp.lt.s32.totalorder %s3728_s21, %s3728_s21 }
  0x4d   :  { %p3735_p10 = por %p3734_p9, %p3733_p8 }
  0x4f   :  { %p3736_p11 = pnand %p3735_p10, %p3729_p7 }
  0x51   :  { %3739 = shalt.err (!%p3736_p11)
}
  0x52   :  { %76 = dma.hbm_to_vmem [thread:$0]  %s5119_s5, 4096, %s71_s22, [#allocation9], %s3747_s27, %s3747_s27, %s3748_s28  }
  0x53   :  { %3740 = dma.done.wait [#allocation4], 256  }
  0x54   :  { %3741 = vsyncadd [#allocation4], 4294967040 }
  0x55   :  { %3742 = dma.done.wait [#allocation6], 4160  }
  0x56   :  { %3743 = vsyncadd [#allocation6], 4294963136 }
  0x57   :  { %3744 = dma.done.wait [#allocation9], 8192  }
  0x58   :  { %3745 = vsyncadd [#allocation9], 4294959104  ;;  %v5130_v0 = vmov 0   ;;  %v115_v1 = vld [vmem:[#allocation3] sm:$0xff]  ;;  %vm194_vm0 = vcmask 1043456   ;;  %v116_v2 = vld [vmem:[#allocation3 + $0x8] sm:$0xff]  ;;  %v151_v53 = vlaneseq }
  0x59   :  { %239 = vmatprep.mubr.bf16.mxu0 %v5130_v0  ;;  %312 = vmatprep.mubr.bf16.mxu1 %v5130_v0  ;;  %v103_v3 = vld [vmem:[%s5114_s0] sm:$0xff]  ;;  %v3035_v4 = vcombine.high %v115_v1, %v115_v1  ;;  %v3037_v5 = vcombine.high %v116_v2, %v116_v2  ;;  %v3034_v6 = vcombine.low %v115_v1, %v115_v1  ;;  %v104_v8 = vld [vmem:[%s5114_s0 + $0x8] sm:$0xff]  ;;  %vm181_vm1 = vcmask 64512   ;;  %v105_v20 = vld [vmem:[%s5114_s0 + $0x10] sm:$0xff] }
  0x5a   :  { %v3036_v7 = vcombine.low %v116_v2, %v116_v2  ;;  %v3891_v9 = vld [vmem:[#allocation5 + $0x4] ss:$16 sps:$4 sm:$0xff]   ;;  %v111_v12 = vpack.c.bf16 %v104_v8, %v103_v3  ;;  %v3893_v13 = vld [vmem:[#allocation5 + $0xc] ss:$16 sps:$4 sm:$0xff]   ;;  %v3895_v14 = vld [vmem:[#allocation5] ss:$16 sps:$4 sm:$0xff]  }
  0x5b   :  { %3038 = vmatprep.subr.msk.bf16.mxu0 %vm194_vm0, %v3035_v4  ;;  %3043 = vmatprep.subr.msk.bf16.mxu1 %vm194_vm0, %v3037_v5  ;;  %v196_v10 = vsel %vm194_vm0, %v3034_v6, 0  ;;  %v3897_v15 = vld [vmem:[#allocation5 + $0x8] ss:$16 sps:$4 sm:$0xff]   ;;  %v3901_v16 = vld [vmem:[#allocation5 + $0x24] ss:$16 sps:$4 sm:$0xff]   ;;  %v4059_v54 = vshrl.u32 %v151_v53, 7 }
  0x5c   :  { %v202_v11 = vsel %vm194_vm0, %v3036_v7, 0  ;;  %208 = vmatpush1.bf16.msra.mxu0 %v196_v10  ;;  %v3903_v17 = vld [vmem:[#allocation5 + $0x2c] ss:$16 sps:$4 sm:$0xff]   ;;  %v3905_v18 = vld [vmem:[#allocation5 + $0x20] ss:$16 sps:$4 sm:$0xff]  }
  0x5d   :  { %281 = vmatpush1.bf16.msra.mxu1 %v202_v11  ;;  %513 = vmatprep.subr.bf16.mxu0 %v3891_v9  ;;  %v3909_v19 = vld [vmem:[#allocation5 + $0x28] ss:$16 sps:$4 sm:$0xff]   ;;  %v3921_v22 = vld [vmem:[#allocation5 + $0x44] ss:$16 sps:$4 sm:$0xff]   ;;  %v3923_v23 = vld [vmem:[#allocation5 + $0x4c] ss:$16 sps:$4 sm:$0xff]  }
  0x5e   :  { %554 = vmatprep.subr.bf16.mxu1 %v3893_v13  ;;  %v106_v21 = vld [vmem:[%s5114_s0 + $0x18] sm:$0xff]  ;;  %v3929_v25 = vld [vmem:[#allocation5 + $0x40] ss:$16 sps:$4 sm:$0xff]   ;;  %v3935_v27 = vld [vmem:[#allocation5 + $0x64] ss:$16 sps:$4 sm:$0xff]   ;;  %5134 = vst [vmem:[#allocation14_spill] sm:$0xff] %v4059_v54 }
  0x5f   :  { %3039 = vmatmul.mubr.msk.bf16.vlgmr.msra.gmra.mrb[0].mxu0 %vm181_vm1, %v111_v12  ;;  %v112_v24 = vpack.c.bf16 %v106_v21, %v105_v20  ;;  %v3931_v26 = vld [vmem:[#allocation5 + $0x48] ss:$16 sps:$4 sm:$0xff]   ;;  %v3937_v28 = vld [vmem:[#allocation5 + $0x6c] ss:$16 sps:$4 sm:$0xff]   ;;  %v3939_v29 = vld [vmem:[#allocation5 + $0x60] ss:$16 sps:$4 sm:$0xff]  }
  0x60   :  { %3044 = vmatmul.mubr.msk.bf16.vlgmr.msra.gmra.mrb[0].mxu1 %vm181_vm1, %v111_v12  ;;  %514 = vmatpush1.bf16.msra.mxu0 %v3895_v14  ;;  %v3941_v30 = vld [vmem:[#allocation5 + $0x68] ss:$16 sps:$4 sm:$0xff]   ;;  %v107_v31 = vld [vmem:[%s5114_s0 + $0x20] sm:$0xff]  ;;  %v3957_v34 = vld [vmem:[#allocation5 + $0x8c] ss:$16 sps:$4 sm:$0xff]   ;;  %v5128_v55 = vsub.s32 2, %v4059_v54 }
  0x61   :  { %555 = vmatpush1.bf16.msra.mxu1 %v3897_v15  ;;  %515 = vmatprep.subr.bf16.mxu0 %v3901_v16  ;;  %v108_v32 = vld [vmem:[%s5114_s0 + $0x28] sm:$0xff]  ;;  %v3953_v33 = vld [vmem:[#allocation5 + $0x84] ss:$16 sps:$4 sm:$0xff]   ;;  %v3961_v36 = vld [vmem:[#allocation5 + $0x80] ss:$16 sps:$4 sm:$0xff]   ;;  %v5126_v56 = vsub.s32 3, %v4059_v54 }
  0x62   :  { %556 = vmatprep.subr.bf16.mxu1 %v3903_v17  ;;  %249 = vmatprep.mubr.bf16.mxu0 %v5130_v0  ;;  %v113_v35 = vpack.c.bf16 %v108_v32, %v107_v31  ;;  %v3965_v37 = vld [vmem:[#allocation5 + $0x88] ss:$16 sps:$4 sm:$0xff]   ;;  %v3969_v38 = vld [vmem:[#allocation5 + $0xa4] ss:$16 sps:$4 sm:$0xff]   ;;  %v3971_v39 = vld [vmem:[#allocation5 + $0xac] ss:$16 sps:$4 sm:$0xff]  }
  0x63   :  { %322 = vmatprep.mubr.bf16.mxu1 %v5130_v0  ;;  %v3973_v40 = vld [vmem:[#allocation5 + $0xa0] ss:$16 sps:$4 sm:$0xff]   ;;  %v3977_v41 = vld [vmem:[#allocation5 + $0xa8] ss:$16 sps:$4 sm:$0xff]   ;;  %v3987_v44 = vld [vmem:[#allocation5 + $0xc4] ss:$16 sps:$4 sm:$0xff]  }
  0x64   :  { %516 = vmatpush1.bf16.msra.mxu0 %v3905_v18  ;;  %v109_v42 = vld [vmem:[%s5114_s0 + $0x30] sm:$0xff]  ;;  %v110_v43 = vld [vmem:[%s5114_s0 + $0x38] sm:$0xff]  ;;  %v5129_v57 = vsub.s32 0, %v4059_v54  ;;  %v5127_v59 = vsub.s32 1, %v4059_v54 }
  0x65   :  { %557 = vmatpush1.bf16.msra.mxu1 %v3909_v19  ;;  %517 = vmatprep.subr.bf16.mxu0 %v3921_v22  ;;  %v3991_v45 = vld [vmem:[#allocation5 + $0xcc] ss:$16 sps:$4 sm:$0xff]   ;;  %v3995_v46 = vld [vmem:[#allocation5 + $0xc0] ss:$16 sps:$4 sm:$0xff]   ;;  %v3997_v47 = vld [vmem:[#allocation5 + $0xc8] ss:$16 sps:$4 sm:$0xff]   ;;  %v114_v48 = vpack.c.bf16 %v110_v43, %v109_v42 }
  0x66   :  { %558 = vmatprep.subr.bf16.mxu1 %v3923_v23  ;;  %v3999_v49 = vld [vmem:[#allocation5 + $0xe4] ss:$16 sps:$4 sm:$0xff]   ;;  %v4001_v50 = vld [vmem:[#allocation5 + $0xec] ss:$16 sps:$4 sm:$0xff]   ;;  %v4007_v51 = vld [vmem:[#allocation5 + $0xe0] ss:$16 sps:$4 sm:$0xff]  }
  0x67   :  { %3040 = vmatmul.mubr.msk.bf16.gmra.mrb[4].mxu0 %vm181_vm1, %v112_v24  ;;  %v4009_v52 = vld [vmem:[#allocation5 + $0xe8] ss:$16 sps:$4 sm:$0xff]   ;;  %v149_v58 = vld [vmem:[#allocation7] sm:$0xf] }
  0x68   :  { %3045 = vmatmul.mubr.msk.bf16.gmra.mrb[4].mxu1 %vm181_vm1, %v112_v24  ;;  %518 = vmatpush1.bf16.msra.mxu0 %v3929_v25  ;;  %v4067_v60 = vrot.slane %v149_v58, %v5128_v55  ;;  %v4075_v63 = vrot.slane %v149_v58, %v5126_v56  ;;  %v154_v1 = vrot.slane %v149_v58, %v5129_v57 }
  0x69   :  { %559 = vmatpush1.bf16.msra.mxu1 %v3931_v26  ;;  %519 = vmatprep.subr.bf16.mxu0 %v3935_v27  ;;  %v158_v4 = vrot.slane %v149_v58, %v5127_v59 }
  0x6a   :  { %560 = vmatprep.subr.bf16.mxu1 %v3937_v28  ;;  %259 = vmatprep.mubr.bf16.mxu0 %v5130_v0 }
  0x6b   :  { %332 = vmatprep.mubr.bf16.mxu1 %v5130_v0 }
  0x6c   :  { %520 = vmatpush1.bf16.msra.mxu0 %v3939_v29 }
  0x6d   :  { %561 = vmatpush1.bf16.msra.mxu1 %v3941_v30  ;;  %521 = vmatprep.subr.bf16.mxu0 %v3953_v33 }
  0x6e   :  { %562 = vmatprep.subr.bf16.mxu1 %v3957_v34 }
  0x6f   :  { %3041 = vmatmul.mubr.msk.bf16.gmra.mrb[8].mxu0 %vm181_vm1, %v113_v35 }
  0x70   :  { %3046 = vmatmul.mubr.msk.bf16.gmra.mrb[8].mxu1 %vm181_vm1, %v113_v35  ;;  %522 = vmatpush1.bf16.msra.mxu0 %v3961_v36 }
  0x71   :  { %563 = vmatpush1.bf16.msra.mxu1 %v3965_v37  ;;  %523 = vmatprep.subr.bf16.mxu0 %v3969_v38 }
  0x72   :  { %564 = vmatprep.subr.bf16.mxu1 %v3971_v39  ;;  %269 = vmatprep.mubr.bf16.mxu0 %v5130_v0 }
  0x73   :  { %342 = vmatprep.mubr.bf16.mxu1 %v5130_v0 }
  0x74   :  { %524 = vmatpush1.bf16.msra.mxu0 %v3973_v40 }
  0x75   :  { %565 = vmatpush1.bf16.msra.mxu1 %v3977_v41  ;;  %525 = vmatprep.subr.bf16.mxu0 %v3987_v44 }
  0x76   :  { %566 = vmatprep.subr.bf16.mxu1 %v3991_v45 }
  0x77   :  { %3042 = vmatmul.mubr.msk.bf16.gmra.mrb[12].mxu0 %vm181_vm1, %v114_v48 }
  0x78   :  { %3047 = vmatmul.mubr.msk.bf16.gmra.mrb[12].mxu1 %vm181_vm1, %v114_v48  ;;  %526 = vmatpush1.bf16.msra.mxu0 %v3995_v46 }
  0x79   :  { %567 = vmatpush1.bf16.msra.mxu1 %v3997_v47  ;;  %527 = vmatprep.subr.bf16.mxu0 %v3999_v49 }
  0x7a   :  { %568 = vmatprep.subr.bf16.mxu1 %v4001_v50  ;;  %545 = vmatprep.mubr.bf16.mxu0 %v5130_v0 }
  0x7b   :  { %586 = vmatprep.mubr.bf16.mxu1 %v5130_v0 }
  0x7c   :  { %528 = vmatpush1.bf16.msra.mxu0 %v4007_v51 }
  0x7d   :  { %569 = vmatpush1.bf16.msra.mxu1 %v4009_v52  ;;  %616 = vmatprep.subr.bf16.mxu0 %v3891_v9 }
  0x7e   :  { %657 = vmatprep.subr.bf16.mxu1 %v3893_v13 }
  0x7f   :  { %546 = vmatmul.mubr.bf16.vlgmr.msra.gmra.mrb[16].mxu0 %v5130_v0 }
  0x80   :  { %587 = vmatmul.mubr.bf16.vlgmr.msra.gmra.mrb[16].mxu1 %v5130_v0  ;;  %617 = vmatpush1.bf16.msra.mxu0 %v3895_v14 }
  0x81   :  { %658 = vmatpush1.bf16.msra.mxu1 %v3897_v15  ;;  %618 = vmatprep.subr.bf16.mxu0 %v3901_v16 }
  0x82   :  { %659 = vmatprep.subr.bf16.mxu1 %v3903_v17  ;;  %648 = vmatprep.mubr.bf16.mxu0 %v5130_v0 }
  0x83   :  { %689 = vmatprep.mubr.bf16.mxu1 %v5130_v0 }
  0x84   :  { %619 = vmatpush1.bf16.msra.mxu0 %v3905_v18 }
  0x85   :  { %660 = vmatpush1.bf16.msra.mxu1 %v3909_v19  ;;  %620 = vmatprep.subr.bf16.mxu0 %v3921_v22 }
  0x86   :  { %661 = vmatprep.subr.bf16.mxu1 %v3923_v23 }
  0x88   :  { %621 = vmatpush1.bf16.msra.mxu0 %v3929_v25 }
  0x89   :  { %662 = vmatpush1.bf16.msra.mxu1 %v3931_v26  ;;  %622 = vmatprep.subr.bf16.mxu0 %v3935_v27 }
  0x8a   :  { %663 = vmatprep.subr.bf16.mxu1 %v3937_v28 }
  0x8c   :  { %623 = vmatpush1.bf16.msra.mxu0 %v3939_v29 }
  0x8d   :  { %664 = vmatpush1.bf16.msra.mxu1 %v3941_v30  ;;  %624 = vmatprep.subr.bf16.mxu0 %v3953_v33 }
  0x8e   :  { %665 = vmatprep.subr.bf16.mxu1 %v3957_v34 }
  0x90   :  { %625 = vmatpush1.bf16.msra.mxu0 %v3961_v36 }
  0x91   :  { %666 = vmatpush1.bf16.msra.mxu1 %v3965_v37  ;;  %626 = vmatprep.subr.bf16.mxu0 %v3969_v38 }
  0x92   :  { %667 = vmatprep.subr.bf16.mxu1 %v3971_v39 }
  0x94   :  { %627 = vmatpush1.bf16.msra.mxu0 %v3973_v40 }
  0x95   :  { %668 = vmatpush1.bf16.msra.mxu1 %v3977_v41  ;;  %628 = vmatprep.subr.bf16.mxu0 %v3987_v44 }
  0x96   :  { %669 = vmatprep.subr.bf16.mxu1 %v3991_v45 }
  0x98   :  { %629 = vmatpush1.bf16.msra.mxu0 %v3995_v46 }
  0x99   :  { %670 = vmatpush1.bf16.msra.mxu1 %v3997_v47  ;;  %630 = vmatprep.subr.bf16.mxu0 %v3999_v49 }
  0x9a   :  { %671 = vmatprep.subr.bf16.mxu1 %v4001_v50 }
  0x9c   :  { %631 = vmatpush1.bf16.msra.mxu0 %v4007_v51 }
  0x9d   :  { %672 = vmatpush1.bf16.msra.mxu1 %v4009_v52  ;;  %719 = vmatprep.subr.bf16.mxu0 %v3891_v9 }
  0x9e   :  { %760 = vmatprep.subr.bf16.mxu1 %v3893_v13 }
 0x132   :  { %v4069_v61 = vpop.f32.mrb[0].mxu0 }
 0x133   :  { %v4071_v62 = vpop.f32.mrb[0].mxu1  ;;  %v243_v2 = vpop.f32.mrb[1].mxu0 }
 0x134   :  { %v316_v3 = vpop.f32.mrb[1].mxu1  ;;  %v245_v5 = vpop.f32.mrb[2].mxu0 }
 0x135   :  { %v318_v6 = vpop.f32.mrb[2].mxu1  ;;  %v4081_v7 = vadd.f32 %v245_v5, %v154_v1  ;;  %v247_v8 = vpop.f32.mrb[3].mxu0 }
 0x136   :  { %v4084_v10 = vadd.f32 %v318_v6, %v4067_v60  ;;  %v320_v11 = vpop.f32.mrb[3].mxu1  ;;  %v4086_v12 = vadd.f32 %v247_v8, %v158_v4 }
 0x137   :  { %v4089_v20 = vadd.f32 %v320_v11, %v4075_v63 }
 0x13a   :  { %v251_v21 = vpop.f32.mrb[4].mxu0 }
 0x13b   :  { %v324_v24 = vpop.f32.mrb[4].mxu1  ;;  %v4091_v31 = vadd.f32 %v251_v21, %v154_v1  ;;  %v253_v32 = vpop.f32.mrb[5].mxu0 }
 0x13c   :  { %v4094_v35 = vadd.f32 %v324_v24, %v4067_v60  ;;  %v326_v42 = vpop.f32.mrb[5].mxu1  ;;  %v4096_v43 = vadd.f32 %v253_v32, %v158_v4  ;;  %v255_v48 = vpop.f32.mrb[6].mxu0 }
 0x13d   :  { %v4099_v53 = vadd.f32 %v326_v42, %v4075_v63  ;;  %v328_v58 = vpop.f32.mrb[6].mxu1  ;;  %v4101_v5 = vadd.f32 %v255_v48, %v154_v1  ;;  %v257_v6 = vpop.f32.mrb[7].mxu0 }
 0x13e   :  { %v4104_v8 = vadd.f32 %v328_v58, %v4067_v60  ;;  %v330_v11 = vpop.f32.mrb[7].mxu1  ;;  %v4106_v21 = vadd.f32 %v257_v6, %v158_v4 }
 0x13f   :  { %5135 = vst [vmem:[#allocation15_spill] sm:$0xff] %v4101_v5  ;;  %v4109_v24 = vadd.f32 %v330_v11, %v4075_v63 }
 0x140   :  { %5136 = vst [vmem:[#allocation16_spill] sm:$0xff] %v4104_v8  ;;  %5137 = vst [vmem:[#allocation17_spill] sm:$0xff] %v4106_v21 }
 0x141   :  { %5138 = vst [vmem:[#allocation18_spill] sm:$0xff] %v4109_v24 }
 0x142   :  { %v261_v56 = vpop.f32.mrb[8].mxu0 }
 0x143   :  { %v334_v32 = vpop.f32.mrb[8].mxu1  ;;  %v4111_v59 = vadd.f32 %v261_v56, %v154_v1  ;;  %v263_v55 = vpop.f32.mrb[9].mxu0 }
 0x144   :  { %v4114_v42 = vadd.f32 %v334_v32, %v4067_v60  ;;  %v336_v48 = vpop.f32.mrb[9].mxu1  ;;  %v4116_v57 = vadd.f32 %v263_v55, %v158_v4  ;;  %v265_v0 = vpop.f32.mrb[10].mxu0 }
 0x145   :  { %5139 = vst [vmem:[#allocation19_spill] sm:$0xff] %v4111_v59  ;;  %v4119_v58 = vadd.f32 %v336_v48, %v4075_v63  ;;  %v338_v6 = vpop.f32.mrb[10].mxu1  ;;  %v4121_v54 = vadd.f32 %v265_v0, %v154_v1  ;;  %v267_v11 = vpop.f32.mrb[11].mxu0 }
 0x146   :  { %5140 = vst [vmem:[#allocation20_spill] sm:$0xff] %v4114_v42  ;;  %5141 = vst [vmem:[#allocation21_spill] sm:$0xff] %v4116_v57  ;;  %v4124_v24 = vadd.f32 %v338_v6, %v4067_v60  ;;  %v340_v56 = vpop.f32.mrb[11].mxu1  ;;  %v4126_v59 = vadd.f32 %v267_v11, %v158_v4 }
 0x147   :  { %5142 = vst [vmem:[#allocation22_spill] sm:$0xff] %v4119_v58  ;;  %5143 = vst [vmem:[#allocation23_spill] sm:$0xff] %v4121_v54  ;;  %v4129_v32 = vadd.f32 %v340_v56, %v4075_v63 }
 0x148   :  { %5144 = vst [vmem:[#allocation24_spill] sm:$0xff] %v4124_v24  ;;  %5145 = vst [vmem:[#allocation25_spill] sm:$0xff] %v4126_v59 }
 0x149   :  { %5146 = vst [vmem:[#allocation26_spill] sm:$0xff] %v4129_v32 }
 0x14a   :  { %v271_v42 = vpop.f32.mrb[12].mxu0 }
 0x14b   :  { %v344_v55 = vpop.f32.mrb[12].mxu1  ;;  %v4131_v57 = vadd.f32 %v271_v42, %v154_v1  ;;  %v273_v21 = vpop.f32.mrb[13].mxu0 }
 0x14c   :  { %v4134_v48 = vadd.f32 %v344_v55, %v4067_v60  ;;  %v346_v0 = vpop.f32.mrb[13].mxu1  ;;  %v4136_v54 = vadd.f32 %v273_v21, %v158_v4  ;;  %v275_v58 = vpop.f32.mrb[14].mxu0  ;;  %v242_v21 = vadd.f32 %v4069_v61, %v154_v1 }
 0x14d   :  { %5147 = vst [vmem:[#allocation27_spill] sm:$0xff] %v4131_v57  ;;  %v4139_v6 = vadd.f32 %v346_v0, %v4075_v63  ;;  %v348_v11 = vpop.f32.mrb[14].mxu1  ;;  %v4141_v59 = vadd.f32 %v275_v58, %v154_v1  ;;  %v277_v56 = vpop.f32.mrb[15].mxu0  ;;  %v244_v0 = vadd.f32 %v243_v2, %v158_v4 }
 0x14e   :  { %5148 = vst [vmem:[#allocation28_spill] sm:$0xff] %v4134_v48  ;;  %5149 = vst [vmem:[#allocation29_spill] sm:$0xff] %v4136_v54  ;;  %v4144_v32 = vadd.f32 %v348_v11, %v4067_v60  ;;  %v350_v42 = vpop.f32.mrb[15].mxu1  ;;  %v4146_v57 = vadd.f32 %v277_v56, %v158_v4  ;;  %v315_v54 = vadd.f32 %v4071_v62, %v4067_v60 }
 0x14f   :  { %5150 = vst [vmem:[#allocation30_spill] sm:$0xff] %v4139_v6  ;;  %5151 = vst [vmem:[#allocation31_spill] sm:$0xff] %v4141_v59  ;;  %v4149_v55 = vadd.f32 %v350_v42, %v4075_v63  ;;  %v317_v6 = vadd.f32 %v316_v3, %v4075_v63 }
 0x150   :  { %5152 = vst [vmem:[#allocation32_spill] sm:$0xff] %v4144_v32  ;;  %5153 = vst [vmem:[#allocation33_spill] sm:$0xff] %v4146_v57 }
 0x151   :  { %5154 = vst [vmem:[#allocation34_spill] sm:$0xff] %v4149_v55 }
 0x152   :  { %v547_v58 = vpop.f32.mrb[16].mxu0 }
 0x153   :  { %v588_v59 = vpop.f32.mrb[16].mxu1  ;;  %v595_v48 = vadd.f32 %v547_v58, %v242_v21  ;;  %v549_v11 = vpop.f32.mrb[17].mxu0 }
 0x154   :  { %v597_v24 = vadd.f32 %v588_v59, %v315_v54  ;;  %v590_v32 = vpop.f32.mrb[17].mxu1  ;;  %v596_v8 = vadd.f32 %v549_v11, %v244_v0  ;;  %v551_v57 = vpop.f32.mrb[18].mxu0 }
 0x155   :  { %v598_v56 = vadd.f32 %v590_v32, %v317_v6  ;;  %v592_v5 = vpop.f32.mrb[18].mxu1  ;;  %3406 = vtanh.f32 %v595_v48  ;;  %v552_v42 = vpop.f32.mrb[19].mxu0  ;;  %v5155_v6 = vmov 0  }
 0x156   :  { %v593_v55 = vpop.f32.mrb[19].mxu1  ;;  %3408 = vtanh.f32 %v596_v8 }
 0x157   :  { %3410 = vtanh.f32 %v597_v24 }
 0x158   :  { %3412 = vtanh.f32 %v598_v56 }
 0x15f   :  { %v3407_v61 = vpop.eup %3406 }
 0x160   :  { %v603_v60 = vmul.f32 0.5, %v3407_v61  ;;  %v3409_v62 = vpop.eup %3408 }
 0x161   :  { %v605_v63 = vmul.f32 0.5, %v3409_v62  ;;  %v3411_v2 = vpop.eup %3410 }
 0x162   :  { %v604_v1 = vadd.f32 0.5, %v603_v60  ;;  %v3413_v57 = vpop.eup %3412 }
 0x163   :  { %v606_v3 = vadd.f32 0.5, %v605_v63  ;;  %v607_v5 = vmul.f32 0.5, %v3413_v57 }
 0x164   :  { %v610_v54 = vmul.f32 %v3411_v2, %v604_v1 }
 0x165   :  { %v609_v59 = vmul.f32 0.0, %v606_v3  ;;  %v608_v32 = vadd.f32 0.5, %v607_v5 }
 0x167   :  { %v4155_v4 = vadd.f32 %v610_v54, %v609_v59 }
 0x169   :  { %3414 = vtanh.f32 %v4155_v4 }
 0x173   :  { %v3415_v48 = vpop.eup %3414 }
 0x174   :  { %v4158_v8 = vmul.f32 %v3415_v48, %v608_v32 }
 0x176   :  { %v615_v24 = vpack.c.bf16 %v4158_v8, %v4158_v8 }
 0x178   :  { %649 = vmatmul.mubr.bf16.vlgmr.msra.gmra.mrb[20].mxu0 %v615_v24  ;;  %690 = vmatmul.mubr.bf16.vlgmr.msra.gmra.mrb[20].mxu1 %v615_v24 }
 0x179   :  { %720 = vmatpush1.bf16.msra.mxu0 %v3895_v14  ;;  %761 = vmatpush1.bf16.msra.mxu1 %v3897_v15 }
 0x17a   :  { %721 = vmatprep.subr.bf16.mxu0 %v3901_v16  ;;  %762 = vmatprep.subr.bf16.mxu1 %v3903_v17 }
 0x17b   :  { %751 = vmatprep.mubr.bf16.mxu0 %v5155_v6  ;;  %792 = vmatprep.mubr.bf16.mxu1 %v5155_v6 }
 0x17d   :  { %722 = vmatpush1.bf16.msra.mxu0 %v3905_v18  ;;  %763 = vmatpush1.bf16.msra.mxu1 %v3909_v19 }
 0x17e   :  { %723 = vmatprep.subr.bf16.mxu0 %v3921_v22  ;;  %764 = vmatprep.subr.bf16.mxu1 %v3923_v23 }
 0x181   :  { %724 = vmatpush1.bf16.msra.mxu0 %v3929_v25  ;;  %765 = vmatpush1.bf16.msra.mxu1 %v3931_v26 }
 0x182   :  { %725 = vmatprep.subr.bf16.mxu0 %v3935_v27  ;;  %766 = vmatprep.subr.bf16.mxu1 %v3937_v28 }
 0x185   :  { %726 = vmatpush1.bf16.msra.mxu0 %v3939_v29  ;;  %767 = vmatpush1.bf16.msra.mxu1 %v3941_v30 }
 0x186   :  { %727 = vmatprep.subr.bf16.mxu0 %v3953_v33  ;;  %768 = vmatprep.subr.bf16.mxu1 %v3957_v34 }
 0x189   :  { %728 = vmatpush1.bf16.msra.mxu0 %v3961_v36  ;;  %769 = vmatpush1.bf16.msra.mxu1 %v3965_v37 }
 0x18a   :  { %729 = vmatprep.subr.bf16.mxu0 %v3969_v38  ;;  %770 = vmatprep.subr.bf16.mxu1 %v3971_v39 }
 0x18d   :  { %730 = vmatpush1.bf16.msra.mxu0 %v3973_v40  ;;  %771 = vmatpush1.bf16.msra.mxu1 %v3977_v41 }
 0x18e   :  { %731 = vmatprep.subr.bf16.mxu0 %v3987_v44  ;;  %772 = vmatprep.subr.bf16.mxu1 %v3991_v45 }
 0x191   :  { %732 = vmatpush1.bf16.msra.mxu0 %v3995_v46  ;;  %773 = vmatpush1.bf16.msra.mxu1 %v3997_v47 }
 0x192   :  { %733 = vmatprep.subr.bf16.mxu0 %v3999_v49  ;;  %774 = vmatprep.subr.bf16.mxu1 %v4001_v50 }
 0x195   :  { %734 = vmatpush1.bf16.msra.mxu0 %v4007_v51  ;;  %775 = vmatpush1.bf16.msra.mxu1 %v4009_v52 }
 0x196   :  { %822 = vmatprep.subr.bf16.mxu0 %v3891_v9  ;;  %863 = vmatprep.subr.bf16.mxu1 %v3893_v13 }
 0x24b   :  { %v650_v55 = vpop.f32.mrb[20].mxu0  ;;  %v691_v21 = vpop.f32.mrb[20].mxu1 }
 0x24c   :  { %v698_v0 = vadd.f32 %v650_v55, %v4081_v7  ;;  %v700_v58 = vadd.f32 %v691_v21, %v4084_v10  ;;  %v652_v11 = vpop.f32.mrb[21].mxu0  ;;  %v693_v56 = vpop.f32.mrb[21].mxu1 }
 0x24d   :  { %v699_v42 = vadd.f32 %v652_v11, %v4086_v12  ;;  %v701_v61 = vadd.f32 %v693_v56, %v4089_v20  ;;  %v654_v60 = vpop.f32.mrb[22].mxu0  ;;  %v695_v62 = vpop.f32.mrb[22].mxu1 }
 0x24e   :  { %3416 = vtanh.f32 %v698_v0  ;;  %v655_v1 = vpop.f32.mrb[23].mxu0  ;;  %v696_v63 = vpop.f32.mrb[23].mxu1 }
 0x24f   :  { %3418 = vtanh.f32 %v699_v42 }
 0x250   :  { %3420 = vtanh.f32 %v700_v58 }
 0x251   :  { %3422 = vtanh.f32 %v701_v61 }
 0x258   :  { %v3417_v2 = vpop.eup %3416 }
 0x259   :  { %v706_v3 = vmul.f32 0.5, %v3417_v2  ;;  %v3419_v54 = vpop.eup %3418 }
 0x25a   :  { %v708_v7 = vmul.f32 0.5, %v3419_v54  ;;  %v3421_v10 = vpop.eup %3420 }
 0x25b   :  { %v707_v59 = vadd.f32 0.5, %v706_v3  ;;  %v3423_v20 = vpop.eup %3422 }
 0x25c   :  { %v709_v57 = vadd.f32 0.5, %v708_v7  ;;  %v710_v48 = vmul.f32 0.5, %v3423_v20 }
 0x25d   :  { %v713_v5 = vmul.f32 %v3421_v10, %v707_v59 }
 0x25e   :  { %v712_v12 = vmul.f32 %v709_v57, %v4155_v4  ;;  %v711_v24 = vadd.f32 0.5, %v710_v48 }
 0x260   :  { %v4201_v32 = vadd.f32 %v713_v5, %v712_v12 }
 0x262   :  { %3424 = vtanh.f32 %v4201_v32 }
 0x26c   :  { %v3425_v55 = vpop.eup %3424 }
 0x26d   :  { %v4204_v21 = vmul.f32 %v3425_v55, %v711_v24 }
 0x26f   :  { %v718_v0 = vpack.c.bf16 %v4204_v21, %v4204_v21 }
 0x271   :  { %752 = vmatmul.mubr.bf16.vlgmr.msra.gmra.mrb[24].mxu0 %v718_v0  ;;  %793 = vmatmul.mubr.bf16.vlgmr.msra.gmra.mrb[24].mxu1 %v718_v0 }
 0x272   :  { %823 = vmatpush1.bf16.msra.mxu0 %v3895_v14  ;;  %864 = vmatpush1.bf16.msra.mxu1 %v3897_v15 }
 0x273   :  { %824 = vmatprep.subr.bf16.mxu0 %v3901_v16  ;;  %865 = vmatprep.subr.bf16.mxu1 %v3903_v17 }
 0x274   :  { %854 = vmatprep.mubr.bf16.mxu0 %v5155_v6  ;;  %895 = vmatprep.mubr.bf16.mxu1 %v5155_v6 }
 0x276   :  { %825 = vmatpush1.bf16.msra.mxu0 %v3905_v18  ;;  %866 = vmatpush1.bf16.msra.mxu1 %v3909_v19 }
 0x277   :  { %826 = vmatprep.subr.bf16.mxu0 %v3921_v22  ;;  %867 = vmatprep.subr.bf16.mxu1 %v3923_v23 }
 0x27a   :  { %827 = vmatpush1.bf16.msra.mxu0 %v3929_v25  ;;  %868 = vmatpush1.bf16.msra.mxu1 %v3931_v26 }
 0x27b   :  { %828 = vmatprep.subr.bf16.mxu0 %v3935_v27  ;;  %869 = vmatprep.subr.bf16.mxu1 %v3937_v28 }
 0x27e   :  { %829 = vmatpush1.bf16.msra.mxu0 %v3939_v29  ;;  %870 = vmatpush1.bf16.msra.mxu1 %v3941_v30 }
 0x27f   :  { %830 = vmatprep.subr.bf16.mxu0 %v3953_v33  ;;  %871 = vmatprep.subr.bf16.mxu1 %v3957_v34 }
 0x282   :  { %831 = vmatpush1.bf16.msra.mxu0 %v3961_v36  ;;  %872 = vmatpush1.bf16.msra.mxu1 %v3965_v37 }
 0x283   :  { %832 = vmatprep.subr.bf16.mxu0 %v3969_v38  ;;  %873 = vmatprep.subr.bf16.mxu1 %v3971_v39 }
 0x286   :  { %833 = vmatpush1.bf16.msra.mxu0 %v3973_v40  ;;  %874 = vmatpush1.bf16.msra.mxu1 %v3977_v41 }
 0x287   :  { %834 = vmatprep.subr.bf16.mxu0 %v3987_v44  ;;  %875 = vmatprep.subr.bf16.mxu1 %v3991_v45 }
 0x28a   :  { %835 = vmatpush1.bf16.msra.mxu0 %v3995_v46  ;;  %876 = vmatpush1.bf16.msra.mxu1 %v3997_v47 }
 0x28b   :  { %836 = vmatprep.subr.bf16.mxu0 %v3999_v49  ;;  %877 = vmatprep.subr.bf16.mxu1 %v4001_v50 }
 0x28e   :  { %837 = vmatpush1.bf16.msra.mxu0 %v4007_v51  ;;  %878 = vmatpush1.bf16.msra.mxu1 %v4009_v52 }
 0x28f   :  { %925 = vmatprep.subr.bf16.mxu0 %v3891_v9  ;;  %966 = vmatprep.subr.bf16.mxu1 %v3893_v13 }
 0x344   :  { %v753_v4 = vpop.f32.mrb[24].mxu0  ;;  %v794_v58 = vpop.f32.mrb[24].mxu1 }
 0x345   :  { %v801_v11 = vadd.f32 %v753_v4, %v4091_v31  ;;  %v803_v56 = vadd.f32 %v794_v58, %v4094_v35  ;;  %v755_v42 = vpop.f32.mrb[25].mxu0  ;;  %v796_v61 = vpop.f32.mrb[25].mxu1 }
 0x346   :  { %v802_v60 = vadd.f32 %v755_v42, %v4096_v43  ;;  %v804_v62 = vadd.f32 %v796_v61, %v4099_v53  ;;  %v757_v1 = vpop.f32.mrb[26].mxu0  ;;  %v798_v63 = vpop.f32.mrb[26].mxu1 }
 0x347   :  { %3426 = vtanh.f32 %v801_v11  ;;  %v758_v2 = vpop.f32.mrb[27].mxu0  ;;  %v799_v3 = vpop.f32.mrb[27].mxu1 }
 0x348   :  { %3428 = vtanh.f32 %v802_v60  ;;  %v4304_v2 = vld [vmem:[#allocation5] ss:$16 sps:$4 sm:$0xff]   ;;  %v4307_v3 = vld [vmem:[#allocation5 + $0x8] ss:$16 sps:$4 sm:$0xff]  }
 0x349   :  { %3430 = vtanh.f32 %v803_v56 }
 0x34a   :  { %3432 = vtanh.f32 %v804_v62 }
 0x351   :  { %v3427_v9 = vpop.eup %3426 }
 0x352   :  { %v809_v13 = vmul.f32 0.5, %v3427_v9  ;;  %v3429_v54 = vpop.eup %3428  ;;  %v4310_v9 = vld [vmem:[#allocation5 + $0x24] ss:$16 sps:$4 sm:$0xff]  }
 0x353   :  { %v811_v31 = vmul.f32 0.5, %v3429_v54  ;;  %v3431_v35 = vpop.eup %3430  ;;  %v4318_v54 = vld [vmem:[#allocation5 + $0x20] ss:$16 sps:$4 sm:$0xff]  }
 0x354   :  { %v810_v59 = vadd.f32 0.5, %v809_v13  ;;  %v3433_v53 = vpop.eup %3432  ;;  %v4313_v13 = vld [vmem:[#allocation5 + $0x2c] ss:$16 sps:$4 sm:$0xff]  }
 0x355   :  { %v812_v7 = vadd.f32 0.5, %v811_v31  ;;  %v813_v5 = vmul.f32 0.5, %v3433_v53  ;;  %v4324_v31 = vld [vmem:[#allocation5 + $0x44] ss:$16 sps:$4 sm:$0xff]   ;;  %v4342_v53 = vld [vmem:[#allocation5 + $0x60] ss:$16 sps:$4 sm:$0xff]  }
 0x356   :  { %v816_v10 = vmul.f32 %v3431_v35, %v810_v59  ;;  %v4321_v59 = vld [vmem:[#allocation5 + $0x28] ss:$16 sps:$4 sm:$0xff]   ;;  %v4327_v35 = vld [vmem:[#allocation5 + $0x4c] ss:$16 sps:$4 sm:$0xff]  }
 0x357   :  { %v815_v43 = vmul.f32 %v812_v7, %v4201_v32  ;;  %v814_v12 = vadd.f32 0.5, %v813_v5  ;;  %v4330_v7 = vld [vmem:[#allocation5 + $0x40] ss:$16 sps:$4 sm:$0xff]   ;;  %v4345_v5 = vld [vmem:[#allocation5 + $0x68] ss:$16 sps:$4 sm:$0xff]  }
 0x359   :  { %v4247_v57 = vadd.f32 %v816_v10, %v815_v43  ;;  %v4333_v10 = vld [vmem:[#allocation5 + $0x48] ss:$16 sps:$4 sm:$0xff]   ;;  %v4336_v43 = vld [vmem:[#allocation5 + $0x64] ss:$16 sps:$4 sm:$0xff]  }
 0x35b   :  { %3434 = vtanh.f32 %v4247_v57 }
 0x365   :  { %v3435_v20 = vpop.eup %3434 }
 0x366   :  { %v4250_v48 = vmul.f32 %v3435_v20, %v814_v12  ;;  %v4348_v12 = vld [vmem:[#allocation5 + $0x84] ss:$16 sps:$4 sm:$0xff]   ;;  %v4351_v20 = vld [vmem:[#allocation5 + $0x8c] ss:$16 sps:$4 sm:$0xff]  }
 0x368   :  { %v821_v24 = vpack.c.bf16 %v4250_v48, %v4250_v48 }
 0x36a   :  { %855 = vmatmul.mubr.bf16.vlgmr.msra.gmra.mrb[28].mxu0 %v821_v24  ;;  %896 = vmatmul.mubr.bf16.vlgmr.msra.gmra.mrb[28].mxu1 %v821_v24  ;;  %v4354_v24 = vld [vmem:[#allocation5 + $0x80] ss:$16 sps:$4 sm:$0xff]  }
 0x36b   :  { %926 = vmatpush1.bf16.msra.mxu0 %v3895_v14  ;;  %967 = vmatpush1.bf16.msra.mxu1 %v3897_v15  ;;  %v4286_v14 = vld [vmem:[#allocation5 + $0x4] ss:$16 sps:$4 sm:$0xff]   ;;  %v4289_v15 = vld [vmem:[#allocation5 + $0xc] ss:$16 sps:$4 sm:$0xff]  }
 0x36c   :  { %927 = vmatprep.subr.bf16.mxu0 %v3901_v16  ;;  %968 = vmatprep.subr.bf16.mxu1 %v3903_v17 }
 0x36d   :  { %957 = vmatprep.mubr.bf16.mxu0 %v5155_v6  ;;  %998 = vmatprep.mubr.bf16.mxu1 %v5155_v6 }
 0x36f   :  { %928 = vmatpush1.bf16.msra.mxu0 %v3905_v18  ;;  %969 = vmatpush1.bf16.msra.mxu1 %v3909_v19  ;;  %v5156_v18 = vld [vmem:[#allocation15_spill] sm:$0xff] }
 0x370   :  { %929 = vmatprep.subr.bf16.mxu0 %v3921_v22  ;;  %970 = vmatprep.subr.bf16.mxu1 %v3923_v23  ;;  %v5157_v22 = vld [vmem:[#allocation16_spill] sm:$0xff] }
 0x373   :  { %930 = vmatpush1.bf16.msra.mxu0 %v3929_v25  ;;  %971 = vmatpush1.bf16.msra.mxu1 %v3931_v26 }
 0x374   :  { %931 = vmatprep.subr.bf16.mxu0 %v3935_v27  ;;  %972 = vmatprep.subr.bf16.mxu1 %v3937_v28  ;;  %v5158_v27 = vld [vmem:[#allocation17_spill] sm:$0xff] }
 0x377   :  { %932 = vmatpush1.bf16.msra.mxu0 %v3939_v29  ;;  %973 = vmatpush1.bf16.msra.mxu1 %v3941_v30  ;;  %v5159_v29 = vld [vmem:[#allocation18_spill] sm:$0xff] }
 0x378   :  { %933 = vmatprep.subr.bf16.mxu0 %v3953_v33  ;;  %974 = vmatprep.subr.bf16.mxu1 %v3957_v34 }
 0x37b   :  { %934 = vmatpush1.bf16.msra.mxu0 %v3961_v36  ;;  %975 = vmatpush1.bf16.msra.mxu1 %v3965_v37 }
 0x37c   :  { %935 = vmatprep.subr.bf16.mxu0 %v3969_v38  ;;  %976 = vmatprep.subr.bf16.mxu1 %v3971_v39 }
 0x37f   :  { %936 = vmatpush1.bf16.msra.mxu0 %v3973_v40  ;;  %977 = vmatpush1.bf16.msra.mxu1 %v3977_v41 }
 0x380   :  { %937 = vmatprep.subr.bf16.mxu0 %v3987_v44  ;;  %978 = vmatprep.subr.bf16.mxu1 %v3991_v45 }
 0x383   :  { %938 = vmatpush1.bf16.msra.mxu0 %v3995_v46  ;;  %979 = vmatpush1.bf16.msra.mxu1 %v3997_v47 }
 0x384   :  { %939 = vmatprep.subr.bf16.mxu0 %v3999_v49  ;;  %980 = vmatprep.subr.bf16.mxu1 %v4001_v50 }
 0x387   :  { %940 = vmatpush1.bf16.msra.mxu0 %v4007_v51  ;;  %981 = vmatpush1.bf16.msra.mxu1 %v4009_v52 }
 0x388   :  { %1028 = vmatprep.subr.bf16.mxu0 %v4286_v14  ;;  %1069 = vmatprep.subr.bf16.mxu1 %v4289_v15 }
 0x43d   :  { %v856_v16 = vpop.f32.mrb[28].mxu0  ;;  %v897_v17 = vpop.f32.mrb[28].mxu1 }
 0x43e   :  { %v904_v19 = vadd.f32 %v856_v16, %v5156_v18  ;;  %v906_v23 = vadd.f32 %v897_v17, %v5157_v22  ;;  %v858_v25 = vpop.f32.mrb[29].mxu0  ;;  %v899_v26 = vpop.f32.mrb[29].mxu1  ;;  %v4357_v16 = vld [vmem:[#allocation5 + $0x88] ss:$16 sps:$4 sm:$0xff]   ;;  %v4360_v17 = vld [vmem:[#allocation5 + $0xa4] ss:$16 sps:$4 sm:$0xff]  }
 0x43f   :  { %v905_v28 = vadd.f32 %v858_v25, %v5158_v27  ;;  %v907_v30 = vadd.f32 %v899_v26, %v5159_v29  ;;  %v860_v33 = vpop.f32.mrb[30].mxu0  ;;  %v901_v34 = vpop.f32.mrb[30].mxu1  ;;  %v4363_v18 = vld [vmem:[#allocation5 + $0xac] ss:$16 sps:$4 sm:$0xff]   ;;  %v5163_v27 = vld [vmem:[#allocation22_spill] sm:$0xff] }
 0x440   :  { %3436 = vtanh.f32 %v904_v19  ;;  %v861_v36 = vpop.f32.mrb[31].mxu0  ;;  %v902_v37 = vpop.f32.mrb[31].mxu1  ;;  %v4366_v19 = vld [vmem:[#allocation5 + $0xa0] ss:$16 sps:$4 sm:$0xff]  }
 0x441   :  { %3438 = vtanh.f32 %v905_v28  ;;  %v5160_v22 = vld [vmem:[#allocation19_spill] sm:$0xff]  ;;  %v5162_v26 = vld [vmem:[#allocation21_spill] sm:$0xff] }
 0x442   :  { %3440 = vtanh.f32 %v906_v23  ;;  %v5161_v23 = vld [vmem:[#allocation20_spill] sm:$0xff] }
 0x443   :  { %3442 = vtanh.f32 %v907_v30 }
 0x44a   :  { %v3437_v38 = vpop.eup %3436 }
 0x44b   :  { %v912_v39 = vmul.f32 0.5, %v3437_v38  ;;  %v3439_v40 = vpop.eup %3438 }
 0x44c   :  { %v914_v55 = vmul.f32 0.5, %v3439_v40  ;;  %v3441_v0 = vpop.eup %3440 }
 0x44d   :  { %v913_v32 = vadd.f32 0.5, %v912_v39  ;;  %v3443_v42 = vpop.eup %3442 }
 0x44e   :  { %v915_v4 = vadd.f32 0.5, %v914_v55  ;;  %v916_v61 = vmul.f32 0.5, %v3443_v42 }
 0x44f   :  { %v919_v58 = vmul.f32 %v3441_v0, %v913_v32 }
 0x450   :  { %v918_v11 = vmul.f32 %v915_v4, %v4247_v57  ;;  %v917_v60 = vadd.f32 0.5, %v916_v61  ;;  %v4339_v57 = vld [vmem:[#allocation5 + $0x6c] ss:$16 sps:$4 sm:$0xff]  }
 0x452   :  { %v4297_v56 = vadd.f32 %v919_v58, %v918_v11 }
 0x454   :  { %3444 = vtanh.f32 %v4297_v56 }
 0x45e   :  { %v3445_v62 = vpop.eup %3444 }
 0x45f   :  { %v4300_v1 = vmul.f32 %v3445_v62, %v917_v60  ;;  %v4418_v60 = vld [vmem:[#allocation5 + $0xc4] ss:$16 sps:$4 sm:$0xff]   ;;  %v4421_v62 = vld [vmem:[#allocation5 + $0xcc] ss:$16 sps:$4 sm:$0xff]  }
 0x461   :  { %v924_v63 = vpack.c.bf16 %v4300_v1, %v4300_v1 }
 0x463   :  { %958 = vmatmul.mubr.bf16.vlgmr.msra.gmra.mrb[32].mxu0 %v924_v63  ;;  %999 = vmatmul.mubr.bf16.vlgmr.msra.gmra.mrb[32].mxu1 %v924_v63  ;;  %v4424_v63 = vld [vmem:[#allocation5 + $0xc0] ss:$16 sps:$4 sm:$0xff]  }
 0x464   :  { %1029 = vmatpush1.bf16.msra.mxu0 %v4304_v2  ;;  %1070 = vmatpush1.bf16.msra.mxu1 %v4307_v3 }
 0x465   :  { %1030 = vmatprep.subr.bf16.mxu0 %v4310_v9  ;;  %1071 = vmatprep.subr.bf16.mxu1 %v4313_v13 }
 0x466   :  { %1060 = vmatprep.mubr.bf16.mxu0 %v5155_v6  ;;  %1101 = vmatprep.mubr.bf16.mxu1 %v5155_v6 }
 0x468   :  { %1031 = vmatpush1.bf16.msra.mxu0 %v4318_v54  ;;  %1072 = vmatpush1.bf16.msra.mxu1 %v4321_v59 }
 0x469   :  { %1032 = vmatprep.subr.bf16.mxu0 %v4324_v31  ;;  %1073 = vmatprep.subr.bf16.mxu1 %v4327_v35 }
 0x46c   :  { %1033 = vmatpush1.bf16.msra.mxu0 %v4330_v7  ;;  %1074 = vmatpush1.bf16.msra.mxu1 %v4333_v10 }
 0x46d   :  { %1034 = vmatprep.subr.bf16.mxu0 %v4336_v43  ;;  %1075 = vmatprep.subr.bf16.mxu1 %v4339_v57 }
 0x470   :  { %1035 = vmatpush1.bf16.msra.mxu0 %v4342_v53  ;;  %1076 = vmatpush1.bf16.msra.mxu1 %v4345_v5 }
 0x471   :  { %1036 = vmatprep.subr.bf16.mxu0 %v4348_v12  ;;  %1077 = vmatprep.subr.bf16.mxu1 %v4351_v20 }
 0x474   :  { %1037 = vmatpush1.bf16.msra.mxu0 %v4354_v24  ;;  %1078 = vmatpush1.bf16.msra.mxu1 %v4357_v16 }
 0x475   :  { %1038 = vmatprep.subr.bf16.mxu0 %v4360_v17  ;;  %1079 = vmatprep.subr.bf16.mxu1 %v4363_v18 }
 0x478   :  { %1039 = vmatpush1.bf16.msra.mxu0 %v4366_v19  ;;  %1080 = vmatpush1.bf16.msra.mxu1 %v3977_v41 }
 0x479   :  { %1040 = vmatprep.subr.bf16.mxu0 %v3987_v44  ;;  %1081 = vmatprep.subr.bf16.mxu1 %v3991_v45 }
 0x47c   :  { %1041 = vmatpush1.bf16.msra.mxu0 %v3995_v46  ;;  %1082 = vmatpush1.bf16.msra.mxu1 %v3997_v47 }
 0x47d   :  { %1042 = vmatprep.subr.bf16.mxu0 %v3999_v49  ;;  %1083 = vmatprep.subr.bf16.mxu1 %v4001_v50 }
 0x480   :  { %1043 = vmatpush1.bf16.msra.mxu0 %v4007_v51  ;;  %1084 = vmatpush1.bf16.msra.mxu1 %v4009_v52 }
 0x481   :  { %1131 = vmatprep.subr.bf16.mxu0 %v4286_v14  ;;  %1172 = vmatprep.subr.bf16.mxu1 %v4289_v15 }
 0x536   :  { %v959_v41 = vpop.f32.mrb[32].mxu0  ;;  %v1000_v44 = vpop.f32.mrb[32].mxu1 }
 0x537   :  { %v1007_v45 = vadd.f32 %v959_v41, %v5160_v22  ;;  %v1009_v46 = vadd.f32 %v1000_v44, %v5161_v23  ;;  %v961_v25 = vpop.f32.mrb[33].mxu0  ;;  %v1002_v47 = vpop.f32.mrb[33].mxu1  ;;  %v4427_v41 = vld [vmem:[#allocation5 + $0xc8] ss:$16 sps:$4 sm:$0xff]   ;;  %v4430_v44 = vld [vmem:[#allocation5 + $0xe4] ss:$16 sps:$4 sm:$0xff]  }
 0x538   :  { %v1008_v49 = vadd.f32 %v961_v25, %v5162_v26  ;;  %v1010_v50 = vadd.f32 %v1002_v47, %v5163_v27  ;;  %v963_v28 = vpop.f32.mrb[34].mxu0  ;;  %v1004_v51 = vpop.f32.mrb[34].mxu1  ;;  %v4433_v22 = vld [vmem:[#allocation5 + $0xec] ss:$16 sps:$4 sm:$0xff]   ;;  %v4439_v23 = vld [vmem:[#allocation5 + $0xe8] ss:$16 sps:$4 sm:$0xff]  }
 0x539   :  { %3446 = vtanh.f32 %v1007_v45  ;;  %v964_v52 = vpop.f32.mrb[35].mxu0  ;;  %v1005_v29 = vpop.f32.mrb[35].mxu1  ;;  %v4436_v45 = vld [vmem:[#allocation5 + $0xe0] ss:$16 sps:$4 sm:$0xff]  }
 0x53a   :  { %3448 = vtanh.f32 %v1008_v49  ;;  %v5164_v47 = vld [vmem:[#allocation23_spill] sm:$0xff]  ;;  %v5165_v49 = vld [vmem:[#allocation24_spill] sm:$0xff]  ;;  %v5166_v51 = vld [vmem:[#allocation25_spill] sm:$0xff] }
 0x53b   :  { %3450 = vtanh.f32 %v1009_v46  ;;  %v5167_v29 = vld [vmem:[#allocation26_spill] sm:$0xff] }
 0x53c   :  { %3452 = vtanh.f32 %v1010_v50 }
 0x543   :  { %v3447_v30 = vpop.eup %3446 }
 0x544   :  { %v1015_v33 = vmul.f32 0.5, %v3447_v30  ;;  %v3449_v34 = vpop.eup %3448 }
 0x545   :  { %v1017_v37 = vmul.f32 0.5, %v3449_v34  ;;  %v3451_v38 = vpop.eup %3450 }
 0x546   :  { %v1016_v36 = vadd.f32 0.5, %v1015_v33  ;;  %v3453_v0 = vpop.eup %3452 }
 0x547   :  { %v1018_v39 = vadd.f32 0.5, %v1017_v37  ;;  %v1019_v4 = vmul.f32 0.5, %v3453_v0 }
 0x548   :  { %v1022_v40 = vmul.f32 %v3451_v38, %v1016_v36 }
 0x549   :  { %v1021_v32 = vmul.f32 %v1018_v39, %v4297_v56  ;;  %v1020_v58 = vadd.f32 0.5, %v1019_v4  ;;  %v4415_v56 = vld [vmem:[#allocation5 + $0xa8] ss:$16 sps:$4 sm:$0xff]  }
 0x54b   :  { %v4385_v55 = vadd.f32 %v1022_v40, %v1021_v32 }
 0x54d   :  { %3454 = vtanh.f32 %v4385_v55 }
 0x557   :  { %v3455_v11 = vpop.eup %3454 }
 0x558   :  { %v4388_v42 = vmul.f32 %v3455_v11, %v1020_v58 }
 0x55a   :  { %v1027_v61 = vpack.c.bf16 %v4388_v42, %v4388_v42 }
 0x55c   :  { %1061 = vmatmul.mubr.bf16.vlgmr.msra.gmra.mrb[36].mxu0 %v1027_v61  ;;  %1102 = vmatmul.mubr.bf16.vlgmr.msra.gmra.mrb[36].mxu1 %v1027_v61 }
 0x55d   :  { %1132 = vmatpush1.bf16.msra.mxu0 %v4304_v2  ;;  %1173 = vmatpush1.bf16.msra.mxu1 %v4307_v3 }
 0x55e   :  { %1133 = vmatprep.subr.bf16.mxu0 %v4310_v9  ;;  %1174 = vmatprep.subr.bf16.mxu1 %v4313_v13 }
 0x55f   :  { %1163 = vmatprep.mubr.bf16.mxu0 %v5155_v6  ;;  %1204 = vmatprep.mubr.bf16.mxu1 %v5155_v6 }
 0x561   :  { %1134 = vmatpush1.bf16.msra.mxu0 %v4318_v54  ;;  %1175 = vmatpush1.bf16.msra.mxu1 %v4321_v59 }
 0x562   :  { %1135 = vmatprep.subr.bf16.mxu0 %v4324_v31  ;;  %1176 = vmatprep.subr.bf16.mxu1 %v4327_v35 }
 0x565   :  { %1136 = vmatpush1.bf16.msra.mxu0 %v4330_v7  ;;  %1177 = vmatpush1.bf16.msra.mxu1 %v4333_v10 }
 0x566   :  { %1137 = vmatprep.subr.bf16.mxu0 %v4336_v43  ;;  %1178 = vmatprep.subr.bf16.mxu1 %v4339_v57 }
 0x569   :  { %1138 = vmatpush1.bf16.msra.mxu0 %v4342_v53  ;;  %1179 = vmatpush1.bf16.msra.mxu1 %v4345_v5 }
 0x56a   :  { %1139 = vmatprep.subr.bf16.mxu0 %v4348_v12  ;;  %1180 = vmatprep.subr.bf16.mxu1 %v4351_v20 }
 0x56d   :  { %1140 = vmatpush1.bf16.msra.mxu0 %v4354_v24  ;;  %1181 = vmatpush1.bf16.msra.mxu1 %v4357_v16 }
 0x56e   :  { %1141 = vmatprep.subr.bf16.mxu0 %v4360_v17  ;;  %1182 = vmatprep.subr.bf16.mxu1 %v4363_v18 }
 0x571   :  { %1142 = vmatpush1.bf16.msra.mxu0 %v4366_v19  ;;  %1183 = vmatpush1.bf16.msra.mxu1 %v4415_v56 }
 0x572   :  { %1143 = vmatprep.subr.bf16.mxu0 %v4418_v60  ;;  %1184 = vmatprep.subr.bf16.mxu1 %v4421_v62 }
 0x575   :  { %1144 = vmatpush1.bf16.msra.mxu0 %v4424_v63  ;;  %1185 = vmatpush1.bf16.msra.mxu1 %v4427_v41 }
 0x576   :  { %1145 = vmatprep.subr.bf16.mxu0 %v4430_v44  ;;  %1186 = vmatprep.subr.bf16.mxu1 %v4433_v22 }
 0x579   :  { %1146 = vmatpush1.bf16.msra.mxu0 %v4436_v45  ;;  %1187 = vmatpush1.bf16.msra.mxu1 %v4439_v23 }
 0x57a   :  { %1234 = vmatprep.subr.bf16.mxu0 %v4286_v14  ;;  %1275 = vmatprep.subr.bf16.mxu1 %v4289_v15 }
 0x62f   :  { %v1062_v46 = vpop.f32.mrb[36].mxu0  ;;  %v1103_v25 = vpop.f32.mrb[36].mxu1 }
 0x630   :  { %v1110_v26 = vadd.f32 %v1062_v46, %v5164_v47  ;;  %v1112_v27 = vadd.f32 %v1103_v25, %v5165_v49  ;;  %v1064_v50 = vpop.f32.mrb[37].mxu0  ;;  %v1105_v28 = vpop.f32.mrb[37].mxu1 }
 0x631   :  { %v1111_v52 = vadd.f32 %v1064_v50, %v5166_v51  ;;  %v1113_v30 = vadd.f32 %v1105_v28, %v5167_v29  ;;  %v1066_v33 = vpop.f32.mrb[38].mxu0  ;;  %v1107_v34 = vpop.f32.mrb[38].mxu1  ;;  %v3294_v28 = vld [vmem:[#allocation8] ss:$16 sps:$4 sm:$0xff]   ;;  %v3297_v51 = vld [vmem:[#allocation8 + $0x8] ss:$16 sps:$4 sm:$0xff]  }
 0x632   :  { %3456 = vtanh.f32 %v1110_v26  ;;  %v1067_v36 = vpop.f32.mrb[39].mxu0  ;;  %v1108_v37 = vpop.f32.mrb[39].mxu1  ;;  %v3302_v29 = vld [vmem:[#allocation8 + $0x24] ss:$16 sps:$4 sm:$0xff]   ;;  %v3300_v33 = vld [vmem:[#allocation8 + $0x20] ss:$16 sps:$4 sm:$0xff]  }
 0x633   :  { %3458 = vtanh.f32 %v1111_v52  ;;  %v3303_v34 = vld [vmem:[#allocation8 + $0x28] ss:$16 sps:$4 sm:$0xff]   ;;  %v3308_v36 = vld [vmem:[#allocation8 + $0x44] ss:$16 sps:$4 sm:$0xff]   ;;  %v3311_v37 = vld [vmem:[#allocation8 + $0x4c] ss:$16 sps:$4 sm:$0xff]  }
 0x634   :  { %3460 = vtanh.f32 %v1112_v27 }
 0x635   :  { %3462 = vtanh.f32 %v1113_v30  ;;  %v3305_v30 = vld [vmem:[#allocation8 + $0x2c] ss:$16 sps:$4 sm:$0xff]  }
 0x63c   :  { %v3457_v14 = vpop.eup %3456 }
 0x63d   :  { %v1118_v15 = vmul.f32 0.5, %v3457_v14  ;;  %v3459_v38 = vpop.eup %3458  ;;  %v3306_v14 = vld [vmem:[#allocation8 + $0x40] ss:$16 sps:$4 sm:$0xff]  }
 0x63e   :  { %v1120_v40 = vmul.f32 0.5, %v3459_v38  ;;  %v3461_v32 = vpop.eup %3460  ;;  %v3314_v38 = vld [vmem:[#allocation8 + $0x64] ss:$16 sps:$4 sm:$0xff]  }
 0x63f   :  { %v1119_v39 = vadd.f32 0.5, %v1118_v15  ;;  %v3463_v61 = vpop.eup %3462  ;;  %v3309_v15 = vld [vmem:[#allocation8 + $0x48] ss:$16 sps:$4 sm:$0xff]  }
 0x640   :  { %v1121_v0 = vadd.f32 0.5, %v1120_v40  ;;  %v1122_v46 = vmul.f32 0.5, %v3463_v61  ;;  %v3312_v40 = vld [vmem:[#allocation8 + $0x60] ss:$16 sps:$4 sm:$0xff]   ;;  %v3326_v61 = vld [vmem:[#allocation8 + $0xa4] ss:$16 sps:$4 sm:$0xff]  }
 0x641   :  { %v1125_v4 = vmul.f32 %v3461_v32, %v1119_v39  ;;  %v3317_v39 = vld [vmem:[#allocation8 + $0x6c] ss:$16 sps:$4 sm:$0xff]   ;;  %v3315_v32 = vld [vmem:[#allocation8 + $0x68] ss:$16 sps:$4 sm:$0xff]  }
 0x642   :  { %v1124_v58 = vmul.f32 %v1121_v0, %v4385_v55  ;;  %v1123_v25 = vadd.f32 0.5, %v1122_v46  ;;  %v3320_v0 = vld [vmem:[#allocation8 + $0x84] ss:$16 sps:$4 sm:$0xff]   ;;  %v3329_v46 = vld [vmem:[#allocation8 + $0xac] ss:$16 sps:$4 sm:$0xff]  }
 0x644   :  { %v4449_v11 = vadd.f32 %v1125_v4, %v1124_v58  ;;  %v3323_v4 = vld [vmem:[#allocation8 + $0x8c] ss:$16 sps:$4 sm:$0xff]   ;;  %v3318_v58 = vld [vmem:[#allocation8 + $0x80] ss:$16 sps:$4 sm:$0xff]  }
 0x646   :  { %3464 = vtanh.f32 %v4449_v11 }
 0x650   :  { %v3465_v47 = vpop.eup %3464 }
 0x651   :  { %v4452_v26 = vmul.f32 %v3465_v47, %v1123_v25  ;;  %v3324_v25 = vld [vmem:[#allocation8 + $0xa0] ss:$16 sps:$4 sm:$0xff]   ;;  %v3327_v47 = vld [vmem:[#allocation8 + $0xa8] ss:$16 sps:$4 sm:$0xff]  }
 0x653   :  { %v1130_v49 = vpack.c.bf16 %v4452_v26, %v4452_v26 }
 0x655   :  { %1164 = vmatmul.mubr.bf16.vlgmr.msra.gmra.mrb[40].mxu0 %v1130_v49  ;;  %1205 = vmatmul.mubr.bf16.vlgmr.msra.gmra.mrb[40].mxu1 %v1130_v49  ;;  %v3332_v49 = vld [vmem:[#allocation8 + $0xc4] ss:$16 sps:$4 sm:$0xff]  }
 0x656   :  { %1235 = vmatpush1.bf16.msra.mxu0 %v4304_v2  ;;  %1276 = vmatpush1.bf16.msra.mxu1 %v4307_v3  ;;  %v3296_v2 = vld [vmem:[#allocation8 + $0x4] ss:$16 sps:$4 sm:$0xff]   ;;  %v3299_v3 = vld [vmem:[#allocation8 + $0xc] ss:$16 sps:$4 sm:$0xff]  }
 0x657   :  { %1236 = vmatprep.subr.bf16.mxu0 %v4310_v9  ;;  %1277 = vmatprep.subr.bf16.mxu1 %v4313_v13 }
 0x658   :  { %1266 = vmatprep.mubr.bf16.mxu0 %v5155_v6  ;;  %1307 = vmatprep.mubr.bf16.mxu1 %v5155_v6 }
 0x65a   :  { %1237 = vmatpush1.bf16.msra.mxu0 %v4318_v54  ;;  %1278 = vmatpush1.bf16.msra.mxu1 %v4321_v59  ;;  %v5168_v54 = vld [vmem:[#allocation27_spill] sm:$0xff] }
 0x65b   :  { %1238 = vmatprep.subr.bf16.mxu0 %v4324_v31  ;;  %1279 = vmatprep.subr.bf16.mxu1 %v4327_v35  ;;  %v5169_v31 = vld [vmem:[#allocation28_spill] sm:$0xff] }
 0x65e   :  { %1239 = vmatpush1.bf16.msra.mxu0 %v4330_v7  ;;  %1280 = vmatpush1.bf16.msra.mxu1 %v4333_v10 }
 0x65f   :  { %1240 = vmatprep.subr.bf16.mxu0 %v4336_v43  ;;  %1281 = vmatprep.subr.bf16.mxu1 %v4339_v57  ;;  %v5170_v43 = vld [vmem:[#allocation29_spill] sm:$0xff] }
 0x662   :  { %1241 = vmatpush1.bf16.msra.mxu0 %v4342_v53  ;;  %1282 = vmatpush1.bf16.msra.mxu1 %v4345_v5  ;;  %v5171_v53 = vld [vmem:[#allocation30_spill] sm:$0xff] }
 0x663   :  { %1242 = vmatprep.subr.bf16.mxu0 %v4348_v12  ;;  %1283 = vmatprep.subr.bf16.mxu1 %v4351_v20 }
 0x666   :  { %1243 = vmatpush1.bf16.msra.mxu0 %v4354_v24  ;;  %1284 = vmatpush1.bf16.msra.mxu1 %v4357_v16 }
 0x667   :  { %1244 = vmatprep.subr.bf16.mxu0 %v4360_v17  ;;  %1285 = vmatprep.subr.bf16.mxu1 %v4363_v18 }
 0x66a   :  { %1245 = vmatpush1.bf16.msra.mxu0 %v4366_v19  ;;  %1286 = vmatpush1.bf16.msra.mxu1 %v4415_v56 }
 0x66b   :  { %1246 = vmatprep.subr.bf16.mxu0 %v4418_v60  ;;  %1287 = vmatprep.subr.bf16.mxu1 %v4421_v62 }
 0x66e   :  { %1247 = vmatpush1.bf16.msra.mxu0 %v4424_v63  ;;  %1288 = vmatpush1.bf16.msra.mxu1 %v4427_v41 }
 0x66f   :  { %1248 = vmatprep.subr.bf16.mxu0 %v4430_v44  ;;  %1289 = vmatprep.subr.bf16.mxu1 %v4433_v22 }
 0x672   :  { %1249 = vmatpush1.bf16.msra.mxu0 %v4436_v45  ;;  %1290 = vmatpush1.bf16.msra.mxu1 %v4439_v23 }
 0x673   :  { %1594 = vmatprep.subr.bf16.mxu0 %v3296_v2  ;;  %1667 = vmatprep.subr.bf16.mxu1 %v3299_v3  ;;  %v3335_v2 = vld [vmem:[#allocation8 + $0xcc] ss:$16 sps:$4 sm:$0xff]   ;;  %v3330_v3 = vld [vmem:[#allocation8 + $0xc0] ss:$16 sps:$4 sm:$0xff]  }
 0x728   :  { %v1165_v9 = vpop.f32.mrb[40].mxu0  ;;  %v1206_v13 = vpop.f32.mrb[40].mxu1 }
 0x729   :  { %v1213_v59 = vadd.f32 %v1165_v9, %v5168_v54  ;;  %v1215_v35 = vadd.f32 %v1206_v13, %v5169_v31  ;;  %v1167_v7 = vpop.f32.mrb[41].mxu0  ;;  %v1208_v10 = vpop.f32.mrb[41].mxu1  ;;  %v3333_v9 = vld [vmem:[#allocation8 + $0xc8] ss:$16 sps:$4 sm:$0xff]   ;;  %v3338_v13 = vld [vmem:[#allocation8 + $0xe4] ss:$16 sps:$4 sm:$0xff]  }
 0x72a   :  { %v1214_v57 = vadd.f32 %v1167_v7, %v5170_v43  ;;  %v1216_v5 = vadd.f32 %v1208_v10, %v5171_v53  ;;  %v1169_v12 = vpop.f32.mrb[42].mxu0  ;;  %v1210_v20 = vpop.f32.mrb[42].mxu1  ;;  %v3341_v54 = vld [vmem:[#allocation8 + $0xec] ss:$16 sps:$4 sm:$0xff]   ;;  %v3339_v31 = vld [vmem:[#allocation8 + $0xe8] ss:$16 sps:$4 sm:$0xff]   ;;  %v1345_v7 = vpack.c.bf16 %v4300_v1, %v4250_v48  ;;  %v1346_v10 = vpack.c.bf16 %v4452_v26, %v4388_v42 }
 0x72b   :  { %3466 = vtanh.f32 %v1213_v59  ;;  %v1170_v24 = vpop.f32.mrb[43].mxu0  ;;  %v1211_v16 = vpop.f32.mrb[43].mxu1  ;;  %v3336_v59 = vld [vmem:[#allocation8 + $0xe0] ss:$16 sps:$4 sm:$0xff]   ;;  %v4520_v1 = vld [vmem:[#allocation10 + $0x8] ss:$16 sps:$4 sm:$0xff]  }
 0x72c   :  { %3468 = vtanh.f32 %v1214_v57  ;;  %v4518_v48 = vld [vmem:[#allocation10] ss:$16 sps:$4 sm:$0xff]   ;;  %v4526_v42 = vld [vmem:[#allocation10 + $0x24] ss:$16 sps:$4 sm:$0xff]   ;;  %v4528_v26 = vld [vmem:[#allocation10 + $0x2c] ss:$16 sps:$4 sm:$0xff]  }
 0x72d   :  { %3470 = vtanh.f32 %v1215_v35  ;;  %v1344_v35 = vpack.c.bf16 %v4204_v21, %v4158_v8  ;;  %v4514_v8 = vld [vmem:[#allocation10 + $0x4] ss:$16 sps:$4 sm:$0xff]   ;;  %v4516_v21 = vld [vmem:[#allocation10 + $0xc] ss:$16 sps:$4 sm:$0xff]   ;;  %v4530_v43 = vld [vmem:[#allocation10 + $0x20] ss:$16 sps:$4 sm:$0xff]  }
 0x72e   :  { %3472 = vtanh.f32 %v1216_v5  ;;  %v4532_v57 = vld [vmem:[#allocation10 + $0x28] ss:$16 sps:$4 sm:$0xff]   ;;  %v4538_v53 = vld [vmem:[#allocation10 + $0x44] ss:$16 sps:$4 sm:$0xff]   ;;  %v4540_v5 = vld [vmem:[#allocation10 + $0x4c] ss:$16 sps:$4 sm:$0xff]  }
 0x72f   :  { %v4542_v12 = vld [vmem:[#allocation10 + $0x40] ss:$16 sps:$4 sm:$0xff]   ;;  %v4544_v20 = vld [vmem:[#allocation10 + $0x48] ss:$16 sps:$4 sm:$0xff]   ;;  %v4548_v24 = vld [vmem:[#allocation10 + $0x64] ss:$16 sps:$4 sm:$0xff]  }
 0x730   :  { %v4550_v16 = vld [vmem:[#allocation10 + $0x6c] ss:$16 sps:$4 sm:$0xff]  }
 0x735   :  { %v3467_v17 = vpop.eup %3466 }
 0x736   :  { %v1221_v18 = vmul.f32 0.5, %v3467_v17  ;;  %v3469_v19 = vpop.eup %3468  ;;  %v4554_v17 = vld [vmem:[#allocation10 + $0x60] ss:$16 sps:$4 sm:$0xff]  }
 0x737   :  { %v1223_v56 = vmul.f32 0.5, %v3469_v19  ;;  %v3471_v60 = vpop.eup %3470  ;;  %v4560_v19 = vld [vmem:[#allocation10 + $0x84] ss:$16 sps:$4 sm:$0xff]  }
 0x738   :  { %v1222_v55 = vadd.f32 0.5, %v1221_v18  ;;  %v3473_v22 = vpop.eup %3472  ;;  %v4556_v18 = vld [vmem:[#allocation10 + $0x68] ss:$16 sps:$4 sm:$0xff]  }
 0x739   :  { %v1224_v62 = vadd.f32 0.5, %v1223_v56  ;;  %v1225_v45 = vmul.f32 0.5, %v3473_v22  ;;  %v4568_v56 = vld [vmem:[#allocation10 + $0x80] ss:$16 sps:$4 sm:$0xff]   ;;  %v4580_v22 = vld [vmem:[#allocation10 + $0xa8] ss:$16 sps:$4 sm:$0xff]  }
 0x73a   :  { %v1228_v63 = vmul.f32 %v3471_v60, %v1222_v55  ;;  %v4562_v55 = vld [vmem:[#allocation10 + $0x8c] ss:$16 sps:$4 sm:$0xff]   ;;  %v4570_v60 = vld [vmem:[#allocation10 + $0x88] ss:$16 sps:$4 sm:$0xff]  }
 0x73b   :  { %v1227_v41 = vmul.f32 %v1224_v62, %v4449_v11  ;;  %v1226_v23 = vadd.f32 0.5, %v1225_v45  ;;  %v3321_v11 = vld [vmem:[#allocation8 + $0x88] ss:$16 sps:$4 sm:$0xff]   ;;  %v4574_v62 = vld [vmem:[#allocation10 + $0xa4] ss:$16 sps:$4 sm:$0xff]  }
 0x73c   :  { %v4586_v45 = vld [vmem:[#allocation10 + $0xc4] ss:$16 sps:$4 sm:$0xff]  }
 0x73d   :  { %v4493_v44 = vadd.f32 %v1228_v63, %v1227_v41  ;;  %v4576_v63 = vld [vmem:[#allocation10 + $0xac] ss:$16 sps:$4 sm:$0xff]   ;;  %v4578_v41 = vld [vmem:[#allocation10 + $0xa0] ss:$16 sps:$4 sm:$0xff]  }
 0x73f   :  { %3474 = vtanh.f32 %v4493_v44 }
 0x749   :  { %v3475_v27 = vpop.eup %3474 }
 0x74a   :  { %v4496_v50 = vmul.f32 %v3475_v27, %v1226_v23  ;;  %v4588_v23 = vld [vmem:[#allocation10 + $0xcc] ss:$16 sps:$4 sm:$0xff]   ;;  %v4590_v27 = vld [vmem:[#allocation10 + $0xc0] ss:$16 sps:$4 sm:$0xff]  }
 0x74c   :  { %v1233_v52 = vpack.c.bf16 %v4496_v50, %v4496_v50 }
 0x74e   :  { %1267 = vmatmul.mubr.bf16.vlgmr.msra.gmra.mrb[44].mxu0 %v1233_v52  ;;  %1308 = vmatmul.mubr.bf16.vlgmr.msra.gmra.mrb[44].mxu1 %v1233_v52  ;;  %v4600_v52 = vld [vmem:[#allocation10 + $0xec] ss:$16 sps:$4 sm:$0xff]  }
 0x74f   :  { %1595 = vmatpush1.bf16.msra.mxu0 %v3294_v28  ;;  %1668 = vmatpush1.bf16.msra.mxu1 %v3297_v51  ;;  %v4592_v28 = vld [vmem:[#allocation10 + $0xc8] ss:$16 sps:$4 sm:$0xff]   ;;  %v4598_v51 = vld [vmem:[#allocation10 + $0xe4] ss:$16 sps:$4 sm:$0xff]  }
 0x750   :  { %1596 = vmatprep.subr.bf16.mxu0 %v3302_v29  ;;  %1669 = vmatprep.subr.bf16.mxu1 %v3305_v30  ;;  %v4602_v29 = vld [vmem:[#allocation10 + $0xe0] ss:$16 sps:$4 sm:$0xff]   ;;  %v4604_v30 = vld [vmem:[#allocation10 + $0xe8] ss:$16 sps:$4 sm:$0xff]  }
 0x751   :  { %1626 = vmatprep.mubr.bf16.mxu0 %v5155_v6  ;;  %1699 = vmatprep.mubr.bf16.mxu1 %v5155_v6 }
 0x753   :  { %1597 = vmatpush1.bf16.msra.mxu0 %v3300_v33  ;;  %1670 = vmatpush1.bf16.msra.mxu1 %v3303_v34 }
 0x754   :  { %1598 = vmatprep.subr.bf16.mxu0 %v3308_v36  ;;  %1671 = vmatprep.subr.bf16.mxu1 %v3311_v37  ;;  %v5172_v36 = vld [vmem:[#allocation31_spill] sm:$0xff] }
 0x757   :  { %1599 = vmatpush1.bf16.msra.mxu0 %v3306_v14  ;;  %1672 = vmatpush1.bf16.msra.mxu1 %v3309_v15  ;;  %v5173_v14 = vld [vmem:[#allocation32_spill] sm:$0xff] }
 0x758   :  { %1600 = vmatprep.subr.bf16.mxu0 %v3314_v38  ;;  %1673 = vmatprep.subr.bf16.mxu1 %v3317_v39 }
 0x75b   :  { %1601 = vmatpush1.bf16.msra.mxu0 %v3312_v40  ;;  %1674 = vmatpush1.bf16.msra.mxu1 %v3315_v32  ;;  %v5174_v40 = vld [vmem:[#allocation33_spill] sm:$0xff] }
 0x75c   :  { %1602 = vmatprep.subr.bf16.mxu0 %v3320_v0  ;;  %1675 = vmatprep.subr.bf16.mxu1 %v3323_v4  ;;  %v5175_v0 = vld [vmem:[#allocation34_spill] sm:$0xff] }
 0x75f   :  { %1603 = vmatpush1.bf16.msra.mxu0 %v3318_v58  ;;  %1676 = vmatpush1.bf16.msra.mxu1 %v3321_v11 }
 0x760   :  { %1604 = vmatprep.subr.bf16.mxu0 %v3326_v61  ;;  %1677 = vmatprep.subr.bf16.mxu1 %v3329_v46 }
 0x763   :  { %1605 = vmatpush1.bf16.msra.mxu0 %v3324_v25  ;;  %1678 = vmatpush1.bf16.msra.mxu1 %v3327_v47 }
 0x764   :  { %1606 = vmatprep.subr.bf16.mxu0 %v3332_v49  ;;  %1679 = vmatprep.subr.bf16.mxu1 %v3335_v2 }
 0x767   :  { %1607 = vmatpush1.bf16.msra.mxu0 %v3330_v3  ;;  %1680 = vmatpush1.bf16.msra.mxu1 %v3333_v9 }
 0x768   :  { %1608 = vmatprep.subr.bf16.mxu0 %v3338_v13  ;;  %1681 = vmatprep.subr.bf16.mxu1 %v3341_v54 }
 0x76b   :  { %1609 = vmatpush1.bf16.msra.mxu0 %v3336_v59  ;;  %1682 = vmatpush1.bf16.msra.mxu1 %v3339_v31 }
 0x76c   :  { %1900 = vmatprep.subr.bf16.mxu0 %v4514_v8  ;;  %1941 = vmatprep.subr.bf16.mxu1 %v4516_v21 }
 0x76e   :  { %1627 = vmatmul.mubr.bf16.vlgmr.msra.gmra.mrb[48].mxu0 %v1344_v35  ;;  %1700 = vmatmul.mubr.bf16.vlgmr.msra.gmra.mrb[48].mxu1 %v1344_v35 }
 0x76f   :  { %1636 = vmatprep.mubr.bf16.mxu0 %v5155_v6  ;;  %1709 = vmatprep.mubr.bf16.mxu1 %v5155_v6 }
 0x770   :  { %1901 = vmatpush1.bf16.msra.mxu0 %v4518_v48  ;;  %1942 = vmatpush1.bf16.msra.mxu1 %v4520_v1 }
 0x771   :  { %1902 = vmatprep.subr.bf16.mxu0 %v4526_v42  ;;  %1943 = vmatprep.subr.bf16.mxu1 %v4528_v26 }
 0x774   :  { %1903 = vmatpush1.bf16.msra.mxu0 %v4530_v43  ;;  %1944 = vmatpush1.bf16.msra.mxu1 %v4532_v57 }
 0x775   :  { %1904 = vmatprep.subr.bf16.mxu0 %v4538_v53  ;;  %1945 = vmatprep.subr.bf16.mxu1 %v4540_v5 }
 0x776   :  { %1637 = vmatmul.mubr.bf16.gmra.mrb[52].mxu0 %v1345_v7  ;;  %1710 = vmatmul.mubr.bf16.gmra.mrb[52].mxu1 %v1345_v7 }
 0x777   :  { %1646 = vmatprep.mubr.bf16.mxu0 %v5155_v6  ;;  %1719 = vmatprep.mubr.bf16.mxu1 %v5155_v6 }
 0x778   :  { %1905 = vmatpush1.bf16.msra.mxu0 %v4542_v12  ;;  %1946 = vmatpush1.bf16.msra.mxu1 %v4544_v20 }
 0x779   :  { %1906 = vmatprep.subr.bf16.mxu0 %v4548_v24  ;;  %1947 = vmatprep.subr.bf16.mxu1 %v4550_v16 }
 0x77c   :  { %1907 = vmatpush1.bf16.msra.mxu0 %v4554_v17  ;;  %1948 = vmatpush1.bf16.msra.mxu1 %v4556_v18 }
 0x77d   :  { %1908 = vmatprep.subr.bf16.mxu0 %v4560_v19  ;;  %1949 = vmatprep.subr.bf16.mxu1 %v4562_v55 }
 0x77e   :  { %1647 = vmatmul.mubr.bf16.gmra.mrb[56].mxu0 %v1346_v10  ;;  %1720 = vmatmul.mubr.bf16.gmra.mrb[56].mxu1 %v1346_v10 }
 0x77f   :  { %1656 = vmatprep.mubr.bf16.mxu0 %v5155_v6  ;;  %1729 = vmatprep.mubr.bf16.mxu1 %v5155_v6 }
 0x780   :  { %1909 = vmatpush1.bf16.msra.mxu0 %v4568_v56  ;;  %1950 = vmatpush1.bf16.msra.mxu1 %v4570_v60 }
 0x781   :  { %1910 = vmatprep.subr.bf16.mxu0 %v4574_v62  ;;  %1951 = vmatprep.subr.bf16.mxu1 %v4576_v63 }
 0x784   :  { %1911 = vmatpush1.bf16.msra.mxu0 %v4578_v41  ;;  %1952 = vmatpush1.bf16.msra.mxu1 %v4580_v22 }
 0x785   :  { %1912 = vmatprep.subr.bf16.mxu0 %v4586_v45  ;;  %1953 = vmatprep.subr.bf16.mxu1 %v4588_v23 }
 0x788   :  { %1913 = vmatpush1.bf16.msra.mxu0 %v4590_v27  ;;  %1954 = vmatpush1.bf16.msra.mxu1 %v4592_v28 }
 0x789   :  { %1914 = vmatprep.subr.bf16.mxu0 %v4598_v51  ;;  %1955 = vmatprep.subr.bf16.mxu1 %v4600_v52 }
 0x78c   :  { %1915 = vmatpush1.bf16.msra.mxu0 %v4602_v29  ;;  %1956 = vmatpush1.bf16.msra.mxu1 %v4604_v30 }
 0x78d   :  { %2003 = vmatprep.subr.bf16.mxu0 %v4514_v8  ;;  %2044 = vmatprep.subr.bf16.mxu1 %v4516_v21 }
 0x821   :  { %v1268_v33 = vpop.f32.mrb[44].mxu0  ;;  %v1309_v34 = vpop.f32.mrb[44].mxu1 }
 0x822   :  { %v1316_v37 = vadd.f32 %v1268_v33, %v5172_v36  ;;  %v1318_v15 = vadd.f32 %v1309_v34, %v5173_v14  ;;  %v1270_v38 = vpop.f32.mrb[45].mxu0  ;;  %v1311_v39 = vpop.f32.mrb[45].mxu1 }
 0x823   :  { %v1317_v32 = vadd.f32 %v1270_v38, %v5174_v40  ;;  %v1319_v4 = vadd.f32 %v1311_v39, %v5175_v0  ;;  %v1272_v58 = vpop.f32.mrb[46].mxu0  ;;  %v1313_v11 = vpop.f32.mrb[46].mxu1 }
 0x824   :  { %3476 = vtanh.f32 %v1316_v37  ;;  %v1273_v61 = vpop.f32.mrb[47].mxu0  ;;  %v1314_v46 = vpop.f32.mrb[47].mxu1 }
 0x825   :  { %3478 = vtanh.f32 %v1317_v32 }
 0x826   :  { %3480 = vtanh.f32 %v1318_v15 }
 0x827   :  { %3482 = vtanh.f32 %v1319_v4 }
 0x82e   :  { %v3477_v25 = vpop.eup %3476 }
 0x82f   :  { %v1324_v47 = vmul.f32 0.5, %v3477_v25  ;;  %v3479_v49 = vpop.eup %3478 }
 0x830   :  { %v1326_v3 = vmul.f32 0.5, %v3479_v49  ;;  %v3481_v9 = vpop.eup %3480 }
 0x831   :  { %v1325_v2 = vadd.f32 0.5, %v1324_v47  ;;  %v3483_v35 = vpop.eup %3482 }
 0x832   :  { %v1327_v13 = vadd.f32 0.5, %v1326_v3  ;;  %v1328_v7 = vmul.f32 0.5, %v3483_v35 }
 0x833   :  { %v1331_v54 = vmul.f32 %v3481_v9, %v1325_v2 }
 0x834   :  { %v1330_v59 = vmul.f32 %v1327_v13, %v4493_v44  ;;  %v1329_v34 = vadd.f32 0.5, %v1328_v7 }
 0x836   :  { %v1332_v31 = vadd.f32 %v1331_v54, %v1330_v59 }
 0x838   :  { %3484 = vtanh.f32 %v1332_v31  ;;  %v1412_v31 = vld [vmem:[%s5120_s6] sm:$0xf] }
 0x841   :  { %v4617_v10 = vpop.f32.mrb[48].mxu0  ;;  %v4619_v33 = vpop.f32.mrb[48].mxu1 }
 0x842   :  { %v4621_v36 = vpop.f32.mrb[49].mxu0  ;;  %v4623_v37 = vpop.f32.mrb[49].mxu1 }
 0x843   :  { %v3485_v14 = vpop.eup %3484  ;;  %v4625_v15 = vpop.f32.mrb[50].mxu0 }
 0x844   :  { %v4627_v38 = vpop.f32.mrb[50].mxu1  ;;  %v4629_v39 = vpop.f32.mrb[51].mxu0  ;;  %v1334_v40 = vmul.f32 %v3485_v14, %v1329_v34 }
 0x845   :  { %v4631_v44 = vpop.f32.mrb[51].mxu1 }
 0x846   :  { %v1347_v32 = vpack.c.bf16 %v1334_v40, %v4496_v50 }
 0x848   :  { %1657 = vmatmul.mubr.bf16.gmra.mrb[60].mxu0 %v1347_v32  ;;  %1730 = vmatmul.mubr.bf16.gmra.mrb[60].mxu1 %v1347_v32 }
 0x849   :  { %v4634_v0 = vpop.f32.mrb[52].mxu0  ;;  %v4636_v4 = vpop.f32.mrb[52].mxu1  ;;  %1932 = vmatprep.mubr.bf16.mxu0 %v5155_v6  ;;  %1973 = vmatprep.mubr.bf16.mxu1 %v5155_v6 }
 0x84a   :  { %5176 = vst [vmem:[#allocation15_spill] sm:$0xff] %v4636_v4  ;;  %v4640_v58 = vpop.f32.mrb[53].mxu0  ;;  %v4642_v11 = vpop.f32.mrb[53].mxu1 }
 0x84b   :  { %5177 = vst [vmem:[#allocation16_spill] sm:$0xff] %v4640_v58  ;;  %5178 = vst [vmem:[#allocation17_spill] sm:$0xff] %v4642_v11  ;;  %v4644_v61 = vpop.f32.mrb[54].mxu0  ;;  %v4646_v46 = vpop.f32.mrb[54].mxu1 }
 0x84c   :  { %5179 = vst [vmem:[#allocation18_spill] sm:$0xff] %v4644_v61  ;;  %5180 = vst [vmem:[#allocation19_spill] sm:$0xff] %v4646_v46  ;;  %v4648_v25 = vpop.f32.mrb[55].mxu0  ;;  %v4650_v50 = vpop.f32.mrb[55].mxu1 }
 0x84d   :  { %5181 = vst [vmem:[#allocation20_spill] sm:$0xff] %v4648_v25  ;;  %5182 = vst [vmem:[#allocation21_spill] sm:$0xff] %v4650_v50 }
 0x850   :  { %1933 = vmatmul.mubr.bf16.vlgmr.msra.gmra.mrb[64].mxu0 %v5155_v6  ;;  %1974 = vmatmul.mubr.bf16.vlgmr.msra.gmra.mrb[64].mxu1 %v5155_v6 }
 0x851   :  { %v4654_v47 = vpop.f32.mrb[56].mxu0  ;;  %v4656_v49 = vpop.f32.mrb[56].mxu1  ;;  %2004 = vmatpush1.bf16.msra.mxu0 %v4518_v48  ;;  %2045 = vmatpush1.bf16.msra.mxu1 %v4520_v1 }
 0x852   :  { %5183 = vst [vmem:[#allocation22_spill] sm:$0xff] %v4654_v47  ;;  %5184 = vst [vmem:[#allocation23_spill] sm:$0xff] %v4656_v49  ;;  %v4660_v2 = vpop.f32.mrb[57].mxu0  ;;  %v4662_v3 = vpop.f32.mrb[57].mxu1  ;;  %2005 = vmatprep.subr.bf16.mxu0 %v4526_v42  ;;  %2046 = vmatprep.subr.bf16.mxu1 %v4528_v26 }
 0x853   :  { %5185 = vst [vmem:[#allocation24_spill] sm:$0xff] %v4660_v2  ;;  %5186 = vst [vmem:[#allocation25_spill] sm:$0xff] %v4662_v3  ;;  %v4666_v9 = vpop.f32.mrb[58].mxu0  ;;  %v4668_v13 = vpop.f32.mrb[58].mxu1  ;;  %2035 = vmatprep.mubr.bf16.mxu0 %v5155_v6  ;;  %2076 = vmatprep.mubr.bf16.mxu1 %v5155_v6 }
 0x854   :  { %5187 = vst [vmem:[#allocation26_spill] sm:$0xff] %v4666_v9  ;;  %5188 = vst [vmem:[#allocation27_spill] sm:$0xff] %v4668_v13  ;;  %v4672_v54 = vpop.f32.mrb[59].mxu0  ;;  %v4674_v59 = vpop.f32.mrb[59].mxu1 }
 0x855   :  { %5189 = vst [vmem:[#allocation28_spill] sm:$0xff] %v4672_v54  ;;  %5190 = vst [vmem:[#allocation29_spill] sm:$0xff] %v4674_v59  ;;  %2006 = vmatpush1.bf16.msra.mxu0 %v4530_v43  ;;  %2047 = vmatpush1.bf16.msra.mxu1 %v4532_v57  ;;  %v5197_v59 = vld [vmem:[#allocation14_spill] sm:$0xff] }
 0x856   :  { %2007 = vmatprep.subr.bf16.mxu0 %v4538_v53  ;;  %2048 = vmatprep.subr.bf16.mxu1 %v4540_v5  ;;  %v5198_v54 = vsub.s32 0, %v5197_v59  ;;  %v5199_v9 = vsub.s32 2, %v5197_v59 }
 0x858   :  { %v4721_v13 = vrot.slane %v1412_v31, %v5198_v54  ;;  %v4725_v3 = vrot.slane %v1412_v31, %v5199_v9 }
 0x859   :  { %2008 = vmatpush1.bf16.msra.mxu0 %v4542_v12  ;;  %2049 = vmatpush1.bf16.msra.mxu1 %v4544_v20 }
 0x85a   :  { %2009 = vmatprep.subr.bf16.mxu0 %v4548_v24  ;;  %2050 = vmatprep.subr.bf16.mxu1 %v4550_v16  ;;  %v1629_v54 = vadd.f32 %v4617_v10, %v4721_v13 }
 0x85d   :  { %2010 = vmatpush1.bf16.msra.mxu0 %v4554_v17  ;;  %2051 = vmatpush1.bf16.msra.mxu1 %v4556_v18 }
 0x85e   :  { %2011 = vmatprep.subr.bf16.mxu0 %v4560_v19  ;;  %2052 = vmatprep.subr.bf16.mxu1 %v4562_v55 }
 0x861   :  { %2012 = vmatpush1.bf16.msra.mxu0 %v4568_v56  ;;  %2053 = vmatpush1.bf16.msra.mxu1 %v4570_v60 }
 0x862   :  { %2013 = vmatprep.subr.bf16.mxu0 %v4574_v62  ;;  %2054 = vmatprep.subr.bf16.mxu1 %v4576_v63 }
 0x865   :  { %2014 = vmatpush1.bf16.msra.mxu0 %v4578_v41  ;;  %2055 = vmatpush1.bf16.msra.mxu1 %v4580_v22 }
 0x866   :  { %2015 = vmatprep.subr.bf16.mxu0 %v4586_v45  ;;  %2056 = vmatprep.subr.bf16.mxu1 %v4588_v23 }
 0x869   :  { %2016 = vmatpush1.bf16.msra.mxu0 %v4590_v27  ;;  %2057 = vmatpush1.bf16.msra.mxu1 %v4592_v28 }
 0x86a   :  { %2017 = vmatprep.subr.bf16.mxu0 %v4598_v51  ;;  %2058 = vmatprep.subr.bf16.mxu1 %v4600_v52 }
 0x86d   :  { %2018 = vmatpush1.bf16.msra.mxu0 %v4602_v29  ;;  %2059 = vmatpush1.bf16.msra.mxu1 %v4604_v30 }
 0x86e   :  { %2106 = vmatprep.subr.bf16.mxu0 %v4514_v8  ;;  %2147 = vmatprep.subr.bf16.mxu1 %v4516_v21 }
 0x91b   :  { %v4707_v35 = vpop.f32.mrb[60].mxu0  ;;  %v4709_v7 = vpop.f32.mrb[60].mxu1 }
 0x91c   :  { %5191 = vst [vmem:[#allocation30_spill] sm:$0xff] %v4707_v35  ;;  %5192 = vst [vmem:[#allocation31_spill] sm:$0xff] %v4709_v7  ;;  %v4711_v34 = vpop.f32.mrb[61].mxu0  ;;  %v4713_v14 = vpop.f32.mrb[61].mxu1 }
 0x91d   :  { %5193 = vst [vmem:[#allocation32_spill] sm:$0xff] %v4711_v34  ;;  %5194 = vst [vmem:[#allocation33_spill] sm:$0xff] %v4713_v14  ;;  %v4715_v40 = vpop.f32.mrb[62].mxu0  ;;  %v4717_v32 = vpop.f32.mrb[62].mxu1  ;;  %v5202_v34 = vsub.s32 1, %v5197_v59 }
 0x91e   :  { %5195 = vst [vmem:[#allocation34_spill] sm:$0xff] %v4715_v40  ;;  %5196 = vst [vmem:[#allocation35_spill] sm:$0xff] %v4717_v32  ;;  %v4727_v2 = vpop.f32.mrb[63].mxu0  ;;  %v4729_v35 = vpop.f32.mrb[63].mxu1  ;;  %v5203_v40 = vsub.s32 3, %v5197_v59  ;;  %v1702_v32 = vadd.f32 %v4619_v33, %v4725_v3 }
 0x91f   :  { %5200 = vst [vmem:[#allocation14_spill] sm:$0xff] %v4727_v2  ;;  %5201 = vst [vmem:[#allocation36_spill] sm:$0xff] %v4729_v35  ;;  %v4733_v7 = vrot.slane %v1412_v31, %v5202_v34 }
 0x920   :  { %v4737_v14 = vrot.slane %v1412_v31, %v5203_v40 }
 0x921   :  { %v1631_v9 = vadd.f32 %v4621_v36, %v4733_v7 }
 0x922   :  { %v1704_v35 = vadd.f32 %v4623_v37, %v4737_v14 }
 0x923   :  { %v1934_v2 = vpop.f32.mrb[64].mxu0  ;;  %v1975_v49 = vpop.f32.mrb[64].mxu1 }
 0x924   :  { %v1982_v34 = vadd.f32 %v1934_v2, %v1629_v54  ;;  %v1984_v47 = vadd.f32 %v1975_v49, %v1702_v32  ;;  %v1936_v50 = vpop.f32.mrb[65].mxu0  ;;  %v1977_v59 = vpop.f32.mrb[65].mxu1 }
 0x925   :  { %v1983_v31 = vadd.f32 %v1936_v50, %v1631_v9  ;;  %v1985_v40 = vadd.f32 %v1977_v59, %v1704_v35  ;;  %v1938_v25 = vpop.f32.mrb[66].mxu0  ;;  %v1979_v46 = vpop.f32.mrb[66].mxu1  ;;  %v1708_v9 = vadd.f32 %v4631_v44, %v4737_v14 }
 0x926   :  { %3486 = vtanh.f32 %v1982_v34  ;;  %v1939_v10 = vpop.f32.mrb[67].mxu0  ;;  %v1980_v61 = vpop.f32.mrb[67].mxu1 }
 0x927   :  { %3488 = vtanh.f32 %v1983_v31 }
 0x928   :  { %3490 = vtanh.f32 %v1984_v47 }
 0x929   :  { %3492 = vtanh.f32 %v1985_v40 }
 0x930   :  { %v3487_v33 = vpop.eup %3486 }
 0x931   :  { %v1990_v36 = vmul.f32 0.5, %v3487_v33  ;;  %v3489_v11 = vpop.eup %3488 }
 0x932   :  { %v1992_v37 = vmul.f32 0.5, %v3489_v11  ;;  %v3491_v4 = vpop.eup %3490  ;;  %v1635_v11 = vadd.f32 %v4629_v39, %v4733_v7 }
 0x933   :  { %v1991_v58 = vadd.f32 0.5, %v1990_v36  ;;  %v3493_v46 = vpop.eup %3492 }
 0x934   :  { %v1993_v2 = vadd.f32 0.5, %v1992_v37  ;;  %v1994_v25 = vmul.f32 0.5, %v3493_v46 }
 0x935   :  { %v1997_v49 = vmul.f32 %v3491_v4, %v1991_v58  ;;  %v1633_v4 = vadd.f32 %v4625_v15, %v4721_v13  ;;  %v1706_v58 = vadd.f32 %v4627_v38, %v4725_v3 }
 0x936   :  { %v1996_v32 = vmul.f32 0.0, %v1993_v2  ;;  %v1995_v50 = vadd.f32 0.5, %v1994_v25 }
 0x938   :  { %v4747_v54 = vadd.f32 %v1997_v49, %v1996_v32 }
 0x93a   :  { %3494 = vtanh.f32 %v4747_v54 }
 0x944   :  { %v3495_v61 = vpop.eup %3494 }
 0x945   :  { %v4750_v35 = vmul.f32 %v3495_v61, %v1995_v50 }
 0x947   :  { %v2002_v47 = vpack.c.bf16 %v4750_v35, %v4750_v35 }
 0x949   :  { %2036 = vmatmul.mubr.bf16.vlgmr.msra.gmra.mrb[68].mxu0 %v2002_v47  ;;  %2077 = vmatmul.mubr.bf16.vlgmr.msra.gmra.mrb[68].mxu1 %v2002_v47 }
 0x94a   :  { %2107 = vmatpush1.bf16.msra.mxu0 %v4518_v48  ;;  %2148 = vmatpush1.bf16.msra.mxu1 %v4520_v1 }
 0x94b   :  { %2108 = vmatprep.subr.bf16.mxu0 %v4526_v42  ;;  %2149 = vmatprep.subr.bf16.mxu1 %v4528_v26 }
 0x94c   :  { %2138 = vmatprep.mubr.bf16.mxu0 %v5155_v6  ;;  %2179 = vmatprep.mubr.bf16.mxu1 %v5155_v6 }
 0x94e   :  { %2109 = vmatpush1.bf16.msra.mxu0 %v4530_v43  ;;  %2150 = vmatpush1.bf16.msra.mxu1 %v4532_v57 }
 0x94f   :  { %2110 = vmatprep.subr.bf16.mxu0 %v4538_v53  ;;  %2151 = vmatprep.subr.bf16.mxu1 %v4540_v5 }
 0x952   :  { %2111 = vmatpush1.bf16.msra.mxu0 %v4542_v12  ;;  %2152 = vmatpush1.bf16.msra.mxu1 %v4544_v20 }
 0x953   :  { %2112 = vmatprep.subr.bf16.mxu0 %v4548_v24  ;;  %2153 = vmatprep.subr.bf16.mxu1 %v4550_v16 }
 0x956   :  { %2113 = vmatpush1.bf16.msra.mxu0 %v4554_v17  ;;  %2154 = vmatpush1.bf16.msra.mxu1 %v4556_v18 }
 0x957   :  { %2114 = vmatprep.subr.bf16.mxu0 %v4560_v19  ;;  %2155 = vmatprep.subr.bf16.mxu1 %v4562_v55 }
 0x95a   :  { %2115 = vmatpush1.bf16.msra.mxu0 %v4568_v56  ;;  %2156 = vmatpush1.bf16.msra.mxu1 %v4570_v60 }
 0x95b   :  { %2116 = vmatprep.subr.bf16.mxu0 %v4574_v62  ;;  %2157 = vmatprep.subr.bf16.mxu1 %v4576_v63 }
 0x95e   :  { %2117 = vmatpush1.bf16.msra.mxu0 %v4578_v41  ;;  %2158 = vmatpush1.bf16.msra.mxu1 %v4580_v22 }
 0x95f   :  { %2118 = vmatprep.subr.bf16.mxu0 %v4586_v45  ;;  %2159 = vmatprep.subr.bf16.mxu1 %v4588_v23 }
 0x962   :  { %2119 = vmatpush1.bf16.msra.mxu0 %v4590_v27  ;;  %2160 = vmatpush1.bf16.msra.mxu1 %v4592_v28 }
 0x963   :  { %2120 = vmatprep.subr.bf16.mxu0 %v4598_v51  ;;  %2161 = vmatprep.subr.bf16.mxu1 %v4600_v52 }
 0x966   :  { %2121 = vmatpush1.bf16.msra.mxu0 %v4602_v29  ;;  %2162 = vmatpush1.bf16.msra.mxu1 %v4604_v30 }
 0x967   :  { %2209 = vmatprep.subr.bf16.mxu0 %v4514_v8  ;;  %2250 = vmatprep.subr.bf16.mxu1 %v4516_v21 }
 0xa1c   :  { %v2037_v34 = vpop.f32.mrb[68].mxu0  ;;  %v2078_v59 = vpop.f32.mrb[68].mxu1 }
 0xa1d   :  { %v2085_v31 = vadd.f32 %v2037_v34, %v1633_v4  ;;  %v2087_v40 = vadd.f32 %v2078_v59, %v1706_v58  ;;  %v2039_v10 = vpop.f32.mrb[69].mxu0  ;;  %v2080_v33 = vpop.f32.mrb[69].mxu1 }
 0xa1e   :  { %v2086_v36 = vadd.f32 %v2039_v10, %v1635_v11  ;;  %v2088_v37 = vadd.f32 %v2080_v33, %v1708_v9  ;;  %v2041_v2 = vpop.f32.mrb[70].mxu0  ;;  %v2082_v49 = vpop.f32.mrb[70].mxu1  ;;  %v5204_v10 = vld [vmem:[#allocation15_spill] sm:$0xff] }
 0xa1f   :  { %3496 = vtanh.f32 %v2085_v31  ;;  %v2042_v15 = vpop.f32.mrb[71].mxu0  ;;  %v2083_v32 = vpop.f32.mrb[71].mxu1  ;;  %v1712_v33 = vadd.f32 %v5204_v10, %v4725_v3  ;;  %v5206_v2 = vld [vmem:[#allocation17_spill] sm:$0xff] }
 0xa20   :  { %3498 = vtanh.f32 %v2086_v36  ;;  %v5205_v36 = vld [vmem:[#allocation16_spill] sm:$0xff]  ;;  %v1714_v49 = vadd.f32 %v5206_v2, %v4737_v14 }
 0xa21   :  { %3500 = vtanh.f32 %v2087_v40 }
 0xa22   :  { %3502 = vtanh.f32 %v2088_v37  ;;  %v1641_v37 = vadd.f32 %v5205_v36, %v4733_v7 }
 0xa29   :  { %v3497_v38 = vpop.eup %3496 }
 0xa2a   :  { %v2093_v39 = vmul.f32 0.5, %v3497_v38  ;;  %v3499_v46 = vpop.eup %3498 }
 0xa2b   :  { %v2095_v44 = vmul.f32 0.5, %v3499_v46  ;;  %v3501_v50 = vpop.eup %3500 }
 0xa2c   :  { %v2094_v25 = vadd.f32 0.5, %v2093_v39  ;;  %v3503_v11 = vpop.eup %3502 }
 0xa2d   :  { %v2096_v61 = vadd.f32 0.5, %v2095_v44  ;;  %v2097_v9 = vmul.f32 0.5, %v3503_v11 }
 0xa2e   :  { %v2100_v47 = vmul.f32 %v3501_v50, %v2094_v25 }
 0xa2f   :  { %v2099_v4 = vmul.f32 %v2096_v61, %v4747_v54  ;;  %v2098_v34 = vadd.f32 0.5, %v2097_v9  ;;  %v1639_v54 = vadd.f32 %v4634_v0, %v4721_v13 }
 0xa31   :  { %v4797_v58 = vadd.f32 %v2100_v47, %v2099_v4 }
 0xa33   :  { %3504 = vtanh.f32 %v4797_v58 }
 0xa3d   :  { %v3505_v59 = vpop.eup %3504 }
 0xa3e   :  { %v4800_v31 = vmul.f32 %v3505_v59, %v2098_v34 }
 0xa40   :  { %v2105_v40 = vpack.c.bf16 %v4800_v31, %v4800_v31 }
 0xa42   :  { %2139 = vmatmul.mubr.bf16.vlgmr.msra.gmra.mrb[72].mxu0 %v2105_v40  ;;  %2180 = vmatmul.mubr.bf16.vlgmr.msra.gmra.mrb[72].mxu1 %v2105_v40 }
 0xa43   :  { %2210 = vmatpush1.bf16.msra.mxu0 %v4518_v48  ;;  %2251 = vmatpush1.bf16.msra.mxu1 %v4520_v1 }
 0xa44   :  { %2211 = vmatprep.subr.bf16.mxu0 %v4526_v42  ;;  %2252 = vmatprep.subr.bf16.mxu1 %v4528_v26 }
 0xa45   :  { %2241 = vmatprep.mubr.bf16.mxu0 %v5155_v6  ;;  %2282 = vmatprep.mubr.bf16.mxu1 %v5155_v6 }
 0xa47   :  { %2212 = vmatpush1.bf16.msra.mxu0 %v4530_v43  ;;  %2253 = vmatpush1.bf16.msra.mxu1 %v4532_v57 }
 0xa48   :  { %2213 = vmatprep.subr.bf16.mxu0 %v4538_v53  ;;  %2254 = vmatprep.subr.bf16.mxu1 %v4540_v5 }
 0xa4b   :  { %2214 = vmatpush1.bf16.msra.mxu0 %v4542_v12  ;;  %2255 = vmatpush1.bf16.msra.mxu1 %v4544_v20 }
 0xa4c   :  { %2215 = vmatprep.subr.bf16.mxu0 %v4548_v24  ;;  %2256 = vmatprep.subr.bf16.mxu1 %v4550_v16 }
 0xa4f   :  { %2216 = vmatpush1.bf16.msra.mxu0 %v4554_v17  ;;  %2257 = vmatpush1.bf16.msra.mxu1 %v4556_v18 }
 0xa50   :  { %2217 = vmatprep.subr.bf16.mxu0 %v4560_v19  ;;  %2258 = vmatprep.subr.bf16.mxu1 %v4562_v55 }
 0xa53   :  { %2218 = vmatpush1.bf16.msra.mxu0 %v4568_v56  ;;  %2259 = vmatpush1.bf16.msra.mxu1 %v4570_v60 }
 0xa54   :  { %2219 = vmatprep.subr.bf16.mxu0 %v4574_v62  ;;  %2260 = vmatprep.subr.bf16.mxu1 %v4576_v63 }
 0xa57   :  { %2220 = vmatpush1.bf16.msra.mxu0 %v4578_v41  ;;  %2261 = vmatpush1.bf16.msra.mxu1 %v4580_v22 }
 0xa58   :  { %2221 = vmatprep.subr.bf16.mxu0 %v4586_v45  ;;  %2262 = vmatprep.subr.bf16.mxu1 %v4588_v23 }
 0xa5b   :  { %2222 = vmatpush1.bf16.msra.mxu0 %v4590_v27  ;;  %2263 = vmatpush1.bf16.msra.mxu1 %v4592_v28 }
 0xa5c   :  { %2223 = vmatprep.subr.bf16.mxu0 %v4598_v51  ;;  %2264 = vmatprep.subr.bf16.mxu1 %v4600_v52 }
 0xa5f   :  { %2224 = vmatpush1.bf16.msra.mxu0 %v4602_v29  ;;  %2265 = vmatpush1.bf16.msra.mxu1 %v4604_v30 }
 0xa60   :  { %2312 = vmatprep.subr.bf16.mxu0 %v4514_v8  ;;  %2353 = vmatprep.subr.bf16.mxu1 %v4516_v21 }
 0xb15   :  { %v2140_v15 = vpop.f32.mrb[72].mxu0  ;;  %v2181_v32 = vpop.f32.mrb[72].mxu1 }
 0xb16   :  { %v2188_v38 = vadd.f32 %v2140_v15, %v1639_v54  ;;  %v2190_v39 = vadd.f32 %v2181_v32, %v1712_v33  ;;  %v2142_v46 = vpop.f32.mrb[73].mxu0  ;;  %v2183_v25 = vpop.f32.mrb[73].mxu1 }
 0xb17   :  { %v2189_v44 = vadd.f32 %v2142_v46, %v1641_v37  ;;  %v2191_v50 = vadd.f32 %v2183_v25, %v1714_v49  ;;  %v2144_v61 = vpop.f32.mrb[74].mxu0  ;;  %v2185_v47 = vpop.f32.mrb[74].mxu1  ;;  %v5208_v25 = vld [vmem:[#allocation19_spill] sm:$0xff] }
 0xb18   :  { %3506 = vtanh.f32 %v2188_v38  ;;  %v2145_v0 = vpop.f32.mrb[75].mxu0  ;;  %v2186_v4 = vpop.f32.mrb[75].mxu1  ;;  %v5210_v47 = vld [vmem:[#allocation21_spill] sm:$0xff] }
 0xb19   :  { %3508 = vtanh.f32 %v2189_v44  ;;  %v1716_v44 = vadd.f32 %v5208_v25, %v4725_v3  ;;  %v1718_v0 = vadd.f32 %v5210_v47, %v4737_v14 }
 0xb1a   :  { %3510 = vtanh.f32 %v2190_v39 }
 0xb1b   :  { %3512 = vtanh.f32 %v2191_v50  ;;  %v5209_v50 = vld [vmem:[#allocation20_spill] sm:$0xff] }
 0xb1c   :  { %v1645_v61 = vadd.f32 %v5209_v50, %v4733_v7 }
 0xb22   :  { %v3507_v11 = vpop.eup %3506 }
 0xb23   :  { %v2196_v9 = vmul.f32 0.5, %v3507_v11  ;;  %v3509_v34 = vpop.eup %3508 }
 0xb24   :  { %v2198_v40 = vmul.f32 0.5, %v3509_v34  ;;  %v3511_v10 = vpop.eup %3510 }
 0xb25   :  { %v2197_v59 = vadd.f32 0.5, %v2196_v9  ;;  %v3513_v2 = vpop.eup %3512 }
 0xb26   :  { %v2199_v54 = vadd.f32 0.5, %v2198_v40  ;;  %v2200_v49 = vmul.f32 0.5, %v3513_v2 }
 0xb27   :  { %v2203_v33 = vmul.f32 %v3511_v10, %v2197_v59 }
 0xb28   :  { %v2202_v36 = vmul.f32 %v2199_v54, %v4797_v58  ;;  %v2201_v15 = vadd.f32 0.5, %v2200_v49  ;;  %v5207_v58 = vld [vmem:[#allocation18_spill] sm:$0xff] }
 0xb29   :  { %v1643_v46 = vadd.f32 %v5207_v58, %v4721_v13 }
 0xb2a   :  { %v4847_v37 = vadd.f32 %v2203_v33, %v2202_v36 }
 0xb2c   :  { %3514 = vtanh.f32 %v4847_v37 }
 0xb36   :  { %v3515_v32 = vpop.eup %3514 }
 0xb37   :  { %v4850_v38 = vmul.f32 %v3515_v32, %v2201_v15 }
 0xb39   :  { %v2208_v39 = vpack.c.bf16 %v4850_v38, %v4850_v38 }
 0xb3b   :  { %2242 = vmatmul.mubr.bf16.vlgmr.msra.gmra.mrb[76].mxu0 %v2208_v39  ;;  %2283 = vmatmul.mubr.bf16.vlgmr.msra.gmra.mrb[76].mxu1 %v2208_v39 }
 0xb3c   :  { %2313 = vmatpush1.bf16.msra.mxu0 %v4518_v48  ;;  %2354 = vmatpush1.bf16.msra.mxu1 %v4520_v1 }
 0xb3d   :  { %2314 = vmatprep.subr.bf16.mxu0 %v4526_v42  ;;  %2355 = vmatprep.subr.bf16.mxu1 %v4528_v26 }
 0xb3e   :  { %2344 = vmatprep.mubr.bf16.mxu0 %v5155_v6  ;;  %2385 = vmatprep.mubr.bf16.mxu1 %v5155_v6 }
 0xb40   :  { %2315 = vmatpush1.bf16.msra.mxu0 %v4530_v43  ;;  %2356 = vmatpush1.bf16.msra.mxu1 %v4532_v57 }
 0xb41   :  { %2316 = vmatprep.subr.bf16.mxu0 %v4538_v53  ;;  %2357 = vmatprep.subr.bf16.mxu1 %v4540_v5 }
 0xb44   :  { %2317 = vmatpush1.bf16.msra.mxu0 %v4542_v12  ;;  %2358 = vmatpush1.bf16.msra.mxu1 %v4544_v20 }
 0xb45   :  { %2318 = vmatprep.subr.bf16.mxu0 %v4548_v24  ;;  %2359 = vmatprep.subr.bf16.mxu1 %v4550_v16 }
 0xb48   :  { %2319 = vmatpush1.bf16.msra.mxu0 %v4554_v17  ;;  %2360 = vmatpush1.bf16.msra.mxu1 %v4556_v18 }
 0xb49   :  { %2320 = vmatprep.subr.bf16.mxu0 %v4560_v19  ;;  %2361 = vmatprep.subr.bf16.mxu1 %v4562_v55 }
 0xb4c   :  { %2321 = vmatpush1.bf16.msra.mxu0 %v4568_v56  ;;  %2362 = vmatpush1.bf16.msra.mxu1 %v4570_v60 }
 0xb4d   :  { %2322 = vmatprep.subr.bf16.mxu0 %v4574_v62  ;;  %2363 = vmatprep.subr.bf16.mxu1 %v4576_v63 }
 0xb50   :  { %2323 = vmatpush1.bf16.msra.mxu0 %v4578_v41  ;;  %2364 = vmatpush1.bf16.msra.mxu1 %v4580_v22 }
 0xb51   :  { %2324 = vmatprep.subr.bf16.mxu0 %v4586_v45  ;;  %2365 = vmatprep.subr.bf16.mxu1 %v4588_v23 }
 0xb54   :  { %2325 = vmatpush1.bf16.msra.mxu0 %v4590_v27  ;;  %2366 = vmatpush1.bf16.msra.mxu1 %v4592_v28 }
 0xb55   :  { %2326 = vmatprep.subr.bf16.mxu0 %v4598_v51  ;;  %2367 = vmatprep.subr.bf16.mxu1 %v4600_v52 }
 0xb58   :  { %2327 = vmatpush1.bf16.msra.mxu0 %v4602_v29  ;;  %2368 = vmatpush1.bf16.msra.mxu1 %v4604_v30 }
 0xb59   :  { %2415 = vmatprep.subr.bf16.mxu0 %v4514_v8  ;;  %2456 = vmatprep.subr.bf16.mxu1 %v4516_v21 }
 0xc0e   :  { %v2243_v4 = vpop.f32.mrb[76].mxu0  ;;  %v2284_v11 = vpop.f32.mrb[76].mxu1 }
 0xc0f   :  { %v2291_v9 = vadd.f32 %v2243_v4, %v1643_v46  ;;  %v2293_v34 = vadd.f32 %v2284_v11, %v1716_v44  ;;  %v2245_v59 = vpop.f32.mrb[77].mxu0  ;;  %v2286_v40 = vpop.f32.mrb[77].mxu1 }
 0xc10   :  { %v2292_v10 = vadd.f32 %v2245_v59, %v1645_v61  ;;  %v2294_v54 = vadd.f32 %v2286_v40, %v1718_v0  ;;  %v2247_v33 = vpop.f32.mrb[78].mxu0  ;;  %v2288_v36 = vpop.f32.mrb[78].mxu1 }
 0xc11   :  { %3516 = vtanh.f32 %v2291_v9  ;;  %v2248_v2 = vpop.f32.mrb[79].mxu0  ;;  %v2289_v49 = vpop.f32.mrb[79].mxu1  ;;  %v5213_v33 = vld [vmem:[#allocation24_spill] sm:$0xff] }
 0xc12   :  { %3518 = vtanh.f32 %v2292_v10  ;;  %v5212_v10 = vld [vmem:[#allocation23_spill] sm:$0xff]  ;;  %v1651_v36 = vadd.f32 %v5213_v33, %v4733_v7  ;;  %v5214_v2 = vld [vmem:[#allocation25_spill] sm:$0xff] }
 0xc13   :  { %3520 = vtanh.f32 %v2293_v34  ;;  %v1724_v49 = vadd.f32 %v5214_v2, %v4737_v14 }
 0xc14   :  { %3522 = vtanh.f32 %v2294_v54  ;;  %v1722_v54 = vadd.f32 %v5212_v10, %v4725_v3 }
 0xc1b   :  { %v3517_v15 = vpop.eup %3516 }
 0xc1c   :  { %v2299_v32 = vmul.f32 0.5, %v3517_v15  ;;  %v3519_v39 = vpop.eup %3518 }
 0xc1d   :  { %v2301_v25 = vmul.f32 0.5, %v3519_v39  ;;  %v3521_v50 = vpop.eup %3520 }
 0xc1e   :  { %v2300_v58 = vadd.f32 0.5, %v2299_v32  ;;  %v3523_v0 = vpop.eup %3522 }
 0xc1f   :  { %v2302_v46 = vadd.f32 0.5, %v2301_v25  ;;  %v2303_v4 = vmul.f32 0.5, %v3523_v0 }
 0xc20   :  { %v2306_v44 = vmul.f32 %v3521_v50, %v2300_v58 }
 0xc21   :  { %v2305_v47 = vmul.f32 %v2302_v46, %v4847_v37  ;;  %v2304_v11 = vadd.f32 0.5, %v2303_v4  ;;  %v5211_v37 = vld [vmem:[#allocation22_spill] sm:$0xff] }
 0xc22   :  { %v1649_v40 = vadd.f32 %v5211_v37, %v4721_v13 }
 0xc23   :  { %v4897_v61 = vadd.f32 %v2306_v44, %v2305_v47 }
 0xc25   :  { %3524 = vtanh.f32 %v4897_v61 }
 0xc2f   :  { %v3525_v9 = vpop.eup %3524 }
 0xc30   :  { %v4900_v34 = vmul.f32 %v3525_v9, %v2304_v11 }
 0xc32   :  { %v2311_v59 = vpack.c.bf16 %v4900_v34, %v4900_v34 }
 0xc34   :  { %2345 = vmatmul.mubr.bf16.vlgmr.msra.gmra.mrb[80].mxu0 %v2311_v59  ;;  %2386 = vmatmul.mubr.bf16.vlgmr.msra.gmra.mrb[80].mxu1 %v2311_v59 }
 0xc35   :  { %2416 = vmatpush1.bf16.msra.mxu0 %v4518_v48  ;;  %2457 = vmatpush1.bf16.msra.mxu1 %v4520_v1 }
 0xc36   :  { %2417 = vmatprep.subr.bf16.mxu0 %v4526_v42  ;;  %2458 = vmatprep.subr.bf16.mxu1 %v4528_v26 }
 0xc37   :  { %2447 = vmatprep.mubr.bf16.mxu0 %v5155_v6  ;;  %2488 = vmatprep.mubr.bf16.mxu1 %v5155_v6 }
 0xc39   :  { %2418 = vmatpush1.bf16.msra.mxu0 %v4530_v43  ;;  %2459 = vmatpush1.bf16.msra.mxu1 %v4532_v57 }
 0xc3a   :  { %2419 = vmatprep.subr.bf16.mxu0 %v4538_v53  ;;  %2460 = vmatprep.subr.bf16.mxu1 %v4540_v5 }
 0xc3d   :  { %2420 = vmatpush1.bf16.msra.mxu0 %v4542_v12  ;;  %2461 = vmatpush1.bf16.msra.mxu1 %v4544_v20 }
 0xc3e   :  { %2421 = vmatprep.subr.bf16.mxu0 %v4548_v24  ;;  %2462 = vmatprep.subr.bf16.mxu1 %v4550_v16 }
 0xc41   :  { %2422 = vmatpush1.bf16.msra.mxu0 %v4554_v17  ;;  %2463 = vmatpush1.bf16.msra.mxu1 %v4556_v18 }
 0xc42   :  { %2423 = vmatprep.subr.bf16.mxu0 %v4560_v19  ;;  %2464 = vmatprep.subr.bf16.mxu1 %v4562_v55 }
 0xc45   :  { %2424 = vmatpush1.bf16.msra.mxu0 %v4568_v56  ;;  %2465 = vmatpush1.bf16.msra.mxu1 %v4570_v60 }
 0xc46   :  { %2425 = vmatprep.subr.bf16.mxu0 %v4574_v62  ;;  %2466 = vmatprep.subr.bf16.mxu1 %v4576_v63 }
 0xc49   :  { %2426 = vmatpush1.bf16.msra.mxu0 %v4578_v41  ;;  %2467 = vmatpush1.bf16.msra.mxu1 %v4580_v22 }
 0xc4a   :  { %2427 = vmatprep.subr.bf16.mxu0 %v4586_v45  ;;  %2468 = vmatprep.subr.bf16.mxu1 %v4588_v23 }
 0xc4d   :  { %2428 = vmatpush1.bf16.msra.mxu0 %v4590_v27  ;;  %2469 = vmatpush1.bf16.msra.mxu1 %v4592_v28 }
 0xc4e   :  { %2429 = vmatprep.subr.bf16.mxu0 %v4598_v51  ;;  %2470 = vmatprep.subr.bf16.mxu1 %v4600_v52 }
 0xc51   :  { %2430 = vmatpush1.bf16.msra.mxu0 %v4602_v29  ;;  %2471 = vmatpush1.bf16.msra.mxu1 %v4604_v30 }
 0xc52   :  { %2518 = vmatprep.subr.bf16.mxu0 %v4514_v8  ;;  %2559 = vmatprep.subr.bf16.mxu1 %v4516_v21 }
 0xd07   :  { %v2346_v15 = vpop.f32.mrb[80].mxu0  ;;  %v2387_v32 = vpop.f32.mrb[80].mxu1 }
 0xd08   :  { %v2394_v39 = vadd.f32 %v2346_v15, %v1649_v40  ;;  %v2396_v58 = vadd.f32 %v2387_v32, %v1722_v54  ;;  %v2348_v25 = vpop.f32.mrb[81].mxu0  ;;  %v2389_v8 = vpop.f32.mrb[81].mxu1 }
 0xd09   :  { %v2395_v50 = vadd.f32 %v2348_v25, %v1651_v36  ;;  %v2397_v21 = vadd.f32 %v2389_v8, %v1724_v49  ;;  %v2350_v46 = vpop.f32.mrb[82].mxu0  ;;  %v2391_v44 = vpop.f32.mrb[82].mxu1 }
 0xd0a   :  { %3526 = vtanh.f32 %v2394_v39  ;;  %v2351_v47 = vpop.f32.mrb[83].mxu0  ;;  %v2392_v0 = vpop.f32.mrb[83].mxu1 }
 0xd0b   :  { %3528 = vtanh.f32 %v2395_v50  ;;  %v3600_v0 = vld [vmem:[#allocation10] ss:$16 sps:$4 sm:$0xff]  }
 0xd0c   :  { %3530 = vtanh.f32 %v2396_v58 }
 0xd0d   :  { %3532 = vtanh.f32 %v2397_v21 }
 0xd14   :  { %v3527_v4 = vpop.eup %3526 }
 0xd15   :  { %v2402_v11 = vmul.f32 0.5, %v3527_v4  ;;  %v3529_v9 = vpop.eup %3528  ;;  %v3601_v4 = vld [vmem:[#allocation10 + $0x8] ss:$16 sps:$4 sm:$0xff]  }
 0xd16   :  { %v2404_v37 = vmul.f32 0.5, %v3529_v9  ;;  %v3531_v10 = vpop.eup %3530  ;;  %v3603_v9 = vld [vmem:[#allocation10 + $0x2c] ss:$16 sps:$4 sm:$0xff]  }
 0xd17   :  { %v2403_v59 = vadd.f32 0.5, %v2402_v11  ;;  %v3533_v2 = vpop.eup %3532  ;;  %v3602_v11 = vld [vmem:[#allocation10 + $0x24] ss:$16 sps:$4 sm:$0xff]  }
 0xd18   :  { %v2405_v40 = vadd.f32 0.5, %v2404_v37  ;;  %v2406_v49 = vmul.f32 0.5, %v3533_v2  ;;  %v3605_v37 = vld [vmem:[#allocation10 + $0x28] ss:$16 sps:$4 sm:$0xff]   ;;  %v3611_v2 = vld [vmem:[#allocation10 + $0x6c] ss:$16 sps:$4 sm:$0xff]  }
 0xd19   :  { %v2409_v54 = vmul.f32 %v3531_v10, %v2403_v59  ;;  %v3604_v59 = vld [vmem:[#allocation10 + $0x20] ss:$16 sps:$4 sm:$0xff]   ;;  %v3606_v10 = vld [vmem:[#allocation10 + $0x44] ss:$16 sps:$4 sm:$0xff]  }
 0xd1a   :  { %v2408_v33 = vmul.f32 %v2405_v40, %v4897_v61  ;;  %v2407_v15 = vadd.f32 0.5, %v2406_v49  ;;  %v3607_v40 = vld [vmem:[#allocation10 + $0x4c] ss:$16 sps:$4 sm:$0xff]   ;;  %v3612_v49 = vld [vmem:[#allocation10 + $0x60] ss:$16 sps:$4 sm:$0xff]  }
 0xd1c   :  { %v4947_v36 = vadd.f32 %v2409_v54, %v2408_v33  ;;  %v3608_v54 = vld [vmem:[#allocation10 + $0x40] ss:$16 sps:$4 sm:$0xff]   ;;  %v3609_v33 = vld [vmem:[#allocation10 + $0x48] ss:$16 sps:$4 sm:$0xff]  }
 0xd1e   :  { %3534 = vtanh.f32 %v4947_v36 }
 0xd28   :  { %v3535_v32 = vpop.eup %3534 }
 0xd29   :  { %v4950_v39 = vmul.f32 %v3535_v32, %v2407_v15  ;;  %v3613_v15 = vld [vmem:[#allocation10 + $0x68] ss:$16 sps:$4 sm:$0xff]   ;;  %v3615_v32 = vld [vmem:[#allocation10 + $0x8c] ss:$16 sps:$4 sm:$0xff]  }
 0xd2b   :  { %v2414_v58 = vpack.c.bf16 %v4950_v39, %v4950_v39 }
 0xd2d   :  { %2448 = vmatmul.mubr.bf16.vlgmr.msra.gmra.mrb[84].mxu0 %v2414_v58  ;;  %2489 = vmatmul.mubr.bf16.vlgmr.msra.gmra.mrb[84].mxu1 %v2414_v58  ;;  %v3616_v58 = vld [vmem:[#allocation10 + $0x80] ss:$16 sps:$4 sm:$0xff]  }
 0xd2e   :  { %2519 = vmatpush1.bf16.msra.mxu0 %v4518_v48  ;;  %2560 = vmatpush1.bf16.msra.mxu1 %v4520_v1  ;;  %v3598_v48 = vld [vmem:[#allocation10 + $0x4] ss:$16 sps:$4 sm:$0xff]   ;;  %v3599_v1 = vld [vmem:[#allocation10 + $0xc] ss:$16 sps:$4 sm:$0xff]  }
 0xd2f   :  { %2520 = vmatprep.subr.bf16.mxu0 %v4526_v42  ;;  %2561 = vmatprep.subr.bf16.mxu1 %v4528_v26  ;;  %v5215_v42 = vld [vmem:[#allocation26_spill] sm:$0xff] }
 0xd30   :  { %2550 = vmatprep.mubr.bf16.mxu0 %v5155_v6  ;;  %2591 = vmatprep.mubr.bf16.mxu1 %v5155_v6  ;;  %v1653_v26 = vadd.f32 %v5215_v42, %v4721_v13  ;;  %v3619_v42 = vld [vmem:[#allocation10 + $0xac] ss:$16 sps:$4 sm:$0xff]  }
 0xd32   :  { %2521 = vmatpush1.bf16.msra.mxu0 %v4530_v43  ;;  %2562 = vmatpush1.bf16.msra.mxu1 %v4532_v57  ;;  %v5216_v43 = vld [vmem:[#allocation27_spill] sm:$0xff] }
 0xd33   :  { %2522 = vmatprep.subr.bf16.mxu0 %v4538_v53  ;;  %2563 = vmatprep.subr.bf16.mxu1 %v4540_v5  ;;  %v1726_v57 = vadd.f32 %v5216_v43, %v4725_v3  ;;  %v5217_v53 = vld [vmem:[#allocation28_spill] sm:$0xff]  ;;  %v3621_v43 = vld [vmem:[#allocation10 + $0xa8] ss:$16 sps:$4 sm:$0xff]  }
 0xd34   :  { %v1655_v5 = vadd.f32 %v5217_v53, %v4733_v7  ;;  %v3623_v53 = vld [vmem:[#allocation10 + $0xcc] ss:$16 sps:$4 sm:$0xff]  }
 0xd36   :  { %2523 = vmatpush1.bf16.msra.mxu0 %v4542_v12  ;;  %2564 = vmatpush1.bf16.msra.mxu1 %v4544_v20  ;;  %v5218_v12 = vld [vmem:[#allocation29_spill] sm:$0xff] }
 0xd37   :  { %2524 = vmatprep.subr.bf16.mxu0 %v4548_v24  ;;  %2565 = vmatprep.subr.bf16.mxu1 %v4550_v16  ;;  %v1728_v20 = vadd.f32 %v5218_v12, %v4737_v14  ;;  %v3625_v12 = vld [vmem:[#allocation10 + $0xc8] ss:$16 sps:$4 sm:$0xff]  }
 0xd3a   :  { %2525 = vmatpush1.bf16.msra.mxu0 %v4554_v17  ;;  %2566 = vmatpush1.bf16.msra.mxu1 %v4556_v18 }
 0xd3b   :  { %2526 = vmatprep.subr.bf16.mxu0 %v4560_v19  ;;  %2567 = vmatprep.subr.bf16.mxu1 %v4562_v55 }
 0xd3e   :  { %2527 = vmatpush1.bf16.msra.mxu0 %v4568_v56  ;;  %2568 = vmatpush1.bf16.msra.mxu1 %v4570_v60 }
 0xd3f   :  { %2528 = vmatprep.subr.bf16.mxu0 %v4574_v62  ;;  %2569 = vmatprep.subr.bf16.mxu1 %v4576_v63 }
 0xd42   :  { %2529 = vmatpush1.bf16.msra.mxu0 %v4578_v41  ;;  %2570 = vmatpush1.bf16.msra.mxu1 %v4580_v22 }
 0xd43   :  { %2530 = vmatprep.subr.bf16.mxu0 %v4586_v45  ;;  %2571 = vmatprep.subr.bf16.mxu1 %v4588_v23 }
 0xd46   :  { %2531 = vmatpush1.bf16.msra.mxu0 %v4590_v27  ;;  %2572 = vmatpush1.bf16.msra.mxu1 %v4592_v28 }
 0xd47   :  { %2532 = vmatprep.subr.bf16.mxu0 %v4598_v51  ;;  %2573 = vmatprep.subr.bf16.mxu1 %v4600_v52 }
 0xd4a   :  { %2533 = vmatpush1.bf16.msra.mxu0 %v4602_v29  ;;  %2574 = vmatpush1.bf16.msra.mxu1 %v4604_v30 }
 0xd4b   :  { %2621 = vmatprep.subr.bf16.mxu0 %v3598_v48  ;;  %2662 = vmatprep.subr.bf16.mxu1 %v3599_v1  ;;  %v3617_v48 = vld [vmem:[#allocation10 + $0x88] ss:$16 sps:$4 sm:$0xff]   ;;  %v3618_v1 = vld [vmem:[#allocation10 + $0xa4] ss:$16 sps:$4 sm:$0xff]  }
 0xe00   :  { %v2449_v24 = vpop.f32.mrb[84].mxu0  ;;  %v2490_v16 = vpop.f32.mrb[84].mxu1 }
 0xe01   :  { %v2497_v17 = vadd.f32 %v2449_v24, %v1653_v26  ;;  %v2499_v18 = vadd.f32 %v2490_v16, %v1726_v57  ;;  %v2451_v19 = vpop.f32.mrb[85].mxu0  ;;  %v2492_v55 = vpop.f32.mrb[85].mxu1  ;;  %v3620_v26 = vld [vmem:[#allocation10 + $0xa0] ss:$16 sps:$4 sm:$0xff]   ;;  %v3622_v57 = vld [vmem:[#allocation10 + $0xc4] ss:$16 sps:$4 sm:$0xff]  }
 0xe02   :  { %v2498_v56 = vadd.f32 %v2451_v19, %v1655_v5  ;;  %v2500_v60 = vadd.f32 %v2492_v55, %v1728_v20  ;;  %v2453_v62 = vpop.f32.mrb[86].mxu0  ;;  %v2494_v63 = vpop.f32.mrb[86].mxu1  ;;  %v3624_v5 = vld [vmem:[#allocation10 + $0xc0] ss:$16 sps:$4 sm:$0xff]   ;;  %v3626_v20 = vld [vmem:[#allocation10 + $0xe4] ss:$16 sps:$4 sm:$0xff]  }
 0xe03   :  { %3536 = vtanh.f32 %v2497_v17  ;;  %v2454_v41 = vpop.f32.mrb[87].mxu0  ;;  %v2495_v22 = vpop.f32.mrb[87].mxu1  ;;  %v3627_v24 = vld [vmem:[#allocation10 + $0xec] ss:$16 sps:$4 sm:$0xff]   ;;  %v3628_v16 = vld [vmem:[#allocation10 + $0xe0] ss:$16 sps:$4 sm:$0xff]  }
 0xe04   :  { %3538 = vtanh.f32 %v2498_v56  ;;  %v3629_v17 = vld [vmem:[#allocation10 + $0xe8] ss:$16 sps:$4 sm:$0xff]   ;;  %v5219_v19 = vld [vmem:[#allocation30_spill] sm:$0xff]  ;;  %v5221_v62 = vld [vmem:[#allocation32_spill] sm:$0xff] }
 0xe05   :  { %3540 = vtanh.f32 %v2499_v18  ;;  %v3390_v18 = vld [vmem:[%s5121_s7] sm:$0xff]   ;;  %v1659_v55 = vadd.f32 %v5219_v19, %v4721_v13  ;;  %v1661_v63 = vadd.f32 %v5221_v62, %v4733_v7  ;;  %v5222_v41 = vld [vmem:[#allocation33_spill] sm:$0xff] }
 0xe06   :  { %3542 = vtanh.f32 %v2500_v60  ;;  %v5220_v56 = vld [vmem:[#allocation31_spill] sm:$0xff]  ;;  %v1734_v22 = vadd.f32 %v5222_v41, %v4737_v14  ;;  %v5226_v19 = vld [vmem:[#allocation36_spill] sm:$0xff] }
 0xe07   :  { %v1732_v60 = vadd.f32 %v5220_v56, %v4725_v3 }
 0xe0d   :  { %v3537_v45 = vpop.eup %3536 }
 0xe0e   :  { %v2505_v23 = vmul.f32 0.5, %v3537_v45  ;;  %v3539_v27 = vpop.eup %3538 }
 0xe0f   :  { %v2507_v51 = vmul.f32 0.5, %v3539_v27  ;;  %v3541_v52 = vpop.eup %3540 }
 0xe10   :  { %v2506_v28 = vadd.f32 0.5, %v2505_v23  ;;  %v3543_v8 = vpop.eup %3542 }
 0xe11   :  { %v2508_v29 = vadd.f32 0.5, %v2507_v51  ;;  %v2509_v50 = vmul.f32 0.5, %v3543_v8 }
 0xe12   :  { %v2512_v30 = vmul.f32 %v3541_v52, %v2506_v28 }
 0xe13   :  { %v2511_v61 = vmul.f32 %v2508_v29, %v4947_v36  ;;  %v2510_v21 = vadd.f32 0.5, %v2509_v50  ;;  %v3610_v36 = vld [vmem:[#allocation10 + $0x64] ss:$16 sps:$4 sm:$0xff]  }
 0xe15   :  { %v4995_v25 = vadd.f32 %v2512_v30, %v2511_v61 }
 0xe17   :  { %3544 = vtanh.f32 %v4995_v25 }
 0xe21   :  { %v3545_v46 = vpop.eup %3544 }
 0xe22   :  { %v4998_v44 = vmul.f32 %v3545_v46, %v2510_v21 }
 0xe24   :  { %v2517_v47 = vpack.c.bf16 %v4998_v44, %v4998_v44 }
 0xe26   :  { %2551 = vmatmul.mubr.bf16.vlgmr.msra.gmra.mrb[88].mxu0 %v2517_v47  ;;  %2592 = vmatmul.mubr.bf16.vlgmr.msra.gmra.mrb[88].mxu1 %v2517_v47 }
 0xe27   :  { %2622 = vmatpush1.bf16.msra.mxu0 %v3600_v0  ;;  %2663 = vmatpush1.bf16.msra.mxu1 %v3601_v4 }
 0xe28   :  { %2623 = vmatprep.subr.bf16.mxu0 %v3602_v11  ;;  %2664 = vmatprep.subr.bf16.mxu1 %v3603_v9 }
 0xe29   :  { %2653 = vmatprep.mubr.bf16.mxu0 %v5155_v6  ;;  %2694 = vmatprep.mubr.bf16.mxu1 %v5155_v6  ;;  %v3614_v6 = vld [vmem:[#allocation10 + $0x84] ss:$16 sps:$4 sm:$0xff]  }
 0xe2b   :  { %2624 = vmatpush1.bf16.msra.mxu0 %v3604_v59  ;;  %2665 = vmatpush1.bf16.msra.mxu1 %v3605_v37 }
 0xe2c   :  { %2625 = vmatprep.subr.bf16.mxu0 %v3606_v10  ;;  %2666 = vmatprep.subr.bf16.mxu1 %v3607_v40 }
 0xe2f   :  { %2626 = vmatpush1.bf16.msra.mxu0 %v3608_v54  ;;  %2667 = vmatpush1.bf16.msra.mxu1 %v3609_v33 }
 0xe30   :  { %2627 = vmatprep.subr.bf16.mxu0 %v3610_v36  ;;  %2668 = vmatprep.subr.bf16.mxu1 %v3611_v2 }
 0xe33   :  { %2628 = vmatpush1.bf16.msra.mxu0 %v3612_v49  ;;  %2669 = vmatpush1.bf16.msra.mxu1 %v3613_v15 }
 0xe34   :  { %2629 = vmatprep.subr.bf16.mxu0 %v3614_v6  ;;  %2670 = vmatprep.subr.bf16.mxu1 %v3615_v32  ;;  %v3391_v6 = vld [vmem:[%s5121_s7 + $0x8] sm:$0xff]   ;;  %v3392_v32 = vld [vmem:[%s5121_s7 + $0x10] sm:$0xff]  }
 0xe37   :  { %2630 = vmatpush1.bf16.msra.mxu0 %v3616_v58  ;;  %2671 = vmatpush1.bf16.msra.mxu1 %v3617_v48  ;;  %v3393_v58 = vld [vmem:[%s5121_s7 + $0x18] sm:$0xff]   ;;  %v3396_v48 = vld [vmem:[%s5121_s7 + $0x30] sm:$0xff]  }
 0xe38   :  { %2631 = vmatprep.subr.bf16.mxu0 %v3618_v1  ;;  %2672 = vmatprep.subr.bf16.mxu1 %v3619_v42  ;;  %v3397_v1 = vld [vmem:[%s5121_s7 + $0x38] sm:$0xff]   ;;  %v2732_v42 = vpack.c.bf16 %v4900_v34, %v4850_v38  ;;  %v3400_v38 = vld [vmem:[%s5123_s9 + $0x10] sm:$0xff]  }
 0xe39   :  { %v3401_v34 = vld [vmem:[%s5123_s9 + $0x18] sm:$0xff]  }
 0xe3b   :  { %2632 = vmatpush1.bf16.msra.mxu0 %v3620_v26  ;;  %2673 = vmatpush1.bf16.msra.mxu1 %v3621_v43  ;;  %v2733_v26 = vpack.c.bf16 %v4998_v44, %v4950_v39  ;;  %v3398_v43 = vld [vmem:[%s5123_s9] sm:$0xff]   ;;  %v3403_v44 = vld [vmem:[%s5123_s9 + $0x28] sm:$0xff]  }
 0xe3c   :  { %2633 = vmatprep.subr.bf16.mxu0 %v3622_v57  ;;  %2674 = vmatprep.subr.bf16.mxu1 %v3623_v53  ;;  %v3399_v57 = vld [vmem:[%s5123_s9 + $0x8] sm:$0xff]   ;;  %v3402_v39 = vld [vmem:[%s5123_s9 + $0x20] sm:$0xff]   ;;  %v3404_v53 = vld [vmem:[%s5123_s9 + $0x30] sm:$0xff]  }
 0xe3f   :  { %2634 = vmatpush1.bf16.msra.mxu0 %v3624_v5  ;;  %2675 = vmatpush1.bf16.msra.mxu1 %v3625_v12  ;;  %v3405_v5 = vld [vmem:[%s5123_s9 + $0x38] sm:$0xff]  }
 0xe40   :  { %2635 = vmatprep.subr.bf16.mxu0 %v3626_v20  ;;  %2676 = vmatprep.subr.bf16.mxu1 %v3627_v24  ;;  %v5223_v12 = vld [vmem:[#allocation34_spill] sm:$0xff]  ;;  %v5224_v24 = vld [vmem:[#allocation35_spill] sm:$0xff] }
 0xe41   :  { %v1663_v20 = vadd.f32 %v5223_v12, %v4721_v13 }
 0xe43   :  { %2636 = vmatpush1.bf16.msra.mxu0 %v3628_v16  ;;  %2677 = vmatpush1.bf16.msra.mxu1 %v3629_v17  ;;  %v1736_v16 = vadd.f32 %v5224_v24, %v4725_v3  ;;  %v5225_v17 = vld [vmem:[#allocation14_spill] sm:$0xff] }
 0xe44   :  { %3186 = vmatprep.subr.bf16.mxu0 %v3390_v18  ;;  %3210 = vmatprep.subr.bf16.mxu1 %v3398_v43 }
 0xef9   :  { %v2552_v45 = vpop.f32.mrb[88].mxu0  ;;  %v2593_v23 = vpop.f32.mrb[88].mxu1 }
 0xefa   :  { %v2600_v27 = vadd.f32 %v2552_v45, %v1659_v55  ;;  %v2602_v28 = vadd.f32 %v2593_v23, %v1732_v60  ;;  %v2554_v51 = vpop.f32.mrb[89].mxu0  ;;  %v2595_v52 = vpop.f32.mrb[89].mxu1  ;;  %v1738_v55 = vadd.f32 %v5226_v19, %v4737_v14 }
 0xefb   :  { %v2601_v29 = vadd.f32 %v2554_v51, %v1661_v63  ;;  %v2603_v30 = vadd.f32 %v2595_v52, %v1734_v22  ;;  %v2556_v61 = vpop.f32.mrb[90].mxu0  ;;  %v2597_v8 = vpop.f32.mrb[90].mxu1 }
 0xefc   :  { %3546 = vtanh.f32 %v2600_v27  ;;  %v2557_v50 = vpop.f32.mrb[91].mxu0  ;;  %v2598_v21 = vpop.f32.mrb[91].mxu1 }
 0xefd   :  { %3548 = vtanh.f32 %v2601_v29 }
 0xefe   :  { %3550 = vtanh.f32 %v2602_v28 }
 0xeff   :  { %3552 = vtanh.f32 %v2603_v30 }
 0xf06   :  { %v3547_v46 = vpop.eup %3546 }
 0xf07   :  { %v2608_v47 = vmul.f32 0.5, %v3547_v46  ;;  %v3549_v0 = vpop.eup %3548 }
 0xf08   :  { %v2610_v11 = vmul.f32 0.5, %v3549_v0  ;;  %v3551_v9 = vpop.eup %3550  ;;  %v3144_v0 = vld [vmem:[%s5122_s8] ss:$0 sm:$0xff] }
 0xf09   :  { %v2609_v4 = vadd.f32 0.5, %v2608_v47  ;;  %v3553_v54 = vpop.eup %3552 }
 0xf0a   :  { %v2611_v59 = vadd.f32 0.5, %v2610_v11  ;;  %v2612_v33 = vmul.f32 0.5, %v3553_v54 }
 0xf0b   :  { %v2615_v37 = vmul.f32 %v3551_v9, %v2609_v4 }
 0xf0c   :  { %v2614_v10 = vmul.f32 %v2611_v59, %v4995_v25  ;;  %v2613_v36 = vadd.f32 0.5, %v2612_v33  ;;  %v2731_v25 = vpack.c.bf16 %v4800_v31, %v4750_v35  ;;  %v3394_v35 = vld [vmem:[%s5121_s7 + $0x20] sm:$0xff]   ;;  %v3395_v31 = vld [vmem:[%s5121_s7 + $0x28] sm:$0xff]  }
 0xf0e   :  { %v5016_v40 = vadd.f32 %v2615_v37, %v2614_v10 }
 0xf10   :  { %3554 = vtanh.f32 %v5016_v40 }
 0xf1a   :  { %v3555_v2 = vpop.eup %3554 }
 0xf1b   :  { %v5019_v49 = vmul.f32 %v3555_v2, %v2613_v36 }
 0xf1d   :  { %v2620_v15 = vpack.c.bf16 %v5019_v49, %v5019_v49 }
 0xf1f   :  { %2654 = vmatmul.mubr.bf16.vlgmr.msra.gmra.mrb[92].mxu0 %v2620_v15  ;;  %2695 = vmatmul.mubr.bf16.vlgmr.msra.gmra.mrb[92].mxu1 %v2620_v15 }
 0xf20   :  { %3187 = vmatpush3.bf16.msra.mxu0 %v3390_v18  ;;  %3202 = vmatprep.mubr.bf16.mxu0 %v2731_v25  ;;  %v1665_v18 = vadd.f32 %v5225_v17, %v4733_v7 }
 0xf21   :  { %3188 = vmatprep.subr.bf16.mxu0 %v3391_v6  ;;  %3211 = vmatpush3.bf16.msra.mxu1 %v3398_v43 }
 0xf22   :  { %3212 = vmatprep.subr.bf16.mxu1 %v3399_v57 }
 0xf24   :  { %3189 = vmatpush3.bf16.msra.mxu0 %v3391_v6 }
 0xf25   :  { %3190 = vmatprep.subr.bf16.mxu0 %v3392_v32  ;;  %3213 = vmatpush3.bf16.msra.mxu1 %v3399_v57  ;;  %v3153_v57 = vld [vmem:[%s5124_s10] ss:$0 sm:$0xff] }
 0xf26   :  { %3214 = vmatprep.subr.bf16.mxu1 %v3400_v38 }
 0xf28   :  { %3191 = vmatpush3.bf16.msra.mxu0 %v3392_v32 }
 0xf29   :  { %3192 = vmatprep.subr.bf16.mxu0 %v3393_v58  ;;  %3215 = vmatpush3.bf16.msra.mxu1 %v3400_v38 }
 0xf2a   :  { %3216 = vmatprep.subr.bf16.mxu1 %v3401_v34 }
 0xf2c   :  { %3193 = vmatpush3.bf16.msra.mxu0 %v3393_v58 }
 0xf2d   :  { %3194 = vmatprep.subr.bf16.mxu0 %v3394_v35  ;;  %3217 = vmatpush3.bf16.msra.mxu1 %v3401_v34 }
 0xf2e   :  { %3218 = vmatprep.subr.bf16.mxu1 %v3402_v39 }
 0xf30   :  { %3195 = vmatpush3.bf16.msra.mxu0 %v3394_v35 }
 0xf31   :  { %3196 = vmatprep.subr.bf16.mxu0 %v3395_v31  ;;  %3219 = vmatpush3.bf16.msra.mxu1 %v3402_v39 }
 0xf32   :  { %3220 = vmatprep.subr.bf16.mxu1 %v3403_v44 }
 0xf34   :  { %3197 = vmatpush3.bf16.msra.mxu0 %v3395_v31 }
 0xf35   :  { %3198 = vmatprep.subr.bf16.mxu0 %v3396_v48  ;;  %3221 = vmatpush3.bf16.msra.mxu1 %v3403_v44 }
 0xf36   :  { %3222 = vmatprep.subr.bf16.mxu1 %v3404_v53 }
 0xf38   :  { %3199 = vmatpush3.bf16.msra.mxu0 %v3396_v48 }
 0xf39   :  { %3200 = vmatprep.subr.bf16.mxu0 %v3397_v1  ;;  %3223 = vmatpush3.bf16.msra.mxu1 %v3404_v53 }
 0xf3a   :  { %3224 = vmatprep.subr.bf16.mxu1 %v3405_v5 }
 0xf3c   :  { %3201 = vmatpush3.bf16.msra.mxu0 %v3397_v1 }
 0xf3d   :  { %3225 = vmatpush3.bf16.msra.mxu1 %v3405_v5 }
 0xf3f   :  { %3203 = vmatmul.mubr.bf16.vlgmr.msra.gmra.mrb[96].mxu0 %v2732_v42 }
 0xf40   :  { %3206 = vmatprep.mubr.bf16.mxu0 %v2733_v26 }
 0xff2   :  { %v2655_v56 = vpop.f32.mrb[92].mxu0  ;;  %v2696_v60 = vpop.f32.mrb[92].mxu1 }
 0xff3   :  { %v2703_v62 = vadd.f32 %v2655_v56, %v1663_v20  ;;  %v2705_v63 = vadd.f32 %v2696_v60, %v1736_v16  ;;  %v2657_v41 = vpop.f32.mrb[93].mxu0  ;;  %v2698_v22 = vpop.f32.mrb[93].mxu1 }
 0xff4   :  { %v2704_v45 = vadd.f32 %v2657_v41, %v1665_v18  ;;  %v2706_v23 = vadd.f32 %v2698_v22, %v1738_v55  ;;  %v2659_v27 = vpop.f32.mrb[94].mxu0  ;;  %v2700_v28 = vpop.f32.mrb[94].mxu1 }
 0xff5   :  { %3556 = vtanh.f32 %v2703_v62  ;;  %v2660_v13 = vpop.f32.mrb[95].mxu0  ;;  %v2701_v51 = vpop.f32.mrb[95].mxu1 }
 0xff6   :  { %3558 = vtanh.f32 %v2704_v45 }
 0xff7   :  { %3560 = vtanh.f32 %v2705_v63 }
 0xff8   :  { %3562 = vtanh.f32 %v2706_v23 }
 0xfff   :  { %v3557_v3 = vpop.eup %3556 }
0x1000   :  { %v2711_v7 = vmul.f32 0.5, %v3557_v3  ;;  %v3559_v52 = vpop.eup %3558 }
0x1001   :  { %v2713_v14 = vmul.f32 0.5, %v3559_v52  ;;  %v3561_v30 = vpop.eup %3560 }
0x1002   :  { %v2712_v29 = vadd.f32 0.5, %v2711_v7  ;;  %v3563_v46 = vpop.eup %3562 }
0x1003   :  { %v2714_v61 = vadd.f32 0.5, %v2713_v14  ;;  %v2715_v47 = vmul.f32 0.5, %v3563_v46 }
0x1004   :  { %v2718_v8 = vmul.f32 %v3561_v30, %v2712_v29 }
0x1005   :  { %v2717_v50 = vmul.f32 %v2714_v61, %v5016_v40  ;;  %v2716_v11 = vadd.f32 0.5, %v2715_v47 }
0x1007   :  { %v2719_v21 = vadd.f32 %v2718_v8, %v2717_v50 }
0x1009   :  { %3564 = vtanh.f32 %v2719_v21 }
0x1012   :  { %v3204_v4 = vpop.f32.mrb[96].mxu0 }
0x1013   :  { %v2849_v9 = vadd.f32 %v3204_v4, %v3144_v0  ;;  %v2840_v59 = vpop.f32.mrb[97].mxu0  ;;  %v3565_v37 = vpop.eup %3564 }
0x1014   :  { %v2841_v10 = vadd.f32 %v3144_v0, %v2840_v59  ;;  %v3205_v54 = vpop.f32.mrb[98].mxu0  ;;  %v2721_v2 = vmul.f32 %v3565_v37, %v2716_v11 }
0x1015   :  { %v2852_v33 = vadd.f32 %v3205_v54, %v3144_v0  ;;  %v2843_v36 = vpop.f32.mrb[99].mxu0  ;;  %v2873_v40 = vmax.f32 %v2849_v9, 0.0 }
0x1016   :  { %v2844_v15 = vadd.f32 %v3144_v0, %v2843_v36  ;;  %v2734_v25 = vpack.c.bf16 %v2721_v2, %v5019_v49  ;;  %v2871_v32 = vmax.f32 %v2841_v10, 0.0 }
0x1017   :  { %v2874_v6 = vmax.f32 %v2852_v33, 0.0 }
0x1018   :  { %v2872_v58 = vmax.f32 %v2844_v15, 0.0  ;;  %3207 = vmatmul.mubr.bf16.gmra.mrb[100].mxu0 %v2734_v25 }
0x1019   :  { %v2880_v35 = vpack.c.bf16 %v2874_v6, %v2873_v40 }
0x101a   :  { %v2879_v31 = vpack.c.bf16 %v2872_v58, %v2871_v32 }
0x101c   :  { %3226 = vmatprep.mubr.bf16.mxu1 %v2879_v31 }
0x101d   :  { %3227 = vmatmul.mubr.bf16.vlgmr.msra.gmra.mrb[96].mxu1 %v2880_v35 }
0x10eb   :  { %v3208_v48 = vpop.f32.mrb[100].mxu0 }
0x10ec   :  { %v2865_v1 = vadd.f32 %v3208_v48, %v3144_v0  ;;  %v2856_v42 = vpop.f32.mrb[101].mxu0 }
0x10ed   :  { %v2857_v26 = vadd.f32 %v3144_v0, %v2856_v42  ;;  %v3209_v43 = vpop.f32.mrb[102].mxu0 }
0x10ee   :  { %v2868_v38 = vadd.f32 %v3209_v43, %v3144_v0  ;;  %v2859_v34 = vpop.f32.mrb[103].mxu0  ;;  %v2877_v44 = vmax.f32 %v2865_v1, 0.0 }
0x10ef   :  { %v2860_v39 = vadd.f32 %v3144_v0, %v2859_v34  ;;  %v2875_v20 = vmax.f32 %v2857_v26, 0.0 }
0x10f0   :  { %v3228_v49 = vpop.f32.mrb[96].mxu1  ;;  %v2878_v53 = vmax.f32 %v2868_v38, 0.0 }
0x10f1   :  { %v2997_v5 = vadd.f32 %v3228_v49, %v3153_v57  ;;  %v2988_v12 = vpop.f32.mrb[97].mxu1  ;;  %v2876_v24 = vmax.f32 %v2860_v39, 0.0 }
0x10f2   :  { %v2989_v16 = vadd.f32 %v3153_v57, %v2988_v12  ;;  %v3229_v17 = vpop.f32.mrb[98].mxu1  ;;  %v2882_v18 = vpack.c.bf16 %v2878_v53, %v2877_v44 }
0x10f3   :  { %3021 = vst [vmem:[%s5125_s11 + $0x10] sm:$0xff] %v2997_v5  ;;  %v3000_v19 = vadd.f32 %v3229_v17, %v3153_v57  ;;  %v2991_v55 = vpop.f32.mrb[99].mxu1  ;;  %v2881_v56 = vpack.c.bf16 %v2876_v24, %v2875_v20 }
0x10f4   :  { %3019 = vst [vmem:[%s5125_s11] sm:$0xff] %v2989_v16  ;;  %v2992_v60 = vadd.f32 %v3153_v57, %v2991_v55 }
0x10f5   :  { %3022 = vst [vmem:[%s5125_s11 + $0x18] sm:$0xff] %v3000_v19  ;;  %3230 = vmatprep.mubr.bf16.mxu1 %v2881_v56 }
0x10f6   :  { %3020 = vst [vmem:[%s5125_s11 + $0x8] sm:$0xff] %v2992_v60  ;;  %3231 = vmatmul.mubr.bf16.gmra.mrb[100].mxu1 %v2882_v18 }
0x11c9   :  { %v3232_v62 = vpop.f32.mrb[100].mxu1 }
0x11ca   :  { %v3013_v63 = vadd.f32 %v3232_v62, %v3153_v57  ;;  %v3004_v41 = vpop.f32.mrb[101].mxu1 }
0x11cb   :  { %v3005_v22 = vadd.f32 %v3153_v57, %v3004_v41  ;;  %v3233_v45 = vpop.f32.mrb[102].mxu1 }
0x11cc   :  { %3025 = vst [vmem:[%s5125_s11 + $0x30] sm:$0xff] %v3013_v63  ;;  %v3016_v23 = vadd.f32 %v3233_v45, %v3153_v57  ;;  %v3007_v27 = vpop.f32.mrb[103].mxu1 }
0x11cd   :  { %3023 = vst [vmem:[%s5125_s11 + $0x20] sm:$0xff] %v3005_v22  ;;  %v3008_v28 = vadd.f32 %v3153_v57, %v3007_v27 }
0x11ce   :  { %3026 = vst [vmem:[%s5125_s11 + $0x38] sm:$0xff] %v3016_v23 }
0x11cf   :  { %3024 = vst [vmem:[%s5125_s11 + $0x28] sm:$0xff] %v3008_v28 }
0x11d0   :  { %3031 = vsyncpa [#allocation4], 1 }
0x11d1   :  { %3032 = vsyncpa [#allocation6], 1 }
0x11d2   :  { %3033 = vsyncpa [#allocation9], 1 }

</bundles_post_ra>
